<compile_context>
chip_gen: v7x
topology: tpu7x:2x2x1
jax: 0.10.0
libtpu: 0.0.40
codegen_flags: <defaults>
</compile_context>

<pallas_src>
import functools

import jax
import jax.numpy as jnp
from jax.experimental import pallas as pl
from jax.experimental.pallas import tpu as pltpu

LANE = 128


def _default_vmem_limit():
    # v5e/v6e: 128 MiB physical VMEM -> raise the scoped limit well past the
    # 16/32 MiB default.  v7x (64 MiB physical) / unknown: stay at 48 MiB.
    try:
        kind = jax.devices()[0].device_kind.lower()
    except Exception:  # pragma: no cover - defensive
        kind = ""
    if ("v5" in kind) or ("v6" in kind):
        return 96 * 1024 * 1024
    return 48 * 1024 * 1024


VMEM_LIMIT = _default_vmem_limit()


# ----------------------------------------------------------------------------
# small helpers
# ----------------------------------------------------------------------------
def _round_up(x, m):
    return ((x + m - 1) // m) * m


def _pick_hw_tile(hw, cap=1024):
    """Tile for the flattened (N, HW, C) kernels.

    Full extent if it fits under the cap, else the largest multiple-of-8 tile
    <= cap (preferring an exact divisor).  Never falls back to the full HW
    extent for large HW, so the VMEM budget stays bounded.
    """
    if hw <= cap:
        return hw
    t = cap - cap % 8
    for cand in range(t, 7, -8):
        if hw % cand == 0:
            return cand
    return t  # ragged last block: handled by the cdiv grid (+ masking for reductions)


def _pick_row_block(h, dilation, w, cap_m=2048):
    """Output rows per grid step for a dilated branch.

    Must divide both H (exact grid) and the dilation (so the ky-shifted row
    block start stays a multiple of the block size).  Capped so TH*W rows of
    the f32 accumulator stay comfortably in VMEM.
    """
    best = 1
    for th in range(1, dilation + 1):
        if dilation % th or h % th:
            continue
        if th * w <= cap_m:
            best = th
    return best


def _pad_cols(a, out_cols):
    pad = out_cols - a.shape[-1]
    if pad == 0:
        return a
    cfg = [(0, 0)] * (a.ndim - 1) + [(0, pad)]
    return jnp.pad(a, cfg)


# ----------------------------------------------------------------------------
# Pallas kernels
# ----------------------------------------------------------------------------
def _dilated3x3_kernel(x_ref, w_ref, b_ref, o_ref, acc_ref, *, th, width, dilation):
    """grid = (N, H//TH, 3); axis 2 is the ky kernel-row tap (reduction).

    x_ref  : (1, TH, Wp, C) bf16  dilation-shifted TH-row slab of the padded x
    w_ref  : (9, C, Op)     bf16  BN-scale-folded taps, ky*3+kx major order
    b_ref  : (1, Op)        f32   folded BN shift
    o_ref  : (1, TH, W, Op)       output rows h = hb*TH .. hb*TH+TH-1
    acc_ref: (TH*W, Op)     f32   resident accumulator across the 3 ky steps
    """
    ky = pl.program_id(2)

    @pl.when(ky == 0)
    def _():
        acc_ref[...] = jnp.zeros_like(acc_ref)

    def lhs(kx):
        # Build the (TH*W, C) LHS slab for this kx tap: TH row slices of the
        # padded block, stacked along the sublane (M) dim so the MXU sees
        # M = TH*W rows per matmul instead of W.
        s = kx * dilation                                   # static column offset
        rows = [x_ref[0, i, pl.ds(s, width), :] for i in range(th)]
        return rows[0] if th == 1 else jnp.concatenate(rows, axis=0)

    # Register-level accumulation of the 3 kx taps; a single scratch
    # read-modify-write per ky (vst slot pressure relief).
    part = jnp.dot(lhs(0), w_ref[ky * 3 + 0], preferred_element_type=jnp.float32)
    part = part + jnp.dot(lhs(1), w_ref[ky * 3 + 1], preferred_element_type=jnp.float32)
    part = part + jnp.dot(lhs(2), w_ref[ky * 3 + 2], preferred_element_type=jnp.float32)
    acc_ref[...] += part

    @pl.when(ky == pl.num_programs(2) - 1)
    def _():
        res = jnp.maximum(acc_ref[...] + b_ref[...], 0.0).astype(o_ref.dtype)
        for i in range(th):
            o_ref[0, i] = res[i * width:(i + 1) * width, :]


def _global_pool_kernel(x_ref, o_ref, acc_ref, *, inv_hw, rows, tile, ragged):
    # grid = (N, cdiv(HW, T)); tiled f32 sum reduction, mean written at the end.
    j = pl.program_id(1)

    @pl.when(j == 0)
    def _():
        acc_ref[...] = jnp.zeros_like(acc_ref)

    xv = x_ref[0].astype(jnp.float32)                      # (T, C)
    if ragged:  # mask rows past HW in the (possibly partial) last block
        row_ids = jax.lax.broadcasted_iota(jnp.int32, xv.shape, 0) + j * tile
        xv = jnp.where(row_ids < rows, xv, 0.0)
    acc_ref[...] += jnp.sum(xv, axis=0, keepdims=True)

    @pl.when(j == pl.num_programs(1) - 1)
    def _():
        o_ref[0] = acc_ref[...] * inv_hw


def _final_fused_kernel(x_ref, y2_ref, y3_ref, y4_ref, w1_ref, b1_ref,
                        wf_ref, bias_ref, o_ref):
    # Fused: branch-1 1x1 conv + concat + final 1x1 conv + BN + ReLU.
    # x:(1,T,C) bf16, y2..y4:(1,T,Op) bf16, w1:(C,Op) bf16, b1:(1,Op) f32,
    # wf:(4,Op,Op) bf16, bias:(1,1,Op) f32 (= shift_final + pooled-branch term).
    y1 = jnp.maximum(
        jnp.dot(x_ref[0], w1_ref[...], preferred_element_type=jnp.float32)
        + b1_ref[...], 0.0).astype(jnp.bfloat16)
    acc = jnp.dot(y1, wf_ref[0], preferred_element_type=jnp.float32)
    acc = acc + jnp.dot(y2_ref[0], wf_ref[1], preferred_element_type=jnp.float32)
    acc = acc + jnp.dot(y3_ref[0], wf_ref[2], preferred_element_type=jnp.float32)
    acc = acc + jnp.dot(y4_ref[0], wf_ref[3], preferred_element_type=jnp.float32)
    o_ref[0] = jnp.maximum(acc + bias_ref[0], 0.0).astype(o_ref.dtype)


# ----------------------------------------------------------------------------
# pallas_call wrappers
# ----------------------------------------------------------------------------
def dilated3x3_bias_relu(x_nhwc, w_taps, b, *, dilation, out_dtype=jnp.bfloat16):
    N, H, W, C = x_nhwc.shape
    Op = w_taps.shape[-1]
    d = dilation
    # Per-branch zero pad (= its own dilation): no wasted DMA columns / rows.
    xpad = jnp.pad(x_nhwc, ((0, 0), (d, d), (d, d), (0, 0)))
    Hp, Wp = H + 2 * d, W + 2 * d
    th = _pick_row_block(H, d, W)                  # th | gcd(H, d)
    kern = functools.partial(_dilated3x3_kernel, th=th, width=W, dilation=d)

    flops = int(2 * 9 * N * H * W * C * Op)
    bytes_accessed = int((3 * N * Hp * Wp * C + 9 * C * Op + N * H * W * Op) * 2
                         + Op * 4)

    return pl.pallas_call(
        kern,
        out_shape=jax.ShapeDtypeStruct((N, H, W, Op), out_dtype),
        grid=(N, H // th, 3),
        in_specs=[
            # Row-block index of the padded copy: hb + ky*(d//th) (th | d).
            pl.BlockSpec((1, th, Wp, C),
                         lambda n, hb, ky: (n, hb + ky * (d // th), 0, 0)),
            # Constant-index weight/bias blocks.  On v7x with large C*Op these
            # could be single-buffered via pipeline_mode=pl.Buffered(1).
            pl.BlockSpec((9, C, Op), lambda n, hb, ky: (0, 0, 0)),
            pl.BlockSpec((1, Op), lambda n, hb, ky: (0, 0)),
        ],
        out_specs=pl.BlockSpec((1, th, W, Op), lambda n, hb, ky: (n, hb, 0, 0)),
        scratch_shapes=[pltpu.VMEM((th * W, Op), jnp.float32)],
        compiler_params=pltpu.CompilerParams(
            dimension_semantics=("parallel", "parallel", "arbitrary"),
            vmem_limit_bytes=VMEM_LIMIT),
        cost_estimate=pl.CostEstimate(flops=flops, transcendentals=0,
                                      bytes_accessed=bytes_accessed),
    )(xpad, w_taps, b)


def global_avg_pool(xflat):
    N, HW, C = xflat.shape
    T = _pick_hw_tile(HW)
    grid_hw = pl.cdiv(HW, T)
    ragged = (HW % T) != 0
    kern = functools.partial(_global_pool_kernel, inv_hw=1.0 / HW,
                             rows=HW, tile=T, ragged=ragged)
    out = pl.pallas_call(
        kern,
        out_shape=jax.ShapeDtypeStruct((N, 1, C), jnp.float32),
        grid=(N, grid_hw),
        in_specs=[pl.BlockSpec((1, T, C), lambda n, j: (n, j, 0))],
        out_specs=pl.BlockSpec((1, 1, C), lambda n, j: (n, 0, 0)),
        scratch_shapes=[pltpu.VMEM((1, C), jnp.float32)],
        compiler_params=pltpu.CompilerParams(
            dimension_semantics=("parallel", "arbitrary"),
            vmem_limit_bytes=VMEM_LIMIT),
    )(xflat)
    return out.reshape(N, C)


def final_fused_conv(xflat, y2, y3, y4, w1, b1, wf4, bias, out_dtype=jnp.bfloat16):
    N, HW, C = xflat.shape
    Op = wf4.shape[-1]
    T = _pick_hw_tile(HW)
    grid_hw = pl.cdiv(HW, T)
    bias3 = bias.reshape(N, 1, Op)

    flops = int(2 * N * HW * Op * (C + 4 * Op))
    bytes_accessed = int((N * HW * (C + 4 * Op) + C * Op + 4 * Op * Op) * 2
                         + N * Op * 4)

    return pl.pallas_call(
        _final_fused_kernel,
        out_shape=jax.ShapeDtypeStruct((N, HW, Op), out_dtype),
        grid=(N, grid_hw),
        in_specs=[
            pl.BlockSpec((1, T, C), lambda n, j: (n, j, 0)),
            pl.BlockSpec((1, T, Op), lambda n, j: (n, j, 0)),
            pl.BlockSpec((1, T, Op), lambda n, j: (n, j, 0)),
            pl.BlockSpec((1, T, Op), lambda n, j: (n, j, 0)),
            pl.BlockSpec((C, Op), lambda n, j: (0, 0)),
            pl.BlockSpec((1, Op), lambda n, j: (0, 0)),
            pl.BlockSpec((4, Op, Op), lambda n, j: (0, 0, 0)),
            pl.BlockSpec((1, 1, Op), lambda n, j: (n, 0, 0)),
        ],
        out_specs=pl.BlockSpec((1, T, Op), lambda n, j: (n, j, 0)),
        compiler_params=pltpu.CompilerParams(
            dimension_semantics=("parallel", "parallel"),
            vmem_limit_bytes=VMEM_LIMIT),
        cost_estimate=pl.CostEstimate(flops=flops, transcendentals=0,
                                      bytes_accessed=bytes_accessed),
    )(xflat, y2, y3, y4, w1, b1, wf4, bias3)


# ----------------------------------------------------------------------------
# parameter init (matches the PyTorch module's deterministic init) + folding
# ----------------------------------------------------------------------------
def kaiming_normal(key, shape):
    o, i, kh, kw = shape
    fan_in = i * kh * kw
    std = (2.0 / fan_in) ** 0.5
    return jax.random.normal(key, shape, dtype=jnp.float32) * std


def init_aspp_params(key, inchan, outchan, eps=1e-5):
    ks = jax.random.split(key, 6)

    def bn():
        # gamma=1, beta=0, running_mean=0, running_var=1 (inference folding)
        gamma = jnp.ones((outchan,), jnp.float32)
        beta = jnp.zeros((outchan,), jnp.float32)
        mean = jnp.zeros((outchan,), jnp.float32)
        var = jnp.ones((outchan,), jnp.float32)
        scale = gamma / jnp.sqrt(var + eps)
        shift = beta - mean * scale
        return (scale, shift)

    return {
        "w1": kaiming_normal(ks[0], (outchan, inchan, 1, 1)),
        "w2": kaiming_normal(ks[1], (outchan, inchan, 3, 3)),
        "w3": kaiming_normal(ks[2], (outchan, inchan, 3, 3)),
        "w4": kaiming_normal(ks[3], (outchan, inchan, 3, 3)),
        "w_pool": kaiming_normal(ks[4], (outchan, inchan, 1, 1)),
        "w_final": kaiming_normal(ks[5], (outchan, outchan * 5, 1, 1)),
        "bn1": bn(), "bn2": bn(), "bn3": bn(), "bn4": bn(),
        "bn_pool": bn(), "bn_final": bn(),
    }


def fold_params(params, inchan, outchan):
    """Fold per-branch BN scale into weights, pad out-channels to 128, cast."""
    Op = _round_up(outchan, LANE)
    C = inchan

    def fold_1x1(w, bn):
        scale, shift = bn
        m = jnp.transpose(w, (2, 3, 1, 0)).reshape(C, outchan) * scale[None, :]
        return _pad_cols(m, Op), _pad_cols(shift.reshape(1, outchan), Op)

    def fold_3x3(w, bn):
        scale, shift = bn
        m = jnp.transpose(w, (2, 3, 1, 0)).reshape(9, C, outchan)
        m = m * scale[None, None, :]
        return _pad_cols(m, Op), _pad_cols(shift.reshape(1, outchan), Op)

    w1, b1 = fold_1x1(params["w1"], params["bn1"])
    w_taps, b_dil = [], []
    for wk, bk in (("w2", "bn2"), ("w3", "bn3"), ("w4", "bn4")):
        wt, bt = fold_3x3(params[wk], params[bk])
        w_taps.append(wt.astype(jnp.bfloat16))
        b_dil.append(bt)
    wp, bp = fold_1x1(params["w_pool"], params["bn_pool"])

    scale_f, shift_f = params["bn_final"]
    wf = jnp.transpose(params["w_final"], (2, 3, 1, 0)).reshape(5, outchan, outchan)
    wf = wf * scale_f[None, None, :]
    wf = jnp.pad(wf, ((0, 0), (0, Op - outchan), (0, Op - outchan)))
    b_final = _pad_cols(shift_f.reshape(1, outchan), Op)

    return {
        "w1": w1.astype(jnp.bfloat16), "b1": b1,      # branch 1 (fused into final)
        "w_taps": w_taps, "b_dil": b_dil,             # dilated branches
        "w_pool": wp, "b_pool": bp,                   # pooled head stays f32 (tiny)
        "wf4": wf[:4].astype(jnp.bfloat16),           # final-conv blocks for y1..y4
        "wf5": wf[4],                                 # pooled-branch block (f32)
        "b_final": b_final,
    }


# ----------------------------------------------------------------------------
# ASPP forward (inference mode)
# ----------------------------------------------------------------------------
def aspp_forward(x_nchw, fp, outchan):
    dilations = (1, 6, 12, 18)

    x = jnp.transpose(x_nchw, (0, 2, 3, 1))            # NCHW -> NHWC
    N, H, W, C = x.shape
    HW = H * W
    x_bf = x.astype(jnp.bfloat16)
    xflat = x_bf.reshape(N, HW, C)

    # branches 2-4: dilated 3x3 conv + BN + ReLU (9-tap accumulation, TH-row
    # blocked MXU matmuls, per-branch padding).
    ys = []
    for idx, d in enumerate(dilations[1:]):
        y = dilated3x3_bias_relu(x_bf, fp["w_taps"][idx], fp["b_dil"][idx],
                                 dilation=d)
        ys.append(y.reshape(N, HW, -1))
    y2, y3, y4 = ys

    # pooled branch: Pallas tiled HW reduction + tiny jnp head; bilinear
    # upsample of a 1x1 map (align_corners=True) is a constant broadcast, so
    # it folds into a per-batch bias of the fused final conv.
    pooled = global_avg_pool(xflat)                                  # (N, C) f32
    y5 = jnp.maximum(pooled @ fp["w_pool"] + fp["b_pool"], 0.0)      # (N, Op) f32
    bias = fp["b_final"] + y5 @ fp["wf5"]                            # (N, Op) f32

    # fused: branch-1 1x1 conv + concat + final 1x1 conv + BN + ReLU (bf16 out)
    out = final_fused_conv(xflat, y2, y3, y4, fp["w1"], fp["b1"],
                           fp["wf4"], bias)                          # (N, HW, Op)
    out = out.reshape(N, H, W, -1)[..., :outchan].astype(jnp.float32)
    # TODO(synk): nn.Dropout is identity in eval mode; training-mode dropout not applied.
    return jnp.transpose(out, (0, 3, 1, 2))                          # NHWC -> NCHW


# ----------------------------------------------------------------------------
# pure-JAX reference (mirrors the PyTorch module, inference-mode BN)
# ----------------------------------------------------------------------------
def aspp_reference(x_nchw, params):
    x = x_nchw.astype(jnp.float32)

    def conv(inp, w, dilation, padding):
        return jax.lax.conv_general_dilated(
            inp, w, window_strides=(1, 1),
            padding=[(padding, padding), (padding, padding)],
            rhs_dilation=(dilation, dilation),
            dimension_numbers=("NCHW", "OIHW", "NCHW"),
            precision=jax.lax.Precision.HIGHEST)

    def bn_relu(y, bn):
        scale, shift = bn
        return jnp.maximum(y * scale[None, :, None, None]
                           + shift[None, :, None, None], 0.0)

    x1 = bn_relu(conv(x, params["w1"], 1, 0), params["bn1"])
    x2 = bn_relu(conv(x, params["w2"], 6, 6), params["bn2"])
    x3 = bn_relu(conv(x, params["w3"], 12, 12), params["bn3"])
    x4 = bn_relu(conv(x, params["w4"], 18, 18), params["bn4"])
    pooled = jnp.mean(x, axis=(2, 3), keepdims=True)
    x5 = bn_relu(conv(pooled, params["w_pool"], 1, 0), params["bn_pool"])
    x5 = jnp.broadcast_to(x5, (x.shape[0], x5.shape[1], x.shape[2], x.shape[3]))
    cat = jnp.concatenate([x1, x2, x3, x4, x5], axis=1)
    return bn_relu(conv(cat, params["w_final"], 1, 0), params["bn_final"])


# ----------------------------------------------------------------------------
if __name__ == "__main__":
    key = jax.random.PRNGKey(0)
    k_x, k_p = jax.random.split(key)

    N, inchan, Hs, Ws = 2, 4, 16, 16
    outchan = 32

    x = jax.random.normal(k_x, (N, inchan, Hs, Ws), dtype=jnp.float32)
    params = init_aspp_params(k_p, inchan, outchan)
    folded = fold_params(params, inchan, outchan)

    out = jax.jit(aspp_forward, static_argnums=(2,))(x, folded, outchan)
    out = jax.block_until_ready(out)
    assert out.shape == (N, outchan, Hs, Ws)
    assert bool(jnp.all(jnp.isfinite(out)))

    ref = aspp_reference(x, params)
    max_err = float(jnp.max(jnp.abs(out - ref)))
    scale = float(jnp.max(jnp.abs(ref)))
    # relative-style gate (bf16 activations/weights and bf16 final store)
    tol = max(0.05, 0.03 * scale)
    assert max_err < tol, f"max abs error {max_err} vs tol {tol} (ref scale {scale})"
    print("KERNEL_OK")
</pallas_src>

<mosaic_0001>
module attributes {stable_mosaic.version = 11 : i64} {
  func.func @_dilated3x3_kernel(%arg0: i32, %arg1: i32, %arg2: i32, %arg3: memref<1x2x52x4xbf16, #tpu.memory_space<vmem>>, %arg4: memref<9x4x128xbf16, #tpu.memory_space<vmem>>, %arg5: memref<1x128xf32, #tpu.memory_space<vmem>>, %arg6: memref<1x2x16x128xbf16, #tpu.memory_space<vmem>>, %arg7: memref<32x128xf32, #tpu.memory_space<vmem>>) attributes {dimension_semantics = [#tpu.dimension_semantics<parallel>, #tpu.dimension_semantics<parallel>, #tpu.dimension_semantics<arbitrary>], iteration_bounds = array<i64: 2, 8, 3>, scalar_prefetch = 0 : i64, scratch_operands = 1 : i64, tpu.core_type = #tpu.core_type<tc>, window_params = [{transform_indices = @transform_0, window_bounds = array<i64: 1, 2, 52, 4>}, {pipeline_mode = #tpu.pipeline_mode<synchronous>, transform_indices = @transform_1, window_bounds = array<i64: 9, 4, 128>}, {pipeline_mode = #tpu.pipeline_mode<synchronous>, transform_indices = @transform_2, window_bounds = array<i64: 1, 128>}, {transform_indices = @transform_3, window_bounds = array<i64: 1, 2, 16, 128>}]} {
    %c0_i32 = arith.constant 0 : i32
    %0 = arith.cmpi eq, %arg2, %c0_i32 : i32
    %1 = arith.extui %0 : i1 to i32
    %c0_i32_0 = arith.constant 0 : i32
    %2 = arith.cmpi ne, %1, %c0_i32_0 : i32
    scf.if %2 {
      %cst_38 = arith.constant 0.000000e+00 : f32
      %44 = vector.broadcast %cst_38 : f32 to vector<32x128xf32>
      %c0_39 = arith.constant 0 : index
      %c0_40 = arith.constant 0 : index
      %45 = vector.load %arg7[%c0_39, %c0_40] : memref<32x128xf32, #tpu.memory_space<vmem>>, vector<32x128xf32>
      tpu.vector_store %arg7[%c0_39, %c0_40], %44 {strides = array<i32>} : memref<32x128xf32, #tpu.memory_space<vmem>>, vector<32x128xf32>,
    } else {
    }
    %c0 = arith.constant 0 : index
    %c0_1 = arith.constant 0 : index
    %c0_2 = arith.constant 0 : index
    %c0_3 = arith.constant 0 : index
    %3 = vector.load %arg3[%c0, %c0_1, %c0_2, %c0_3] : memref<1x2x52x4xbf16, #tpu.memory_space<vmem>>, vector<1x1x16x4xbf16>
    %4 = vector.shape_cast %3 : vector<1x1x16x4xbf16> to vector<16x4xbf16>
    %c0_4 = arith.constant 0 : index
    %c1 = arith.constant 1 : index
    %c0_5 = arith.constant 0 : index
    %c0_6 = arith.constant 0 : index
    %5 = vector.load %arg3[%c0_4, %c1, %c0_5, %c0_6] : memref<1x2x52x4xbf16, #tpu.memory_space<vmem>>, vector<1x1x16x4xbf16>
    %6 = vector.shape_cast %5 : vector<1x1x16x4xbf16> to vector<16x4xbf16>
    %7 = tpu.concatenate %4, %6 in 0 : vector<16x4xbf16>, vector<16x4xbf16> -> vector<32x4xbf16>
    %c3_i32 = arith.constant 3 : i32
    %8 = arith.muli %arg2, %c3_i32 : i32
    %c0_i32_7 = arith.constant 0 : i32
    %9 = arith.addi %8, %c0_i32_7 : i32
    %10 = arith.index_cast %9 : i32 to index
    %c0_8 = arith.constant 0 : index
    %c0_9 = arith.constant 0 : index
    %11 = vector.load %arg4[%10, %c0_8, %c0_9] : memref<9x4x128xbf16, #tpu.memory_space<vmem>>, vector<1x4x128xbf16>
    %12 = vector.shape_cast %11 : vector<1x4x128xbf16> to vector<4x128xbf16>
    %cst = arith.constant dense<0.000000e+00> : vector<32x128xf32>
    %13 = tpu.matmul %7, %12, %cst {dimension_numbers = #tpu.dot_dimension_numbers<[1], [0], [0], [1], [0, 0, 1, 1], [], []>} : vector<32x4xbf16>, vector<4x128xbf16>, vector<32x128xf32> -> vector<32x128xf32>
    %c0_10 = arith.constant 0 : index
    %c0_11 = arith.constant 0 : index
    %c18 = arith.constant 18 : index
    %c0_12 = arith.constant 0 : index
    %14 = vector.load %arg3[%c0_10, %c0_11, %c18, %c0_12] : memref<1x2x52x4xbf16, #tpu.memory_space<vmem>>, vector<1x1x16x4xbf16>
    %15 = vector.shape_cast %14 : vector<1x1x16x4xbf16> to vector<16x4xbf16>
    %c0_13 = arith.constant 0 : index
    %c1_14 = arith.constant 1 : index
    %c18_15 = arith.constant 18 : index
    %c0_16 = arith.constant 0 : index
    %16 = vector.load %arg3[%c0_13, %c1_14, %c18_15, %c0_16] : memref<1x2x52x4xbf16, #tpu.memory_space<vmem>>, vector<1x1x16x4xbf16>
    %17 = vector.shape_cast %16 : vector<1x1x16x4xbf16> to vector<16x4xbf16>
    %18 = tpu.concatenate %15, %17 in 0 : vector<16x4xbf16>, vector<16x4xbf16> -> vector<32x4xbf16>
    %c3_i32_17 = arith.constant 3 : i32
    %19 = arith.muli %arg2, %c3_i32_17 : i32
    %c1_i32 = arith.constant 1 : i32
    %20 = arith.addi %19, %c1_i32 : i32
    %21 = arith.index_cast %20 : i32 to index
    %c0_18 = arith.constant 0 : index
    %c0_19 = arith.constant 0 : index
    %22 = vector.load %arg4[%21, %c0_18, %c0_19] : memref<9x4x128xbf16, #tpu.memory_space<vmem>>, vector<1x4x128xbf16>
    %23 = vector.shape_cast %22 : vector<1x4x128xbf16> to vector<4x128xbf16>
    %cst_20 = arith.constant dense<0.000000e+00> : vector<32x128xf32>
    %24 = tpu.matmul %18, %23, %cst_20 {dimension_numbers = #tpu.dot_dimension_numbers<[1], [0], [0], [1], [0, 0, 1, 1], [], []>} : vector<32x4xbf16>, vector<4x128xbf16>, vector<32x128xf32> -> vector<32x128xf32>
    %25 = arith.addf %13, %24 : vector<32x128xf32>
    %c0_21 = arith.constant 0 : index
    %c0_22 = arith.constant 0 : index
    %c36 = arith.constant 36 : index
    %c0_23 = arith.constant 0 : index
    %26 = vector.load %arg3[%c0_21, %c0_22, %c36, %c0_23] : memref<1x2x52x4xbf16, #tpu.memory_space<vmem>>, vector<1x1x16x4xbf16>
    %27 = vector.shape_cast %26 : vector<1x1x16x4xbf16> to vector<16x4xbf16>
    %c0_24 = arith.constant 0 : index
    %c1_25 = arith.constant 1 : index
    %c36_26 = arith.constant 36 : index
    %c0_27 = arith.constant 0 : index
    %28 = vector.load %arg3[%c0_24, %c1_25, %c36_26, %c0_27] : memref<1x2x52x4xbf16, #tpu.memory_space<vmem>>, vector<1x1x16x4xbf16>
    %29 = vector.shape_cast %28 : vector<1x1x16x4xbf16> to vector<16x4xbf16>
    %30 = tpu.concatenate %27, %29 in 0 : vector<16x4xbf16>, vector<16x4xbf16> -> vector<32x4xbf16>
    %c3_i32_28 = arith.constant 3 : i32
    %31 = arith.muli %arg2, %c3_i32_28 : i32
    %c2_i32 = arith.constant 2 : i32
    %32 = arith.addi %31, %c2_i32 : i32
    %33 = arith.index_cast %32 : i32 to index
    %c0_29 = arith.constant 0 : index
    %c0_30 = arith.constant 0 : index
    %34 = vector.load %arg4[%33, %c0_29, %c0_30] : memref<9x4x128xbf16, #tpu.memory_space<vmem>>, vector<1x4x128xbf16>
    %35 = vector.shape_cast %34 : vector<1x4x128xbf16> to vector<4x128xbf16>
    %cst_31 = arith.constant dense<0.000000e+00> : vector<32x128xf32>
    %36 = tpu.matmul %30, %35, %cst_31 {dimension_numbers = #tpu.dot_dimension_numbers<[1], [0], [0], [1], [0, 0, 1, 1], [], []>} : vector<32x4xbf16>, vector<4x128xbf16>, vector<32x128xf32> -> vector<32x128xf32>
    %37 = arith.addf %25, %36 : vector<32x128xf32>
    %c0_32 = arith.constant 0 : index
    %c0_33 = arith.constant 0 : index
    %38 = vector.load %arg7[%c0_32, %c0_33] : memref<32x128xf32, #tpu.memory_space<vmem>>, vector<32x128xf32>
    %39 = arith.addf %38, %37 : vector<32x128xf32>
    %c0_34 = arith.constant 0 : index
    %c0_35 = arith.constant 0 : index
    %40 = vector.load %arg7[%c0_34, %c0_35] : memref<32x128xf32, #tpu.memory_space<vmem>>, vector<32x128xf32>
    tpu.vector_store %arg7[%c0_34, %c0_35], %39 {strides = array<i32>} : memref<32x128xf32, #tpu.memory_space<vmem>>, vector<32x128xf32>,
    %c2_i32_36 = arith.constant 2 : i32
    %41 = arith.cmpi eq, %arg2, %c2_i32_36 : i32
    %42 = arith.extui %41 : i1 to i32
    %c0_i32_37 = arith.constant 0 : i32
    %43 = arith.cmpi ne, %42, %c0_i32_37 : i32
    scf.if %43 {
      %c0_38 = arith.constant 0 : index
      %c0_39 = arith.constant 0 : index
      %44 = vector.load %arg7[%c0_38, %c0_39] : memref<32x128xf32, #tpu.memory_space<vmem>>, vector<32x128xf32>
      %c0_40 = arith.constant 0 : index
      %c0_41 = arith.constant 0 : index
      %45 = vector.load %arg5[%c0_40, %c0_41] : memref<1x128xf32, #tpu.memory_space<vmem>>, vector<1x128xf32>
      %46 = vector.broadcast %45 : vector<1x128xf32> to vector<32x128xf32>
      %47 = arith.addf %44, %46 : vector<32x128xf32>
      %cst_42 = arith.constant 0.000000e+00 : f32
      %48 = vector.broadcast %cst_42 : f32 to vector<32x128xf32>
      %49 = arith.maximumf %47, %48 : vector<32x128xf32>
      %50 = arith.truncf %49 : vector<32x128xf32> to vector<32x128xbf16>
      %51 = vector.extract_strided_slice %50 {offsets = [0, 0], sizes = [16, 128], strides = [1, 1]} : vector<32x128xbf16> to vector<16x128xbf16>
      %c0_43 = arith.constant 0 : index
      %c0_44 = arith.constant 0 : index
      %c0_45 = arith.constant 0 : index
      %c0_46 = arith.constant 0 : index
      %52 = vector.load %arg6[%c0_43, %c0_44, %c0_45, %c0_46] : memref<1x2x16x128xbf16, #tpu.memory_space<vmem>>, vector<1x1x16x128xbf16>
      %53 = vector.shape_cast %52 : vector<1x1x16x128xbf16> to vector<16x128xbf16>
      %54 = vector.shape_cast %51 : vector<16x128xbf16> to vector<1x1x16x128xbf16>
      tpu.vector_store %arg6[%c0_43, %c0_44, %c0_45, %c0_46], %54 {strides = array<i32>} : memref<1x2x16x128xbf16, #tpu.memory_space<vmem>>, vector<1x1x16x128xbf16>,
      %55 = vector.extract_strided_slice %50 {offsets = [16, 0], sizes = [16, 128], strides = [1, 1]} : vector<32x128xbf16> to vector<16x128xbf16>
      %c0_47 = arith.constant 0 : index
      %c1_48 = arith.constant 1 : index
      %c0_49 = arith.constant 0 : index
      %c0_50 = arith.constant 0 : index
      %56 = vector.load %arg6[%c0_47, %c1_48, %c0_49, %c0_50] : memref<1x2x16x128xbf16, #tpu.memory_space<vmem>>, vector<1x1x16x128xbf16>
      %57 = vector.shape_cast %56 : vector<1x1x16x128xbf16> to vector<16x128xbf16>
      %58 = vector.shape_cast %55 : vector<16x128xbf16> to vector<1x1x16x128xbf16>
      tpu.vector_store %arg6[%c0_47, %c1_48, %c0_49, %c0_50], %58 {strides = array<i32>} : memref<1x2x16x128xbf16, #tpu.memory_space<vmem>>, vector<1x1x16x128xbf16>,
    } else {
    }
    return
  }
  func.func @transform_0(%arg0: i32, %arg1: i32, %arg2: i32) -> (i32, i32, i32, i32) {
    %c9_i32 = arith.constant 9 : i32
    %0 = arith.muli %arg2, %c9_i32 : i32
    %1 = arith.addi %arg1, %0 : i32
    %c0_i32 = arith.constant 0 : i32
    %c0_i32_0 = arith.constant 0 : i32
    %c0_i32_1 = arith.constant 0 : i32
    return %arg0, %1, %c0_i32, %c0_i32_0 : i32, i32, i32, i32
  }
  func.func @transform_1(%arg0: i32, %arg1: i32, %arg2: i32) -> (i32, i32, i32) {
    %c0_i32 = arith.constant 0 : i32
    %c0_i32_0 = arith.constant 0 : i32
    %c0_i32_1 = arith.constant 0 : i32
    %c0_i32_2 = arith.constant 0 : i32
    return %c0_i32, %c0_i32_0, %c0_i32_1 : i32, i32, i32
  }
  func.func @transform_2(%arg0: i32, %arg1: i32, %arg2: i32) -> (i32, i32) {
    %c0_i32 = arith.constant 0 : i32
    %c0_i32_0 = arith.constant 0 : i32
    %c0_i32_1 = arith.constant 0 : i32
    return %c0_i32, %c0_i32_0 : i32, i32
  }
  func.func @transform_3(%arg0: i32, %arg1: i32, %arg2: i32) -> (i32, i32, i32, i32) {
    %c0_i32 = arith.constant 0 : i32
    %c0_i32_0 = arith.constant 0 : i32
    %c0_i32_1 = arith.constant 0 : i32
    return %arg0, %arg1, %c0_i32, %c0_i32_0 : i32, i32, i32, i32
  }
}

module attributes {stable_mosaic.version = 11 : i64} {
  func.func @_dilated3x3_kernel(%arg0: i32, %arg1: i32, %arg2: i32, %arg3: memref<1x4x40x4xbf16, #tpu.memory_space<vmem>>, %arg4: memref<9x4x128xbf16, #tpu.memory_space<vmem>>, %arg5: memref<1x128xf32, #tpu.memory_space<vmem>>, %arg6: memref<1x4x16x128xbf16, #tpu.memory_space<vmem>>, %arg7: memref<64x128xf32, #tpu.memory_space<vmem>>) attributes {dimension_semantics = [#tpu.dimension_semantics<parallel>, #tpu.dimension_semantics<parallel>, #tpu.dimension_semantics<arbitrary>], iteration_bounds = array<i64: 2, 4, 3>, scalar_prefetch = 0 : i64, scratch_operands = 1 : i64, tpu.core_type = #tpu.core_type<tc>, window_params = [{transform_indices = @transform_0, window_bounds = array<i64: 1, 4, 40, 4>}, {pipeline_mode = #tpu.pipeline_mode<synchronous>, transform_indices = @transform_1, window_bounds = array<i64: 9, 4, 128>}, {pipeline_mode = #tpu.pipeline_mode<synchronous>, transform_indices = @transform_2, window_bounds = array<i64: 1, 128>}, {transform_indices = @transform_3, window_bounds = array<i64: 1, 4, 16, 128>}]} {
    %c0_i32 = arith.constant 0 : i32
    %0 = arith.cmpi eq, %arg2, %c0_i32 : i32
    %1 = arith.extui %0 : i1 to i32
    %c0_i32_0 = arith.constant 0 : i32
    %2 = arith.cmpi ne, %1, %c0_i32_0 : i32
    scf.if %2 {
      %cst_60 = arith.constant 0.000000e+00 : f32
      %56 = vector.broadcast %cst_60 : f32 to vector<64x128xf32>
      %c0_61 = arith.constant 0 : index
      %c0_62 = arith.constant 0 : index
      %57 = vector.load %arg7[%c0_61, %c0_62] : memref<64x128xf32, #tpu.memory_space<vmem>>, vector<64x128xf32>
      tpu.vector_store %arg7[%c0_61, %c0_62], %56 {strides = array<i32>} : memref<64x128xf32, #tpu.memory_space<vmem>>, vector<64x128xf32>,
    } else {
    }
    %c0 = arith.constant 0 : index
    %c0_1 = arith.constant 0 : index
    %c0_2 = arith.constant 0 : index
    %c0_3 = arith.constant 0 : index
    %3 = vector.load %arg3[%c0, %c0_1, %c0_2, %c0_3] : memref<1x4x40x4xbf16, #tpu.memory_space<vmem>>, vector<1x1x16x4xbf16>
    %4 = vector.shape_cast %3 : vector<1x1x16x4xbf16> to vector<16x4xbf16>
    %c0_4 = arith.constant 0 : index
    %c1 = arith.constant 1 : index
    %c0_5 = arith.constant 0 : index
    %c0_6 = arith.constant 0 : index
    %5 = vector.load %arg3[%c0_4, %c1, %c0_5, %c0_6] : memref<1x4x40x4xbf16, #tpu.memory_space<vmem>>, vector<1x1x16x4xbf16>
    %6 = vector.shape_cast %5 : vector<1x1x16x4xbf16> to vector<16x4xbf16>
    %c0_7 = arith.constant 0 : index
    %c2 = arith.constant 2 : index
    %c0_8 = arith.constant 0 : index
    %c0_9 = arith.constant 0 : index
    %7 = vector.load %arg3[%c0_7, %c2, %c0_8, %c0_9] : memref<1x4x40x4xbf16, #tpu.memory_space<vmem>>, vector<1x1x16x4xbf16>
    %8 = vector.shape_cast %7 : vector<1x1x16x4xbf16> to vector<16x4xbf16>
    %c0_10 = arith.constant 0 : index
    %c3 = arith.constant 3 : index
    %c0_11 = arith.constant 0 : index
    %c0_12 = arith.constant 0 : index
    %9 = vector.load %arg3[%c0_10, %c3, %c0_11, %c0_12] : memref<1x4x40x4xbf16, #tpu.memory_space<vmem>>, vector<1x1x16x4xbf16>
    %10 = vector.shape_cast %9 : vector<1x1x16x4xbf16> to vector<16x4xbf16>
    %11 = tpu.concatenate %4, %6, %8, %10 in 0 : vector<16x4xbf16>, vector<16x4xbf16>, vector<16x4xbf16>, vector<16x4xbf16> -> vector<64x4xbf16>
    %c3_i32 = arith.constant 3 : i32
    %12 = arith.muli %arg2, %c3_i32 : i32
    %c0_i32_13 = arith.constant 0 : i32
    %13 = arith.addi %12, %c0_i32_13 : i32
    %14 = arith.index_cast %13 : i32 to index
    %c0_14 = arith.constant 0 : index
    %c0_15 = arith.constant 0 : index
    %15 = vector.load %arg4[%14, %c0_14, %c0_15] : memref<9x4x128xbf16, #tpu.memory_space<vmem>>, vector<1x4x128xbf16>
    %16 = vector.shape_cast %15 : vector<1x4x128xbf16> to vector<4x128xbf16>
    %cst = arith.constant dense<0.000000e+00> : vector<64x128xf32>
    %17 = tpu.matmul %11, %16, %cst {dimension_numbers = #tpu.dot_dimension_numbers<[1], [0], [0], [1], [0, 0, 1, 1], [], []>} : vector<64x4xbf16>, vector<4x128xbf16>, vector<64x128xf32> -> vector<64x128xf32>
    %c0_16 = arith.constant 0 : index
    %c0_17 = arith.constant 0 : index
    %c12 = arith.constant 12 : index
    %c0_18 = arith.constant 0 : index
    %18 = vector.load %arg3[%c0_16, %c0_17, %c12, %c0_18] : memref<1x4x40x4xbf16, #tpu.memory_space<vmem>>, vector<1x1x16x4xbf16>
    %19 = vector.shape_cast %18 : vector<1x1x16x4xbf16> to vector<16x4xbf16>
    %c0_19 = arith.constant 0 : index
    %c1_20 = arith.constant 1 : index
    %c12_21 = arith.constant 12 : index
    %c0_22 = arith.constant 0 : index
    %20 = vector.load %arg3[%c0_19, %c1_20, %c12_21, %c0_22] : memref<1x4x40x4xbf16, #tpu.memory_space<vmem>>, vector<1x1x16x4xbf16>
    %21 = vector.shape_cast %20 : vector<1x1x16x4xbf16> to vector<16x4xbf16>
    %c0_23 = arith.constant 0 : index
    %c2_24 = arith.constant 2 : index
    %c12_25 = arith.constant 12 : index
    %c0_26 = arith.constant 0 : index
    %22 = vector.load %arg3[%c0_23, %c2_24, %c12_25, %c0_26] : memref<1x4x40x4xbf16, #tpu.memory_space<vmem>>, vector<1x1x16x4xbf16>
    %23 = vector.shape_cast %22 : vector<1x1x16x4xbf16> to vector<16x4xbf16>
    %c0_27 = arith.constant 0 : index
    %c3_28 = arith.constant 3 : index
    %c12_29 = arith.constant 12 : index
    %c0_30 = arith.constant 0 : index
    %24 = vector.load %arg3[%c0_27, %c3_28, %c12_29, %c0_30] : memref<1x4x40x4xbf16, #tpu.memory_space<vmem>>, vector<1x1x16x4xbf16>
    %25 = vector.shape_cast %24 : vector<1x1x16x4xbf16> to vector<16x4xbf16>
    %26 = tpu.concatenate %19, %21, %23, %25 in 0 : vector<16x4xbf16>, vector<16x4xbf16>, vector<16x4xbf16>, vector<16x4xbf16> -> vector<64x4xbf16>
    %c3_i32_31 = arith.constant 3 : i32
    %27 = arith.muli %arg2, %c3_i32_31 : i32
    %c1_i32 = arith.constant 1 : i32
    %28 = arith.addi %27, %c1_i32 : i32
    %29 = arith.index_cast %28 : i32 to index
    %c0_32 = arith.constant 0 : index
    %c0_33 = arith.constant 0 : index
    %30 = vector.load %arg4[%29, %c0_32, %c0_33] : memref<9x4x128xbf16, #tpu.memory_space<vmem>>, vector<1x4x128xbf16>
    %31 = vector.shape_cast %30 : vector<1x4x128xbf16> to vector<4x128xbf16>
    %cst_34 = arith.constant dense<0.000000e+00> : vector<64x128xf32>
    %32 = tpu.matmul %26, %31, %cst_34 {dimension_numbers = #tpu.dot_dimension_numbers<[1], [0], [0], [1], [0, 0, 1, 1], [], []>} : vector<64x4xbf16>, vector<4x128xbf16>, vector<64x128xf32> -> vector<64x128xf32>
    %33 = arith.addf %17, %32 : vector<64x128xf32>
    %c0_35 = arith.constant 0 : index
    %c0_36 = arith.constant 0 : index
    %c24 = arith.constant 24 : index
    %c0_37 = arith.constant 0 : index
    %34 = vector.load %arg3[%c0_35, %c0_36, %c24, %c0_37] : memref<1x4x40x4xbf16, #tpu.memory_space<vmem>>, vector<1x1x16x4xbf16>
    %35 = vector.shape_cast %34 : vector<1x1x16x4xbf16> to vector<16x4xbf16>
    %c0_38 = arith.constant 0 : index
    %c1_39 = arith.constant 1 : index
    %c24_40 = arith.constant 24 : index
    %c0_41 = arith.constant 0 : index
    %36 = vector.load %arg3[%c0_38, %c1_39, %c24_40, %c0_41] : memref<1x4x40x4xbf16, #tpu.memory_space<vmem>>, vector<1x1x16x4xbf16>
    %37 = vector.shape_cast %36 : vector<1x1x16x4xbf16> to vector<16x4xbf16>
    %c0_42 = arith.constant 0 : index
    %c2_43 = arith.constant 2 : index
    %c24_44 = arith.constant 24 : index
    %c0_45 = arith.constant 0 : index
    %38 = vector.load %arg3[%c0_42, %c2_43, %c24_44, %c0_45] : memref<1x4x40x4xbf16, #tpu.memory_space<vmem>>, vector<1x1x16x4xbf16>
    %39 = vector.shape_cast %38 : vector<1x1x16x4xbf16> to vector<16x4xbf16>
    %c0_46 = arith.constant 0 : index
    %c3_47 = arith.constant 3 : index
    %c24_48 = arith.constant 24 : index
    %c0_49 = arith.constant 0 : index
    %40 = vector.load %arg3[%c0_46, %c3_47, %c24_48, %c0_49] : memref<1x4x40x4xbf16, #tpu.memory_space<vmem>>, vector<1x1x16x4xbf16>
    %41 = vector.shape_cast %40 : vector<1x1x16x4xbf16> to vector<16x4xbf16>
    %42 = tpu.concatenate %35, %37, %39, %41 in 0 : vector<16x4xbf16>, vector<16x4xbf16>, vector<16x4xbf16>, vector<16x4xbf16> -> vector<64x4xbf16>
    %c3_i32_50 = arith.constant 3 : i32
    %43 = arith.muli %arg2, %c3_i32_50 : i32
    %c2_i32 = arith.constant 2 : i32
    %44 = arith.addi %43, %c2_i32 : i32
    %45 = arith.index_cast %44 : i32 to index
    %c0_51 = arith.constant 0 : index
    %c0_52 = arith.constant 0 : index
    %46 = vector.load %arg4[%45, %c0_51, %c0_52] : memref<9x4x128xbf16, #tpu.memory_space<vmem>>, vector<1x4x128xbf16>
    %47 = vector.shape_cast %46 : vector<1x4x128xbf16> to vector<4x128xbf16>
    %cst_53 = arith.constant dense<0.000000e+00> : vector<64x128xf32>
    %48 = tpu.matmul %42, %47, %cst_53 {dimension_numbers = #tpu.dot_dimension_numbers<[1], [0], [0], [1], [0, 0, 1, 1], [], []>} : vector<64x4xbf16>, vector<4x128xbf16>, vector<64x128xf32> -> vector<64x128xf32>
    %49 = arith.addf %33, %48 : vector<64x128xf32>
    %c0_54 = arith.constant 0 : index
    %c0_55 = arith.constant 0 : index
    %50 = vector.load %arg7[%c0_54, %c0_55] : memref<64x128xf32, #tpu.memory_space<vmem>>, vector<64x128xf32>
    %51 = arith.addf %50, %49 : vector<64x128xf32>
    %c0_56 = arith.constant 0 : index
    %c0_57 = arith.constant 0 : index
    %52 = vector.load %arg7[%c0_56, %c0_57] : memref<64x128xf32, #tpu.memory_space<vmem>>, vector<64x128xf32>
    tpu.vector_store %arg7[%c0_56, %c0_57], %51 {strides = array<i32>} : memref<64x128xf32, #tpu.memory_space<vmem>>, vector<64x128xf32>,
    %c2_i32_58 = arith.constant 2 : i32
    %53 = arith.cmpi eq, %arg2, %c2_i32_58 : i32
    %54 = arith.extui %53 : i1 to i32
    %c0_i32_59 = arith.constant 0 : i32
    %55 = arith.cmpi ne, %54, %c0_i32_59 : i32
    scf.if %55 {
      %c0_60 = arith.constant 0 : index
      %c0_61 = arith.constant 0 : index
      %56 = vector.load %arg7[%c0_60, %c0_61] : memref<64x128xf32, #tpu.memory_space<vmem>>, vector<64x128xf32>
      %c0_62 = arith.constant 0 : index
      %c0_63 = arith.constant 0 : index
      %57 = vector.load %arg5[%c0_62, %c0_63] : memref<1x128xf32, #tpu.memory_space<vmem>>, vector<1x128xf32>
      %58 = vector.broadcast %57 : vector<1x128xf32> to vector<64x128xf32>
      %59 = arith.addf %56, %58 : vector<64x128xf32>
      %cst_64 = arith.constant 0.000000e+00 : f32
      %60 = vector.broadcast %cst_64 : f32 to vector<64x128xf32>
      %61 = arith.maximumf %59, %60 : vector<64x128xf32>
      %62 = arith.truncf %61 : vector<64x128xf32> to vector<64x128xbf16>
      %63 = vector.extract_strided_slice %62 {offsets = [0, 0], sizes = [16, 128], strides = [1, 1]} : vector<64x128xbf16> to vector<16x128xbf16>
      %c0_65 = arith.constant 0 : index
      %c0_66 = arith.constant 0 : index
      %c0_67 = arith.constant 0 : index
      %c0_68 = arith.constant 0 : index
      %64 = vector.load %arg6[%c0_65, %c0_66, %c0_67, %c0_68] : memref<1x4x16x128xbf16, #tpu.memory_space<vmem>>, vector<1x1x16x128xbf16>
      %65 = vector.shape_cast %64 : vector<1x1x16x128xbf16> to vector<16x128xbf16>
      %66 = vector.shape_cast %63 : vector<16x128xbf16> to vector<1x1x16x128xbf16>
      tpu.vector_store %arg6[%c0_65, %c0_66, %c0_67, %c0_68], %66 {strides = array<i32>} : memref<1x4x16x128xbf16, #tpu.memory_space<vmem>>, vector<1x1x16x128xbf16>,
      %67 = vector.extract_strided_slice %62 {offsets = [16, 0], sizes = [16, 128], strides = [1, 1]} : vector<64x128xbf16> to vector<16x128xbf16>
      %c0_69 = arith.constant 0 : index
      %c1_70 = arith.constant 1 : index
      %c0_71 = arith.constant 0 : index
      %c0_72 = arith.constant 0 : index
      %68 = vector.load %arg6[%c0_69, %c1_70, %c0_71, %c0_72] : memref<1x4x16x128xbf16, #tpu.memory_space<vmem>>, vector<1x1x16x128xbf16>
      %69 = vector.shape_cast %68 : vector<1x1x16x128xbf16> to vector<16x128xbf16>
      %70 = vector.shape_cast %67 : vector<16x128xbf16> to vector<1x1x16x128xbf16>
      tpu.vector_store %arg6[%c0_69, %c1_70, %c0_71, %c0_72], %70 {strides = array<i32>} : memref<1x4x16x128xbf16, #tpu.memory_space<vmem>>, vector<1x1x16x128xbf16>,
      %71 = vector.extract_strided_slice %62 {offsets = [32, 0], sizes = [16, 128], strides = [1, 1]} : vector<64x128xbf16> to vector<16x128xbf16>
      %c0_73 = arith.constant 0 : index
      %c2_74 = arith.constant 2 : index
      %c0_75 = arith.constant 0 : index
      %c0_76 = arith.constant 0 : index
      %72 = vector.load %arg6[%c0_73, %c2_74, %c0_75, %c0_76] : memref<1x4x16x128xbf16, #tpu.memory_space<vmem>>, vector<1x1x16x128xbf16>
      %73 = vector.shape_cast %72 : vector<1x1x16x128xbf16> to vector<16x128xbf16>
      %74 = vector.shape_cast %71 : vector<16x128xbf16> to vector<1x1x16x128xbf16>
      tpu.vector_store %arg6[%c0_73, %c2_74, %c0_75, %c0_76], %74 {strides = array<i32>} : memref<1x4x16x128xbf16, #tpu.memory_space<vmem>>, vector<1x1x16x128xbf16>,
      %75 = vector.extract_strided_slice %62 {offsets = [48, 0], sizes = [16, 128], strides = [1, 1]} : vector<64x128xbf16> to vector<16x128xbf16>
      %c0_77 = arith.constant 0 : index
      %c3_78 = arith.constant 3 : index
      %c0_79 = arith.constant 0 : index
      %c0_80 = arith.constant 0 : index
      %76 = vector.load %arg6[%c0_77, %c3_78, %c0_79, %c0_80] : memref<1x4x16x128xbf16, #tpu.memory_space<vmem>>, vector<1x1x16x128xbf16>
      %77 = vector.shape_cast %76 : vector<1x1x16x128xbf16> to vector<16x128xbf16>
      %78 = vector.shape_cast %75 : vector<16x128xbf16> to vector<1x1x16x128xbf16>
      tpu.vector_store %arg6[%c0_77, %c3_78, %c0_79, %c0_80], %78 {strides = array<i32>} : memref<1x4x16x128xbf16, #tpu.memory_space<vmem>>, vector<1x1x16x128xbf16>,
    } else {
    }
    return
  }
  func.func @transform_0(%arg0: i32, %arg1: i32, %arg2: i32) -> (i32, i32, i32, i32) {
    %c3_i32 = arith.constant 3 : i32
    %0 = arith.muli %arg2, %c3_i32 : i32
    %1 = arith.addi %arg1, %0 : i32
    %c0_i32 = arith.constant 0 : i32
    %c0_i32_0 = arith.constant 0 : i32
    %c0_i32_1 = arith.constant 0 : i32
    return %arg0, %1, %c0_i32, %c0_i32_0 : i32, i32, i32, i32
  }
  func.func @transform_1(%arg0: i32, %arg1: i32, %arg2: i32) -> (i32, i32, i32) {
    %c0_i32 = arith.constant 0 : i32
    %c0_i32_0 = arith.constant 0 : i32
    %c0_i32_1 = arith.constant 0 : i32
    %c0_i32_2 = arith.constant 0 : i32
    return %c0_i32, %c0_i32_0, %c0_i32_1 : i32, i32, i32
  }
  func.func @transform_2(%arg0: i32, %arg1: i32, %arg2: i32) -> (i32, i32) {
    %c0_i32 = arith.constant 0 : i32
    %c0_i32_0 = arith.constant 0 : i32
    %c0_i32_1 = arith.constant 0 : i32
    return %c0_i32, %c0_i32_0 : i32, i32
  }
  func.func @transform_3(%arg0: i32, %arg1: i32, %arg2: i32) -> (i32, i32, i32, i32) {
    %c0_i32 = arith.constant 0 : i32
    %c0_i32_0 = arith.constant 0 : i32
    %c0_i32_1 = arith.constant 0 : i32
    return %arg0, %arg1, %c0_i32, %c0_i32_0 : i32, i32, i32, i32
  }
}

module attributes {stable_mosaic.version = 11 : i64} {
  func.func @_dilated3x3_kernel(%arg0: i32, %arg1: i32, %arg2: i32, %arg3: memref<1x2x28x4xbf16, #tpu.memory_space<vmem>>, %arg4: memref<9x4x128xbf16, #tpu.memory_space<vmem>>, %arg5: memref<1x128xf32, #tpu.memory_space<vmem>>, %arg6: memref<1x2x16x128xbf16, #tpu.memory_space<vmem>>, %arg7: memref<32x128xf32, #tpu.memory_space<vmem>>) attributes {dimension_semantics = [#tpu.dimension_semantics<parallel>, #tpu.dimension_semantics<parallel>, #tpu.dimension_semantics<arbitrary>], iteration_bounds = array<i64: 2, 8, 3>, scalar_prefetch = 0 : i64, scratch_operands = 1 : i64, tpu.core_type = #tpu.core_type<tc>, window_params = [{transform_indices = @transform_0, window_bounds = array<i64: 1, 2, 28, 4>}, {pipeline_mode = #tpu.pipeline_mode<synchronous>, transform_indices = @transform_1, window_bounds = array<i64: 9, 4, 128>}, {pipeline_mode = #tpu.pipeline_mode<synchronous>, transform_indices = @transform_2, window_bounds = array<i64: 1, 128>}, {transform_indices = @transform_3, window_bounds = array<i64: 1, 2, 16, 128>}]} {
    %c0_i32 = arith.constant 0 : i32
    %0 = arith.cmpi eq, %arg2, %c0_i32 : i32
    %1 = arith.extui %0 : i1 to i32
    %c0_i32_0 = arith.constant 0 : i32
    %2 = arith.cmpi ne, %1, %c0_i32_0 : i32
    scf.if %2 {
      %cst_38 = arith.constant 0.000000e+00 : f32
      %44 = vector.broadcast %cst_38 : f32 to vector<32x128xf32>
      %c0_39 = arith.constant 0 : index
      %c0_40 = arith.constant 0 : index
      %45 = vector.load %arg7[%c0_39, %c0_40] : memref<32x128xf32, #tpu.memory_space<vmem>>, vector<32x128xf32>
      tpu.vector_store %arg7[%c0_39, %c0_40], %44 {strides = array<i32>} : memref<32x128xf32, #tpu.memory_space<vmem>>, vector<32x128xf32>,
    } else {
    }
    %c0 = arith.constant 0 : index
    %c0_1 = arith.constant 0 : index
    %c0_2 = arith.constant 0 : index
    %c0_3 = arith.constant 0 : index
    %3 = vector.load %arg3[%c0, %c0_1, %c0_2, %c0_3] : memref<1x2x28x4xbf16, #tpu.memory_space<vmem>>, vector<1x1x16x4xbf16>
    %4 = vector.shape_cast %3 : vector<1x1x16x4xbf16> to vector<16x4xbf16>
    %c0_4 = arith.constant 0 : index
    %c1 = arith.constant 1 : index
    %c0_5 = arith.constant 0 : index
    %c0_6 = arith.constant 0 : index
    %5 = vector.load %arg3[%c0_4, %c1, %c0_5, %c0_6] : memref<1x2x28x4xbf16, #tpu.memory_space<vmem>>, vector<1x1x16x4xbf16>
    %6 = vector.shape_cast %5 : vector<1x1x16x4xbf16> to vector<16x4xbf16>
    %7 = tpu.concatenate %4, %6 in 0 : vector<16x4xbf16>, vector<16x4xbf16> -> vector<32x4xbf16>
    %c3_i32 = arith.constant 3 : i32
    %8 = arith.muli %arg2, %c3_i32 : i32
    %c0_i32_7 = arith.constant 0 : i32
    %9 = arith.addi %8, %c0_i32_7 : i32
    %10 = arith.index_cast %9 : i32 to index
    %c0_8 = arith.constant 0 : index
    %c0_9 = arith.constant 0 : index
    %11 = vector.load %arg4[%10, %c0_8, %c0_9] : memref<9x4x128xbf16, #tpu.memory_space<vmem>>, vector<1x4x128xbf16>
    %12 = vector.shape_cast %11 : vector<1x4x128xbf16> to vector<4x128xbf16>
    %cst = arith.constant dense<0.000000e+00> : vector<32x128xf32>
    %13 = tpu.matmul %7, %12, %cst {dimension_numbers = #tpu.dot_dimension_numbers<[1], [0], [0], [1], [0, 0, 1, 1], [], []>} : vector<32x4xbf16>, vector<4x128xbf16>, vector<32x128xf32> -> vector<32x128xf32>
    %c0_10 = arith.constant 0 : index
    %c0_11 = arith.constant 0 : index
    %c6 = arith.constant 6 : index
    %c0_12 = arith.constant 0 : index
    %14 = vector.load %arg3[%c0_10, %c0_11, %c6, %c0_12] : memref<1x2x28x4xbf16, #tpu.memory_space<vmem>>, vector<1x1x16x4xbf16>
    %15 = vector.shape_cast %14 : vector<1x1x16x4xbf16> to vector<16x4xbf16>
    %c0_13 = arith.constant 0 : index
    %c1_14 = arith.constant 1 : index
    %c6_15 = arith.constant 6 : index
    %c0_16 = arith.constant 0 : index
    %16 = vector.load %arg3[%c0_13, %c1_14, %c6_15, %c0_16] : memref<1x2x28x4xbf16, #tpu.memory_space<vmem>>, vector<1x1x16x4xbf16>
    %17 = vector.shape_cast %16 : vector<1x1x16x4xbf16> to vector<16x4xbf16>
    %18 = tpu.concatenate %15, %17 in 0 : vector<16x4xbf16>, vector<16x4xbf16> -> vector<32x4xbf16>
    %c3_i32_17 = arith.constant 3 : i32
    %19 = arith.muli %arg2, %c3_i32_17 : i32
    %c1_i32 = arith.constant 1 : i32
    %20 = arith.addi %19, %c1_i32 : i32
    %21 = arith.index_cast %20 : i32 to index
    %c0_18 = arith.constant 0 : index
    %c0_19 = arith.constant 0 : index
    %22 = vector.load %arg4[%21, %c0_18, %c0_19] : memref<9x4x128xbf16, #tpu.memory_space<vmem>>, vector<1x4x128xbf16>
    %23 = vector.shape_cast %22 : vector<1x4x128xbf16> to vector<4x128xbf16>
    %cst_20 = arith.constant dense<0.000000e+00> : vector<32x128xf32>
    %24 = tpu.matmul %18, %23, %cst_20 {dimension_numbers = #tpu.dot_dimension_numbers<[1], [0], [0], [1], [0, 0, 1, 1], [], []>} : vector<32x4xbf16>, vector<4x128xbf16>, vector<32x128xf32> -> vector<32x128xf32>
    %25 = arith.addf %13, %24 : vector<32x128xf32>
    %c0_21 = arith.constant 0 : index
    %c0_22 = arith.constant 0 : index
    %c12 = arith.constant 12 : index
    %c0_23 = arith.constant 0 : index
    %26 = vector.load %arg3[%c0_21, %c0_22, %c12, %c0_23] : memref<1x2x28x4xbf16, #tpu.memory_space<vmem>>, vector<1x1x16x4xbf16>
    %27 = vector.shape_cast %26 : vector<1x1x16x4xbf16> to vector<16x4xbf16>
    %c0_24 = arith.constant 0 : index
    %c1_25 = arith.constant 1 : index
    %c12_26 = arith.constant 12 : index
    %c0_27 = arith.constant 0 : index
    %28 = vector.load %arg3[%c0_24, %c1_25, %c12_26, %c0_27] : memref<1x2x28x4xbf16, #tpu.memory_space<vmem>>, vector<1x1x16x4xbf16>
    %29 = vector.shape_cast %28 : vector<1x1x16x4xbf16> to vector<16x4xbf16>
    %30 = tpu.concatenate %27, %29 in 0 : vector<16x4xbf16>, vector<16x4xbf16> -> vector<32x4xbf16>
    %c3_i32_28 = arith.constant 3 : i32
    %31 = arith.muli %arg2, %c3_i32_28 : i32
    %c2_i32 = arith.constant 2 : i32
    %32 = arith.addi %31, %c2_i32 : i32
    %33 = arith.index_cast %32 : i32 to index
    %c0_29 = arith.constant 0 : index
    %c0_30 = arith.constant 0 : index
    %34 = vector.load %arg4[%33, %c0_29, %c0_30] : memref<9x4x128xbf16, #tpu.memory_space<vmem>>, vector<1x4x128xbf16>
    %35 = vector.shape_cast %34 : vector<1x4x128xbf16> to vector<4x128xbf16>
    %cst_31 = arith.constant dense<0.000000e+00> : vector<32x128xf32>
    %36 = tpu.matmul %30, %35, %cst_31 {dimension_numbers = #tpu.dot_dimension_numbers<[1], [0], [0], [1], [0, 0, 1, 1], [], []>} : vector<32x4xbf16>, vector<4x128xbf16>, vector<32x128xf32> -> vector<32x128xf32>
    %37 = arith.addf %25, %36 : vector<32x128xf32>
    %c0_32 = arith.constant 0 : index
    %c0_33 = arith.constant 0 : index
    %38 = vector.load %arg7[%c0_32, %c0_33] : memref<32x128xf32, #tpu.memory_space<vmem>>, vector<32x128xf32>
    %39 = arith.addf %38, %37 : vector<32x128xf32>
    %c0_34 = arith.constant 0 : index
    %c0_35 = arith.constant 0 : index
    %40 = vector.load %arg7[%c0_34, %c0_35] : memref<32x128xf32, #tpu.memory_space<vmem>>, vector<32x128xf32>
    tpu.vector_store %arg7[%c0_34, %c0_35], %39 {strides = array<i32>} : memref<32x128xf32, #tpu.memory_space<vmem>>, vector<32x128xf32>,
    %c2_i32_36 = arith.constant 2 : i32
    %41 = arith.cmpi eq, %arg2, %c2_i32_36 : i32
    %42 = arith.extui %41 : i1 to i32
    %c0_i32_37 = arith.constant 0 : i32
    %43 = arith.cmpi ne, %42, %c0_i32_37 : i32
    scf.if %43 {
      %c0_38 = arith.constant 0 : index
      %c0_39 = arith.constant 0 : index
      %44 = vector.load %arg7[%c0_38, %c0_39] : memref<32x128xf32, #tpu.memory_space<vmem>>, vector<32x128xf32>
      %c0_40 = arith.constant 0 : index
      %c0_41 = arith.constant 0 : index
      %45 = vector.load %arg5[%c0_40, %c0_41] : memref<1x128xf32, #tpu.memory_space<vmem>>, vector<1x128xf32>
      %46 = vector.broadcast %45 : vector<1x128xf32> to vector<32x128xf32>
      %47 = arith.addf %44, %46 : vector<32x128xf32>
      %cst_42 = arith.constant 0.000000e+00 : f32
      %48 = vector.broadcast %cst_42 : f32 to vector<32x128xf32>
      %49 = arith.maximumf %47, %48 : vector<32x128xf32>
      %50 = arith.truncf %49 : vector<32x128xf32> to vector<32x128xbf16>
      %51 = vector.extract_strided_slice %50 {offsets = [0, 0], sizes = [16, 128], strides = [1, 1]} : vector<32x128xbf16> to vector<16x128xbf16>
      %c0_43 = arith.constant 0 : index
      %c0_44 = arith.constant 0 : index
      %c0_45 = arith.constant 0 : index
      %c0_46 = arith.constant 0 : index
      %52 = vector.load %arg6[%c0_43, %c0_44, %c0_45, %c0_46] : memref<1x2x16x128xbf16, #tpu.memory_space<vmem>>, vector<1x1x16x128xbf16>
      %53 = vector.shape_cast %52 : vector<1x1x16x128xbf16> to vector<16x128xbf16>
      %54 = vector.shape_cast %51 : vector<16x128xbf16> to vector<1x1x16x128xbf16>
      tpu.vector_store %arg6[%c0_43, %c0_44, %c0_45, %c0_46], %54 {strides = array<i32>} : memref<1x2x16x128xbf16, #tpu.memory_space<vmem>>, vector<1x1x16x128xbf16>,
      %55 = vector.extract_strided_slice %50 {offsets = [16, 0], sizes = [16, 128], strides = [1, 1]} : vector<32x128xbf16> to vector<16x128xbf16>
      %c0_47 = arith.constant 0 : index
      %c1_48 = arith.constant 1 : index
      %c0_49 = arith.constant 0 : index
      %c0_50 = arith.constant 0 : index
      %56 = vector.load %arg6[%c0_47, %c1_48, %c0_49, %c0_50] : memref<1x2x16x128xbf16, #tpu.memory_space<vmem>>, vector<1x1x16x128xbf16>
      %57 = vector.shape_cast %56 : vector<1x1x16x128xbf16> to vector<16x128xbf16>
      %58 = vector.shape_cast %55 : vector<16x128xbf16> to vector<1x1x16x128xbf16>
      tpu.vector_store %arg6[%c0_47, %c1_48, %c0_49, %c0_50], %58 {strides = array<i32>} : memref<1x2x16x128xbf16, #tpu.memory_space<vmem>>, vector<1x1x16x128xbf16>,
    } else {
    }
    return
  }
  func.func @transform_0(%arg0: i32, %arg1: i32, %arg2: i32) -> (i32, i32, i32, i32) {
    %c3_i32 = arith.constant 3 : i32
    %0 = arith.muli %arg2, %c3_i32 : i32
    %1 = arith.addi %arg1, %0 : i32
    %c0_i32 = arith.constant 0 : i32
    %c0_i32_0 = arith.constant 0 : i32
    %c0_i32_1 = arith.constant 0 : i32
    return %arg0, %1, %c0_i32, %c0_i32_0 : i32, i32, i32, i32
  }
  func.func @transform_1(%arg0: i32, %arg1: i32, %arg2: i32) -> (i32, i32, i32) {
    %c0_i32 = arith.constant 0 : i32
    %c0_i32_0 = arith.constant 0 : i32
    %c0_i32_1 = arith.constant 0 : i32
    %c0_i32_2 = arith.constant 0 : i32
    return %c0_i32, %c0_i32_0, %c0_i32_1 : i32, i32, i32
  }
  func.func @transform_2(%arg0: i32, %arg1: i32, %arg2: i32) -> (i32, i32) {
    %c0_i32 = arith.constant 0 : i32
    %c0_i32_0 = arith.constant 0 : i32
    %c0_i32_1 = arith.constant 0 : i32
    return %c0_i32, %c0_i32_0 : i32, i32
  }
  func.func @transform_3(%arg0: i32, %arg1: i32, %arg2: i32) -> (i32, i32, i32, i32) {
    %c0_i32 = arith.constant 0 : i32
    %c0_i32_0 = arith.constant 0 : i32
    %c0_i32_1 = arith.constant 0 : i32
    return %arg0, %arg1, %c0_i32, %c0_i32_0 : i32, i32, i32, i32
  }
}

module attributes {stable_mosaic.version = 11 : i64} {
  func.func @_global_pool_kernel(%arg0: i32, %arg1: i32, %arg2: memref<1x256x4xbf16, #tpu.memory_space<vmem>>, %arg3: memref<1x1x4xf32, #tpu.memory_space<vmem>>, %arg4: memref<1x4xf32, #tpu.memory_space<vmem>>) attributes {dimension_semantics = [#tpu.dimension_semantics<parallel>, #tpu.dimension_semantics<arbitrary>], iteration_bounds = array<i64: 2, 1>, scalar_prefetch = 0 : i64, scratch_operands = 1 : i64, tpu.core_type = #tpu.core_type<tc>, window_params = [{transform_indices = @transform_0, window_bounds = array<i64: 1, 256, 4>}, {transform_indices = @transform_1, window_bounds = array<i64: 1, 1, 4>}]} {
    %c0_i32 = arith.constant 0 : i32
    %0 = arith.cmpi eq, %arg1, %c0_i32 : i32
    %1 = arith.extui %0 : i1 to i32
    %c0_i32_0 = arith.constant 0 : i32
    %2 = arith.cmpi ne, %1, %c0_i32_0 : i32
    scf.if %2 {
      %cst_9 = arith.constant 0.000000e+00 : f32
      %14 = vector.broadcast %cst_9 : f32 to vector<1x4xf32>
      %c0_10 = arith.constant 0 : index
      %c0_11 = arith.constant 0 : index
      %15 = vector.load %arg4[%c0_10, %c0_11] : memref<1x4xf32, #tpu.memory_space<vmem>>, vector<1x4xf32>
      tpu.vector_store %arg4[%c0_10, %c0_11], %14 {strides = array<i32>} : memref<1x4xf32, #tpu.memory_space<vmem>>, vector<1x4xf32>,
    } else {
    }
    %c0 = arith.constant 0 : index
    %c0_1 = arith.constant 0 : index
    %c0_2 = arith.constant 0 : index
    %3 = vector.load %arg2[%c0, %c0_1, %c0_2] : memref<1x256x4xbf16, #tpu.memory_space<vmem>>, vector<1x256x4xbf16>
    %4 = vector.shape_cast %3 : vector<1x256x4xbf16> to vector<256x4xbf16>
    %5 = arith.extf %4 : vector<256x4xbf16> to vector<256x4xf32>
    %c0_3 = arith.constant 0 : index
    %c0_4 = arith.constant 0 : index
    %6 = vector.load %arg4[%c0_3, %c0_4] : memref<1x4xf32, #tpu.memory_space<vmem>>, vector<1x4xf32>
    %cst = arith.constant dense<0.000000e+00> : vector<4xf32>
    %7 = vector.multi_reduction <add>, %5, %cst [0] : vector<256x4xf32> to vector<4xf32>
    %8 = vector.shape_cast %7 : vector<4xf32> to vector<1x4xf32>
    %9 = arith.addf %6, %8 : vector<1x4xf32>
    %c0_5 = arith.constant 0 : index
    %c0_6 = arith.constant 0 : index
    %10 = vector.load %arg4[%c0_5, %c0_6] : memref<1x4xf32, #tpu.memory_space<vmem>>, vector<1x4xf32>
    tpu.vector_store %arg4[%c0_5, %c0_6], %9 {strides = array<i32>} : memref<1x4xf32, #tpu.memory_space<vmem>>, vector<1x4xf32>,
    %c0_i32_7 = arith.constant 0 : i32
    %11 = arith.cmpi eq, %arg1, %c0_i32_7 : i32
    %12 = arith.extui %11 : i1 to i32
    %c0_i32_8 = arith.constant 0 : i32
    %13 = arith.cmpi ne, %12, %c0_i32_8 : i32
    scf.if %13 {
      %c0_9 = arith.constant 0 : index
      %c0_10 = arith.constant 0 : index
      %14 = vector.load %arg4[%c0_9, %c0_10] : memref<1x4xf32, #tpu.memory_space<vmem>>, vector<1x4xf32>
      %cst_11 = arith.constant 3.906250e-03 : f32
      %15 = vector.broadcast %cst_11 : f32 to vector<1x4xf32>
      %16 = arith.mulf %14, %15 : vector<1x4xf32>
      %c0_12 = arith.constant 0 : index
      %c0_13 = arith.constant 0 : index
      %c0_14 = arith.constant 0 : index
      %17 = vector.load %arg3[%c0_12, %c0_13, %c0_14] : memref<1x1x4xf32, #tpu.memory_space<vmem>>, vector<1x1x4xf32>
      %18 = vector.shape_cast %17 : vector<1x1x4xf32> to vector<1x4xf32>
      %19 = vector.shape_cast %16 : vector<1x4xf32> to vector<1x1x4xf32>
      tpu.vector_store %arg3[%c0_12, %c0_13, %c0_14], %19 {strides = array<i32>} : memref<1x1x4xf32, #tpu.memory_space<vmem>>, vector<1x1x4xf32>,
    } else {
    }
    return
  }
  func.func @transform_0(%arg0: i32, %arg1: i32) -> (i32, i32, i32) {
    %c0_i32 = arith.constant 0 : i32
    %c0_i32_0 = arith.constant 0 : i32
    return %arg0, %arg1, %c0_i32 : i32, i32, i32
  }
  func.func @transform_1(%arg0: i32, %arg1: i32) -> (i32, i32, i32) {
    %c0_i32 = arith.constant 0 : i32
    %c0_i32_0 = arith.constant 0 : i32
    %c0_i32_1 = arith.constant 0 : i32
    return %arg0, %c0_i32, %c0_i32_0 : i32, i32, i32
  }
}

module attributes {stable_mosaic.version = 11 : i64} {
  func.func @_final_fused_kernel(%arg0: i32, %arg1: i32, %arg2: memref<1x256x4xbf16, #tpu.memory_space<vmem>>, %arg3: memref<1x256x128xbf16, #tpu.memory_space<vmem>>, %arg4: memref<1x256x128xbf16, #tpu.memory_space<vmem>>, %arg5: memref<1x256x128xbf16, #tpu.memory_space<vmem>>, %arg6: memref<4x128xbf16, #tpu.memory_space<vmem>>, %arg7: memref<1x128xf32, #tpu.memory_space<vmem>>, %arg8: memref<4x128x128xbf16, #tpu.memory_space<vmem>>, %arg9: memref<1x1x128xf32, #tpu.memory_space<vmem>>, %arg10: memref<1x256x128xbf16, #tpu.memory_space<vmem>>) attributes {dimension_semantics = [#tpu.dimension_semantics<parallel>, #tpu.dimension_semantics<parallel>], iteration_bounds = array<i64: 2, 1>, scalar_prefetch = 0 : i64, scratch_operands = 0 : i64, tpu.core_type = #tpu.core_type<tc>, window_params = [{transform_indices = @transform_0, window_bounds = array<i64: 1, 256, 4>}, {transform_indices = @transform_1, window_bounds = array<i64: 1, 256, 128>}, {transform_indices = @transform_2, window_bounds = array<i64: 1, 256, 128>}, {transform_indices = @transform_3, window_bounds = array<i64: 1, 256, 128>}, {pipeline_mode = #tpu.pipeline_mode<synchronous>, transform_indices = @transform_4, window_bounds = array<i64: 4, 128>}, {pipeline_mode = #tpu.pipeline_mode<synchronous>, transform_indices = @transform_5, window_bounds = array<i64: 1, 128>}, {pipeline_mode = #tpu.pipeline_mode<synchronous>, transform_indices = @transform_6, window_bounds = array<i64: 4, 128, 128>}, {transform_indices = @transform_7, window_bounds = array<i64: 1, 1, 128>}, {transform_indices = @transform_8, window_bounds = array<i64: 1, 256, 128>}]} {
    %c0 = arith.constant 0 : index
    %c0_0 = arith.constant 0 : index
    %c0_1 = arith.constant 0 : index
    %0 = vector.load %arg2[%c0, %c0_0, %c0_1] : memref<1x256x4xbf16, #tpu.memory_space<vmem>>, vector<1x256x4xbf16>
    %1 = vector.shape_cast %0 : vector<1x256x4xbf16> to vector<256x4xbf16>
    %c0_2 = arith.constant 0 : index
    %c0_3 = arith.constant 0 : index
    %2 = vector.load %arg6[%c0_2, %c0_3] : memref<4x128xbf16, #tpu.memory_space<vmem>>, vector<4x128xbf16>
    %cst = arith.constant dense<0.000000e+00> : vector<256x128xf32>
    %3 = tpu.matmul %1, %2, %cst {dimension_numbers = #tpu.dot_dimension_numbers<[1], [0], [0], [1], [0, 0, 1, 1], [], []>} : vector<256x4xbf16>, vector<4x128xbf16>, vector<256x128xf32> -> vector<256x128xf32>
    %c0_4 = arith.constant 0 : index
    %c0_5 = arith.constant 0 : index
    %4 = vector.load %arg7[%c0_4, %c0_5] : memref<1x128xf32, #tpu.memory_space<vmem>>, vector<1x128xf32>
    %5 = vector.broadcast %4 : vector<1x128xf32> to vector<256x128xf32>
    %6 = arith.addf %3, %5 : vector<256x128xf32>
    %cst_6 = arith.constant 0.000000e+00 : f32
    %7 = vector.broadcast %cst_6 : f32 to vector<256x128xf32>
    %8 = arith.maximumf %6, %7 : vector<256x128xf32>
    %9 = arith.truncf %8 : vector<256x128xf32> to vector<256x128xbf16>
    %c0_7 = arith.constant 0 : index
    %c0_8 = arith.constant 0 : index
    %c0_9 = arith.constant 0 : index
    %10 = vector.load %arg8[%c0_7, %c0_8, %c0_9] : memref<4x128x128xbf16, #tpu.memory_space<vmem>>, vector<1x128x128xbf16>
    %11 = vector.shape_cast %10 : vector<1x128x128xbf16> to vector<128x128xbf16>
    %cst_10 = arith.constant dense<0.000000e+00> : vector<256x128xf32>
    %12 = tpu.matmul %9, %11, %cst_10 {dimension_numbers = #tpu.dot_dimension_numbers<[1], [0], [0], [1], [0, 0, 1, 1], [], []>} : vector<256x128xbf16>, vector<128x128xbf16>, vector<256x128xf32> -> vector<256x128xf32>
    %c0_11 = arith.constant 0 : index
    %c0_12 = arith.constant 0 : index
    %c0_13 = arith.constant 0 : index
    %13 = vector.load %arg3[%c0_11, %c0_12, %c0_13] : memref<1x256x128xbf16, #tpu.memory_space<vmem>>, vector<1x256x128xbf16>
    %14 = vector.shape_cast %13 : vector<1x256x128xbf16> to vector<256x128xbf16>
    %c1 = arith.constant 1 : index
    %c0_14 = arith.constant 0 : index
    %c0_15 = arith.constant 0 : index
    %15 = vector.load %arg8[%c1, %c0_14, %c0_15] : memref<4x128x128xbf16, #tpu.memory_space<vmem>>, vector<1x128x128xbf16>
    %16 = vector.shape_cast %15 : vector<1x128x128xbf16> to vector<128x128xbf16>
    %cst_16 = arith.constant dense<0.000000e+00> : vector<256x128xf32>
    %17 = tpu.matmul %14, %16, %cst_16 {dimension_numbers = #tpu.dot_dimension_numbers<[1], [0], [0], [1], [0, 0, 1, 1], [], []>} : vector<256x128xbf16>, vector<128x128xbf16>, vector<256x128xf32> -> vector<256x128xf32>
    %18 = arith.addf %12, %17 : vector<256x128xf32>
    %c0_17 = arith.constant 0 : index
    %c0_18 = arith.constant 0 : index
    %c0_19 = arith.constant 0 : index
    %19 = vector.load %arg4[%c0_17, %c0_18, %c0_19] : memref<1x256x128xbf16, #tpu.memory_space<vmem>>, vector<1x256x128xbf16>
    %20 = vector.shape_cast %19 : vector<1x256x128xbf16> to vector<256x128xbf16>
    %c2 = arith.constant 2 : index
    %c0_20 = arith.constant 0 : index
    %c0_21 = arith.constant 0 : index
    %21 = vector.load %arg8[%c2, %c0_20, %c0_21] : memref<4x128x128xbf16, #tpu.memory_space<vmem>>, vector<1x128x128xbf16>
    %22 = vector.shape_cast %21 : vector<1x128x128xbf16> to vector<128x128xbf16>
    %cst_22 = arith.constant dense<0.000000e+00> : vector<256x128xf32>
    %23 = tpu.matmul %20, %22, %cst_22 {dimension_numbers = #tpu.dot_dimension_numbers<[1], [0], [0], [1], [0, 0, 1, 1], [], []>} : vector<256x128xbf16>, vector<128x128xbf16>, vector<256x128xf32> -> vector<256x128xf32>
    %24 = arith.addf %18, %23 : vector<256x128xf32>
    %c0_23 = arith.constant 0 : index
    %c0_24 = arith.constant 0 : index
    %c0_25 = arith.constant 0 : index
    %25 = vector.load %arg5[%c0_23, %c0_24, %c0_25] : memref<1x256x128xbf16, #tpu.memory_space<vmem>>, vector<1x256x128xbf16>
    %26 = vector.shape_cast %25 : vector<1x256x128xbf16> to vector<256x128xbf16>
    %c3 = arith.constant 3 : index
    %c0_26 = arith.constant 0 : index
    %c0_27 = arith.constant 0 : index
    %27 = vector.load %arg8[%c3, %c0_26, %c0_27] : memref<4x128x128xbf16, #tpu.memory_space<vmem>>, vector<1x128x128xbf16>
    %28 = vector.shape_cast %27 : vector<1x128x128xbf16> to vector<128x128xbf16>
    %cst_28 = arith.constant dense<0.000000e+00> : vector<256x128xf32>
    %29 = tpu.matmul %26, %28, %cst_28 {dimension_numbers = #tpu.dot_dimension_numbers<[1], [0], [0], [1], [0, 0, 1, 1], [], []>} : vector<256x128xbf16>, vector<128x128xbf16>, vector<256x128xf32> -> vector<256x128xf32>
    %30 = arith.addf %24, %29 : vector<256x128xf32>
    %c0_29 = arith.constant 0 : index
    %c0_30 = arith.constant 0 : index
    %c0_31 = arith.constant 0 : index
    %31 = vector.load %arg9[%c0_29, %c0_30, %c0_31] : memref<1x1x128xf32, #tpu.memory_space<vmem>>, vector<1x1x128xf32>
    %32 = vector.shape_cast %31 : vector<1x1x128xf32> to vector<1x128xf32>
    %33 = vector.broadcast %32 : vector<1x128xf32> to vector<256x128xf32>
    %34 = arith.addf %30, %33 : vector<256x128xf32>
    %cst_32 = arith.constant 0.000000e+00 : f32
    %35 = vector.broadcast %cst_32 : f32 to vector<256x128xf32>
    %36 = arith.maximumf %34, %35 : vector<256x128xf32>
    %37 = arith.truncf %36 : vector<256x128xf32> to vector<256x128xbf16>
    %c0_33 = arith.constant 0 : index
    %c0_34 = arith.constant 0 : index
    %c0_35 = arith.constant 0 : index
    %38 = vector.load %arg10[%c0_33, %c0_34, %c0_35] : memref<1x256x128xbf16, #tpu.memory_space<vmem>>, vector<1x256x128xbf16>
    %39 = vector.shape_cast %38 : vector<1x256x128xbf16> to vector<256x128xbf16>
    %40 = vector.shape_cast %37 : vector<256x128xbf16> to vector<1x256x128xbf16>
    tpu.vector_store %arg10[%c0_33, %c0_34, %c0_35], %40 {strides = array<i32>} : memref<1x256x128xbf16, #tpu.memory_space<vmem>>, vector<1x256x128xbf16>,
    return
  }
  func.func @transform_0(%arg0: i32, %arg1: i32) -> (i32, i32, i32) {
    %c0_i32 = arith.constant 0 : i32
    %c0_i32_0 = arith.constant 0 : i32
    return %arg0, %arg1, %c0_i32 : i32, i32, i32
  }
  func.func @transform_1(%arg0: i32, %arg1: i32) -> (i32, i32, i32) {
    %c0_i32 = arith.constant 0 : i32
    %c0_i32_0 = arith.constant 0 : i32
    return %arg0, %arg1, %c0_i32 : i32, i32, i32
  }
  func.func @transform_2(%arg0: i32, %arg1: i32) -> (i32, i32, i32) {
    %c0_i32 = arith.constant 0 : i32
    %c0_i32_0 = arith.constant 0 : i32
    return %arg0, %arg1, %c0_i32 : i32, i32, i32
  }
  func.func @transform_3(%arg0: i32, %arg1: i32) -> (i32, i32, i32) {
    %c0_i32 = arith.constant 0 : i32
    %c0_i32_0 = arith.constant 0 : i32
    return %arg0, %arg1, %c0_i32 : i32, i32, i32
  }
  func.func @transform_4(%arg0: i32, %arg1: i32) -> (i32, i32) {
    %c0_i32 = arith.constant 0 : i32
    %c0_i32_0 = arith.constant 0 : i32
    %c0_i32_1 = arith.constant 0 : i32
    return %c0_i32, %c0_i32_0 : i32, i32
  }
  func.func @transform_5(%arg0: i32, %arg1: i32) -> (i32, i32) {
    %c0_i32 = arith.constant 0 : i32
    %c0_i32_0 = arith.constant 0 : i32
    %c0_i32_1 = arith.constant 0 : i32
    return %c0_i32, %c0_i32_0 : i32, i32
  }
  func.func @transform_6(%arg0: i32, %arg1: i32) -> (i32, i32, i32) {
    %c0_i32 = arith.constant 0 : i32
    %c0_i32_0 = arith.constant 0 : i32
    %c0_i32_1 = arith.constant 0 : i32
    %c0_i32_2 = arith.constant 0 : i32
    return %c0_i32, %c0_i32_0, %c0_i32_1 : i32, i32, i32
  }
  func.func @transform_7(%arg0: i32, %arg1: i32) -> (i32, i32, i32) {
    %c0_i32 = arith.constant 0 : i32
    %c0_i32_0 = arith.constant 0 : i32
    %c0_i32_1 = arith.constant 0 : i32
    return %arg0, %c0_i32, %c0_i32_0 : i32, i32, i32
  }
  func.func @transform_8(%arg0: i32, %arg1: i32) -> (i32, i32, i32) {
    %c0_i32 = arith.constant 0 : i32
    %c0_i32_0 = arith.constant 0 : i32
    return %arg0, %arg1, %c0_i32 : i32, i32, i32
  }
}

</mosaic_0001>

<bundles_post_ra>
// kernel: aspp_forward.7
= control target key start
LH: loop header
LB: loop body
LE: loop exit
PB: predicated region body
PF: predicated region fallthrough
CT: control target
= control target key end

     0   :  { %s932_s12 = smov 0   ;;  %s934_s13 = smov 0   ;;  %s1047_s0 = inlined_call_operand.vmem [shape: bf16[2,52,52,4], index: 0, kind: input, shape index: {}]   ;;  %s1048_s1 = inlined_call_operand.vmem [shape: bf16[9,4,128], index: 1, kind: input, shape index: {}]   ;;  %s1049_s2 = inlined_call_operand.vmem [shape: f32[1,128], index: 2, kind: input, shape index: {}]   ;;  %s1050_s3 = inlined_call_operand.vmem [shape: bf16[2,16,16,128], index: 3, kind: output, shape index: {}]  }
   0x1   :  { %s936_s14 = smov 0   ;;  %s938_s15 = smov 0  }
   0x2   :  { %s940_s16 = smov 0   ;;  %s942_s17 = smov 0  }
   0x3   :  { %s944_s18 = smov 0  }
   0x4 LB: > { %s25_s19 = sadd.s32 1, %s897_s15  ;;  %s28_s20 = sadd.s32 1, %s901_s16  ;;  %s909_s18 = sphi %s944_s18, %s13_s18   ;;  %s905_s17 = sphi %s942_s17, %s1056_s17   ;;  %s901_s16 = sphi %s940_s16, %s1055_s16   ;;  %s897_s15 = sphi %s938_s15, %s1054_s15   ;;  %s893_s14 = sphi %s936_s14, %s1053_s14   ;;  %s889_s13 = sphi %s934_s13, %s1052_s13   ;;  %s885_s12 = sphi %s932_s12, %s1051_s12  }
   0x5   : > { %p26_p0 = scmp.ge.s32.totalorder %s25_s19, 3  ;;  %p685_p1 = scmp.ge.s32.totalorder %s909_s18, 1 }
   0x6   : > { %p174_p2 = scmp.lt.s32.totalorder %s909_s18, 49  ;;  %s32_s21 = sadd.s32 1, %s905_s17 }
   0x7   : > { %s1058_s19 = smov (%p26_p0, %s25_s19), 0  ;;  %s1060_s20 = smov (!%p26_p0, %s28_s20), %s901_s16 }
   0x8   : > { %p175_p3 = pnand %p685_p1, %p174_p2  ;;  %p30_p4 = scmp.ge.s32.totalorder %s1060_s20, 8 }
   0x9   : > { %s210_s22 = smul.u32 (!%p175_p3), 9, %s885_s12  ;;  %p213_p6 = scmp.lt.s32.totalorder (!%p175_p3), %s893_s14, 1 }
   0xa   : > { %s1062_s20 = smov (%p30_p4, %s1060_s20), 0  ;;  %s1064_s21 = smov (!%p30_p4, %s32_s21), %s905_s17 }
   0xb   : > { %p34_p5 = scmp.ge.s32.totalorder %s1064_s21, 2  ;;  %178 = sbr.rel (%p175_p3) target bundleno = 282 (0x11a), region = 32 }
   0xc   : > { %s688_s23 = sshll.u32 (!%p175_p3), %s889_s13, 1  ;;  %s211_s24 = sadd.s32 (!%p175_p3), %s889_s13, %s210_s22 }
   0xd   : > { %s1066_s21 = smov (%p34_p5, %s1064_s21), 0  ;;  %s686_s25 = sshll.u32 (!%p175_p3), %s211_s24, 1 }
   0xe   : > { %p228_p7 = scmp.lt.s32.totalorder (!%p175_p3), %s688_s23, 15  ;;  %p215_p8 = scmp.lt.s32.totalorder (!%p175_p3), %s686_s25, 51 }
   0xf   : > { %p692_p9 = scmp.ne.s32.totalorder (!%p175_p3), %s885_s12, 0 }
  0x12   : > { %s1068_s14 = smov (!%p213_p6, %s893_s14), 1  ;;  %s1070_s25 = smov (!%p215_p8, %s686_s25), 51 }
  0x13   : > { %s787_s26 = smul.u32 364, %s1068_s14  ;;  %s690_s27 = sshll.u32 %s1068_s14, 5  ;;  %v911_v0 = vmov (!%p692_p9), 0.0  }
  0x14   : > { %s1072_s23 = smov (!%p228_p7, %s688_s23), 15  ;;  %s786_s28 = smul.u32 7, %s1070_s25  ;;  %241 = vst [vmem:[#allocation2] sm:$0xff] (!%p692_p9), %v911_v0  ;;  %242 = vst [vmem:[#allocation2 + $0x8] sm:$0xff] (!%p692_p9), %v911_v0 }
  0x15   : > { %s689_s29 = sshll.u32 %s1072_s23, 1  ;;  %240 = sbr.rel (%p692_p9) target bundleno = 28 (0x1c), region = 36  ;;  %243 = vst [vmem:[#allocation2 + $0x10] sm:$0xff] (!%p692_p9), %v911_v0  ;;  %244 = vst [vmem:[#allocation2 + $0x18] sm:$0xff] (!%p692_p9), %v911_v0 }
  0x16   : > { %s219_s30 = sadd.s32 %s787_s26, %s786_s28  ;;  %s232_s4 = sadd.s32 %s690_s27, %s689_s29 }
  0x17   : > { %s687_s5 = sshll.u32 %s219_s30, 2  ;;  %s691_s6 = sshll.u32 %s232_s4, 2 }
  0x18   : > { %s984_s9 = scalar_lea.vmem %s1047_s0, %s687_s5  ;;  %s989_s13 = scalar_lea.vmem %s1050_s3, %s691_s6 }
  0x1c PF: > { %s732_s14 = smul.u32 6, %s885_s12  ;;  %vm304_vm0 = vcmask 1041408   ;;  %v845_v1 = vld [vmem:[%s984_s9] sm:$0xff]   ;;  %vm297_vm1 = vcmask 31744   ;;  %vm278_vm2 = vcmask 1046528   ;;  %vm429_vm3 = vcmask 1045504  }
  0x1d   : > { %765 = vmatprep.mubr.msk.bf16.mxu0 %vm297_vm1, %v845_v1  ;;  %v846_v6 = vld [vmem:[%s984_s9 + $0x1c] sm:$0xff]   ;;  %v847_v9 = vld [vmem:[%s984_s9 + $0x8] sm:$0xfe]   ;;  %v848_v10 = vld [vmem:[%s984_s9 + $0x10] ss:$0 sps:$4 sm:$0x11]  }
  0x1e   : > { %s262_s24 = scalar_lea.vmem %s1048_s1, %s732_s14  ;;  %v279_v11 = vrot.slane %v847_v9, 1  ;;  %v280_v12 = vrot.slane %v848_v10, 1  ;;  %v849_v13 = vld [vmem:[%s984_s9 + $0x24] sm:$0xfe]   ;;  %v851_v17 = vld [vmem:[%s984_s9 + $0x10] sm:$0xfc]  }
  0x1f   : > { %v263_v2 = vld [vmem:[%s262_s24] sm:$0x3]  ;;  %v719_v3 = vld [vmem:[%s262_s24 + $0x4] sm:$0x3]  ;;  %v706_v4 = vld [vmem:[%s262_s24 + $0x2] sm:$0x3] }
  0x20   : > { %784 = vmatprep.subr.msk.bf16.mxu0 %vm304_vm0, %v263_v2  ;;  %v364_v5 = vsel %vm304_vm0, %v263_v2, 0  ;;  %783 = vmatprep.subr.msk.bf16.mxu1 %vm304_vm0, %v706_v4  ;;  %v306_v7 = vsel %vm304_vm0, %v706_v4, 0  ;;  %v455_v8 = vsel %vm304_vm0, %v719_v3, 0  ;;  %v850_v14 = vld [vmem:[%s984_s9 + $0x2c] ss:$0 sps:$4 sm:$0x11]   ;;  %v281_v15 = vsel %vm278_vm2, %v279_v11, %v280_v12 }
  0x21   : > { %764 = vmatpush3.bf16.msra.mxu0 %v364_v5  ;;  %758 = vmatpush3.bf16.msra.mxu1 %v306_v7  ;;  %v290_v16 = vrot.slane %v849_v13, 1  ;;  %v291_v18 = vrot.slane %v850_v14, 1  ;;  %v852_v19 = vld [vmem:[%s984_s9 + $0x18] ss:$0 sps:$4 sm:$0x33]   ;;  %v430_v20 = vrot.slane %v851_v17, 2 }
  0x22   : > { %785 = vmatprep.subr.msk.bf16.mxu0 %vm304_vm0, %v719_v3  ;;  %759 = vmatprep.mubr.msk.bf16.mxu1 %vm297_vm1, %v281_v15  ;;  %v431_v22 = vrot.slane %v852_v19, 2  ;;  %v853_v23 = vld [vmem:[%s984_s9 + $0x2c] sm:$0xfc]   ;;  %v854_v24 = vld [vmem:[%s984_s9 + $0x34] ss:$0 sps:$4 sm:$0x33]  }
  0x23   : > { %v292_v21 = vsel %vm278_vm2, %v290_v16, %v291_v18  ;;  %v441_v26 = vrot.slane %v853_v23, 2  ;;  %v442_v27 = vrot.slane %v854_v24, 2  ;;  %v512_v34 = vld [vmem:[#allocation2 + $0x10] sm:$0xff]  ;;  %v510_v37 = vld [vmem:[#allocation2] sm:$0xff]  ;;  %v513_v40 = vld [vmem:[#allocation2 + $0x18] sm:$0xff]  ;;  %p722_p10 = scmp.ne.s32.totalorder %s885_s12, 2 }
  0x24   : > { %766 = vmatmul.mubr.msk.bf16.vlgmr.msra.gmra.mrb[0].mxu0 %vm297_vm1, %v846_v6  ;;  %760 = vmatmul.mubr.msk.bf16.vlgmr.msra.gmra.mrb[0].mxu1 %vm297_vm1, %v292_v21  ;;  %v432_v25 = vsel %vm429_vm3, %v430_v20, %v431_v22  ;;  %v511_v44 = vld [vmem:[#allocation2 + $0x8] sm:$0xff]  ;;  %v723_v51 = vld [vmem:[%s1049_s2] ss:$0 sm:$0xff] (!%p722_p10) }
  0x25   : > { %770 = vmatpush3.bf16.msra.mxu0 %v455_v8  ;;  %771 = vmatprep.mubr.msk.bf16.mxu0 %vm297_vm1, %v432_v25  ;;  %v443_v28 = vsel %vm429_vm3, %v441_v26, %v442_v27 }
  0x30   : > { %772 = vmatmul.mubr.msk.bf16.vlgmr.msra.gmra.mrb[0].mxu0 %vm297_vm1, %v443_v28 }
  0xf7   : > { %v761_v29 = vpop.f32.mrb[0].mxu1 }
  0xf8   : > { %v342_v30 = vpop.f32.mrb[1].mxu1 }
  0xf9   : > { %v762_v31 = vpop.f32.mrb[2].mxu1 }
  0xfa   : > { %v345_v32 = vpop.f32.mrb[3].mxu1 }
 0x103   : > { %v773_v33 = vpop.f32.mrb[0].mxu0 }
 0x104   : > { %v775_v35 = vadd.f32 %v773_v33, %v761_v29  ;;  %v491_v36 = vpop.f32.mrb[1].mxu0 }
 0x105   : > { %v776_v38 = vadd.f32 %v491_v36, %v342_v30  ;;  %v774_v39 = vpop.f32.mrb[2].mxu0  ;;  %525 = sbr.rel (%p722_p10) target bundleno = 282 (0x11a), region = 40 }
 0x106   : > { %v516_v41 = vadd.f32 %v775_v35, %v512_v34  ;;  %v777_v42 = vadd.f32 %v774_v39, %v762_v31  ;;  %v494_v43 = vpop.f32.mrb[3].mxu0 }
 0x107   : > { %v514_v45 = vadd.f32 %v776_v38, %v510_v37  ;;  %v778_v46 = vadd.f32 %v494_v43, %v345_v32 }
 0x108   : > { %520 = vst [vmem:[#allocation2 + $0x10] sm:$0xff] %v516_v41  ;;  %v517_v47 = vadd.f32 %v777_v42, %v513_v40 }
 0x109   : > { %518 = vst [vmem:[#allocation2] sm:$0xff] %v514_v45  ;;  %v515_v48 = vadd.f32 %v778_v46, %v511_v44 }
 0x10a   : > { %521 = vst [vmem:[#allocation2 + $0x18] sm:$0xff] %v517_v47 }
 0x10b   : > { %519 = vst [vmem:[#allocation2 + $0x8] sm:$0xff] %v515_v48 }
 0x10f   : > { %v528_v54 = vld [vmem:[#allocation2 + $0x10] sm:$0xff] }
 0x110   : > { %v526_v49 = vld [vmem:[#allocation2] sm:$0xff]  ;;  %v539_v56 = vadd.f32 %v723_v51, %v528_v54 }
 0x111   : > { %v537_v52 = vadd.f32 %v723_v51, %v526_v49  ;;  %v529_v55 = vld [vmem:[#allocation2 + $0x18] sm:$0xff] }
 0x112   : > { %v527_v50 = vld [vmem:[#allocation2 + $0x8] sm:$0xff]  ;;  %v540_v57 = vadd.f32 %v723_v51, %v529_v55  ;;  %v543_v60 = vmax.f32 %v539_v56, 0.0 }
 0x113   : > { %v538_v53 = vadd.f32 %v723_v51, %v527_v50  ;;  %v541_v58 = vmax.f32 %v537_v52, 0.0 }
 0x114   : > { %v544_v61 = vmax.f32 %v540_v57, 0.0 }
 0x115   : > { %v542_v59 = vmax.f32 %v538_v53, 0.0 }
 0x116   : > { %v745_v63 = vpack.c.bf16 %v544_v61, %v543_v60 }
 0x117   : > { %v740_v62 = vpack.c.bf16 %v542_v59, %v541_v58 }
 0x118   : > { %747 = vst [vmem:[%s989_s13 + $0x8] sm:$0xff] %v745_v63  }
 0x119   : > { %741 = vst [vmem:[%s989_s13] sm:$0xff] %v740_v62  }
 0x11a PF: > { %s13_s18 = sadd.s32 1, %s909_s18   ;;  %s1051_s12 = smov %s897_s15 }
 0x11b   : > { %p10_p11 = scmp.ge.s32.totalorder %s13_s18, 50   ;;  %s1052_s13 = smov %s901_s16 }
 0x11c   : > { %s1053_s14 = smov %s905_s17  ;;  %s1054_s15 = smov %s1058_s19 }
 0x11d   : > { %s1055_s16 = smov %s1062_s20  ;;  %s1056_s17 = smov %s1066_s21 }
 0x11e   :  { %12 = sbr.rel (!%p10_p11) target bundleno = 4 (0x4), region = 75 }

// kernel: aspp_forward.6
= control target key start
LH: loop header
LB: loop body
LE: loop exit
PB: predicated region body
PF: predicated region fallthrough
CT: control target
= control target key end

     0   :  { %s1179_s12 = smov 0   ;;  %s1181_s13 = smov 0   ;;  %s1311_s0 = inlined_call_operand.vmem [shape: bf16[2,40,40,4], index: 0, kind: input, shape index: {}]   ;;  %s1312_s1 = inlined_call_operand.vmem [shape: bf16[9,4,128], index: 1, kind: input, shape index: {}]   ;;  %s1313_s2 = inlined_call_operand.vmem [shape: f32[1,128], index: 2, kind: input, shape index: {}]   ;;  %s1314_s3 = inlined_call_operand.vmem [shape: bf16[2,16,16,128], index: 3, kind: output, shape index: {}]  }
   0x1   :  { %s1183_s14 = smov 0   ;;  %s1185_s15 = smov 0  }
   0x2   :  { %s1187_s16 = smov 0   ;;  %s1189_s17 = smov 0  }
   0x3   :  { %s1191_s18 = smov 0  }
   0x4 LB: > { %s25_s19 = sadd.s32 1, %s1144_s15  ;;  %s28_s20 = sadd.s32 1, %s1148_s16  ;;  %s1156_s18 = sphi %s1191_s18, %s13_s18   ;;  %s1152_s17 = sphi %s1189_s17, %s1320_s17   ;;  %s1148_s16 = sphi %s1187_s16, %s1319_s16   ;;  %s1144_s15 = sphi %s1185_s15, %s1318_s15   ;;  %s1140_s14 = sphi %s1183_s14, %s1317_s14   ;;  %s1136_s13 = sphi %s1181_s13, %s1316_s13   ;;  %s1132_s12 = sphi %s1179_s12, %s1315_s12  }
   0x5   : > { %p26_p0 = scmp.ge.s32.totalorder %s25_s19, 3  ;;  %p848_p1 = scmp.ge.s32.totalorder %s1156_s18, 1 }
   0x6   : > { %p174_p2 = scmp.lt.s32.totalorder %s1156_s18, 25  ;;  %s32_s21 = sadd.s32 1, %s1152_s17 }
   0x7   : > { %s1322_s19 = smov (%p26_p0, %s25_s19), 0  ;;  %s1324_s20 = smov (!%p26_p0, %s28_s20), %s1148_s16 }
   0x8   : > { %p175_p3 = pnand %p848_p1, %p174_p2  ;;  %p30_p4 = scmp.ge.s32.totalorder %s1324_s20, 4 }
   0x9   : > { %s210_s22 = smul.u32 (!%p175_p3), 3, %s1132_s12  ;;  %p213_p6 = scmp.lt.s32.totalorder (!%p175_p3), %s1140_s14, 1 }
   0xa   : > { %s1326_s20 = smov (%p30_p4, %s1324_s20), 0  ;;  %s1328_s21 = smov (!%p30_p4, %s32_s21), %s1152_s17 }
   0xb   : > { %p34_p5 = scmp.ge.s32.totalorder %s1328_s21, 2  ;;  %178 = sbr.rel (%p175_p3) target bundleno = 290 (0x122), region = 32 }
   0xc   : > { %s851_s23 = sshll.u32 (!%p175_p3), %s1136_s13, 2  ;;  %s211_s24 = sadd.s32 (!%p175_p3), %s1136_s13, %s210_s22 }
   0xd   : > { %s1330_s21 = smov (%p34_p5, %s1328_s21), 0  ;;  %s849_s25 = sshll.u32 (!%p175_p3), %s211_s24, 2 }
   0xe   : > { %p228_p7 = scmp.lt.s32.totalorder (!%p175_p3), %s851_s23, 15  ;;  %p215_p8 = scmp.lt.s32.totalorder (!%p175_p3), %s849_s25, 39 }
   0xf   : > { %p855_p9 = scmp.ne.s32.totalorder (!%p175_p3), %s1132_s12, 0 }
  0x12   : > { %s1332_s14 = smov (!%p213_p6, %s1140_s14), 1  ;;  %s1334_s25 = smov (!%p215_p8, %s849_s25), 39 }
  0x13   : > { %s1028_s26 = smul.u32 200, %s1332_s14  ;;  %s853_s27 = sshll.u32 %s1332_s14, 5  ;;  %v1158_v0 = vmov (!%p855_p9), 0.0  }
  0x14   : > { %s1336_s23 = smov (!%p228_p7, %s851_s23), 15  ;;  %s1027_s28 = smul.u32 5, %s1334_s25  ;;  %241 = vst [vmem:[#allocation2] sm:$0xff] (!%p855_p9), %v1158_v0  ;;  %242 = vst [vmem:[#allocation2 + $0x8] sm:$0xff] (!%p855_p9), %v1158_v0 }
  0x15   : > { %s852_s29 = sshll.u32 %s1336_s23, 1  ;;  %240 = sbr.rel (%p855_p9) target bundleno = 28 (0x1c), region = 36  ;;  %243 = vst [vmem:[#allocation2 + $0x10] sm:$0xff] (!%p855_p9), %v1158_v0  ;;  %244 = vst [vmem:[#allocation2 + $0x18] sm:$0xff] (!%p855_p9), %v1158_v0 }
  0x16   : > { %s219_s30 = sadd.s32 %s1028_s26, %s1027_s28  ;;  %s232_s4 = sadd.s32 %s853_s27, %s852_s29  ;;  %245 = vst [vmem:[#allocation2 + $0x20] sm:$0xff] (!%p855_p9), %v1158_v0  ;;  %246 = vst [vmem:[#allocation2 + $0x28] sm:$0xff] (!%p855_p9), %v1158_v0 }
  0x17   : > { %s850_s5 = sshll.u32 %s219_s30, 2  ;;  %s854_s6 = sshll.u32 %s232_s4, 2  ;;  %247 = vst [vmem:[#allocation2 + $0x30] sm:$0xff] (!%p855_p9), %v1158_v0  ;;  %248 = vst [vmem:[#allocation2 + $0x38] sm:$0xff] (!%p855_p9), %v1158_v0 }
  0x18   : > { %s1231_s9 = scalar_lea.vmem %s1311_s0, %s850_s5  ;;  %s1236_s13 = scalar_lea.vmem %s1314_s3, %s854_s6 }
  0x1c PF: > { %s928_s14 = smul.u32 6, %s1132_s12  ;;  %vm358_vm0 = vcmask 1041408   ;;  %v1086_v1 = vld [vmem:[%s1231_s9 + $0x4] sm:$0xfc]   ;;  %vm304_vm1 = vcmask 1045504   ;;  %vm345_vm2 = vcmask 31744  }
  0x1d   : > { %v1087_v2 = vld [vmem:[%s1231_s9 + $0xc] ss:$0 sps:$4 sm:$0x33]   ;;  %v1088_v3 = vld [vmem:[%s1231_s9] sm:$0xff]   ;;  %v305_v6 = vrot.slane %v1086_v1, 2  ;;  %v1091_v7 = vld [vmem:[%s1231_s9 + $0x14] sm:$0xff]  }
  0x1e   : > { %s282_s24 = scalar_lea.vmem %s1312_s1, %s928_s14  ;;  %v306_v10 = vrot.slane %v1087_v2, 2  ;;  %v1096_v11 = vld [vmem:[%s1231_s9 + $0xc] sm:$0xff]   ;;  %987 = vmatprep.mubr.msk.bf16.mxu0 %vm345_vm2, %v1088_v3  ;;  %v1089_v13 = vld [vmem:[%s1231_s9 + $0x18] sm:$0xfc]   ;;  %v1094_v24 = vld [vmem:[%s1231_s9 + $0x40] sm:$0xfc]  }
  0x1f   : > { %v885_v4 = vld [vmem:[%s282_s24 + $0x2] sm:$0x3]  ;;  %v283_v5 = vld [vmem:[%s282_s24] sm:$0x3]  ;;  %v905_v15 = vld [vmem:[%s282_s24 + $0x4] sm:$0x3] }
  0x20   : > { %1023 = vmatprep.subr.msk.bf16.mxu1 %vm358_vm0, %v885_v4  ;;  %1024 = vmatprep.subr.msk.bf16.mxu0 %vm358_vm0, %v283_v5  ;;  %v360_v8 = vsel %vm358_vm0, %v885_v4, 0  ;;  %v440_v9 = vsel %vm358_vm0, %v283_v5, 0  ;;  %v307_v12 = vsel %vm304_vm1, %v305_v6, %v306_v10  ;;  %v1090_v14 = vld [vmem:[%s1231_s9 + $0x20] ss:$0 sps:$4 sm:$0x33]   ;;  %v316_v16 = vrot.slane %v1089_v13, 2 }
  0x21   : > { %976 = vmatpush3.bf16.msra.mxu1 %v360_v8  ;;  %986 = vmatpush3.bf16.msra.mxu0 %v440_v9  ;;  %v317_v17 = vrot.slane %v1090_v14, 2  ;;  %v552_v18 = vsel %vm358_vm0, %v905_v15, 0  ;;  %v1092_v19 = vld [vmem:[%s1231_s9 + $0x2c] sm:$0xfc]   ;;  %v338_v27 = vrot.slane %v1094_v24, 2  ;;  %v1097_v29 = vld [vmem:[%s1231_s9 + $0x20] sm:$0xff]  }
  0x22   : > { %1025 = vmatprep.subr.msk.bf16.mxu1 %vm358_vm0, %v283_v5  ;;  %977 = vmatprep.mubr.msk.bf16.mxu1 %vm345_vm2, %v307_v12  ;;  %v1093_v21 = vld [vmem:[%s1231_s9 + $0x34] ss:$0 sps:$4 sm:$0x33]   ;;  %v327_v22 = vrot.slane %v1092_v19, 2  ;;  %v1098_v30 = vld [vmem:[%s1231_s9 + $0x28] sm:$0xff]   ;;  %v1100_v34 = vld [vmem:[%s1231_s9 + $0x3c] sm:$0xff]  }
  0x23   : > { %1026 = vmatprep.subr.msk.bf16.mxu0 %vm358_vm0, %v905_v15  ;;  %v318_v20 = vsel %vm304_vm1, %v316_v16, %v317_v17  ;;  %v328_v23 = vrot.slane %v1093_v21, 2  ;;  %v1095_v25 = vld [vmem:[%s1231_s9 + $0x48] ss:$0 sps:$4 sm:$0x33]   ;;  %v1099_v32 = vld [vmem:[%s1231_s9 + $0x34] sm:$0xff]   ;;  %v627_v43 = vld [vmem:[#allocation2] sm:$0xff] }
  0x24   : > { %988 = vmatmul.mubr.msk.bf16.vlgmr.msra.gmra.mrb[0].mxu0 %vm345_vm2, %v1091_v7  ;;  %978 = vmatmul.mubr.msk.bf16.vlgmr.msra.gmra.mrb[0].mxu1 %vm345_vm2, %v318_v20  ;;  %v339_v28 = vrot.slane %v1095_v25, 2  ;;  %v1101_v33 = vld [vmem:[%s1231_s9 + $0x48] sm:$0xff]   ;;  %v629_v40 = vld [vmem:[#allocation2 + $0x10] sm:$0xff]  ;;  %v630_v46 = vld [vmem:[#allocation2 + $0x18] sm:$0xff]  ;;  %p910_p10 = scmp.ne.s32.totalorder %s1132_s12, 2 }
  0x25   : > { %996 = vmatpush3.bf16.msra.mxu0 %v552_v18  ;;  %997 = vmatprep.mubr.msk.bf16.mxu0 %vm345_vm2, %v1096_v11  ;;  %v329_v26 = vsel %vm304_vm1, %v327_v22, %v328_v23  ;;  %v628_v50 = vld [vmem:[#allocation2 + $0x8] sm:$0xff]  ;;  %v633_v59 = vld [vmem:[#allocation2 + $0x30] sm:$0xff]  ;;  %v631_v63 = vld [vmem:[#allocation2 + $0x20] sm:$0xff] }
  0x26   : > { %1006 = vmatpush3.bf16.msra.mxu1 %v440_v9  ;;  %981 = vmatprep.mubr.msk.bf16.mxu1 %vm345_vm2, %v329_v26  ;;  %v340_v31 = vsel %vm304_vm1, %v338_v27, %v339_v28  ;;  %v634_v2 = vld [vmem:[#allocation2 + $0x38] sm:$0xff]  ;;  %v632_v6 = vld [vmem:[#allocation2 + $0x28] sm:$0xff]  ;;  %v911_v13 = vld [vmem:[%s1313_s2] ss:$0 sm:$0xff] (!%p910_p10) }
  0x2c   : > { %982 = vmatmul.mubr.msk.bf16.gmra.mrb[4].mxu1 %vm345_vm2, %v340_v31 }
  0x2d   : > { %991 = vmatprep.mubr.msk.bf16.mxu1 %vm345_vm2, %v1098_v30 }
  0x30   : > { %998 = vmatmul.mubr.msk.bf16.vlgmr.msra.gmra.mrb[0].mxu0 %vm345_vm2, %v1097_v29 }
  0x31   : > { %1001 = vmatprep.mubr.msk.bf16.mxu0 %vm345_vm2, %v1099_v32 }
  0x38   : > { %1002 = vmatmul.mubr.msk.bf16.gmra.mrb[4].mxu0 %vm345_vm2, %v1101_v33  ;;  %992 = vmatmul.mubr.msk.bf16.vlgmr.msra.gmra.mrb[4].mxu1 %vm345_vm2, %v1100_v34 }
  0xf7   : > { %v979_v35 = vpop.f32.mrb[0].mxu1 }
  0xf8   : > { %v396_v36 = vpop.f32.mrb[1].mxu1 }
  0xf9   : > { %v980_v37 = vpop.f32.mrb[2].mxu1 }
  0xfa   : > { %v399_v38 = vpop.f32.mrb[3].mxu1 }
 0x103   : > { %v999_v39 = vpop.f32.mrb[0].mxu0 }
 0x104   : > { %v1007_v41 = vadd.f32 %v999_v39, %v979_v35  ;;  %v588_v42 = vpop.f32.mrb[1].mxu0 }
 0x105   : > { %v1008_v44 = vadd.f32 %v588_v42, %v396_v36  ;;  %v1000_v45 = vpop.f32.mrb[2].mxu0 }
 0x106   : > { %v637_v47 = vadd.f32 %v1007_v41, %v629_v40  ;;  %v1009_v48 = vadd.f32 %v1000_v45, %v980_v37  ;;  %v591_v49 = vpop.f32.mrb[3].mxu0 }
 0x107   : > { %v635_v51 = vadd.f32 %v1008_v44, %v627_v43  ;;  %v1010_v52 = vadd.f32 %v591_v49, %v399_v38 }
 0x108   : > { %645 = vst [vmem:[#allocation2 + $0x10] sm:$0xff] %v637_v47  ;;  %v638_v53 = vadd.f32 %v1009_v48, %v630_v46 }
 0x109   : > { %643 = vst [vmem:[#allocation2] sm:$0xff] %v635_v51  ;;  %v636_v54 = vadd.f32 %v1010_v52, %v628_v50 }
 0x10a   : > { %646 = vst [vmem:[#allocation2 + $0x18] sm:$0xff] %v638_v53 }
 0x10b   : > { %644 = vst [vmem:[#allocation2 + $0x8] sm:$0xff] %v636_v54  ;;  %v1003_v55 = vpop.f32.mrb[4].mxu0  ;;  %v993_v58 = vpop.f32.mrb[4].mxu1 }
 0x10c   : > { %v604_v56 = vpop.f32.mrb[5].mxu0  ;;  %v1011_v61 = vadd.f32 %v1003_v55, %v993_v58  ;;  %v492_v62 = vpop.f32.mrb[5].mxu1 }
 0x10d   : > { %v1004_v57 = vpop.f32.mrb[6].mxu0  ;;  %v1012_v0 = vadd.f32 %v604_v56, %v492_v62  ;;  %v994_v1 = vpop.f32.mrb[6].mxu1  ;;  %654 = sbr.rel (%p910_p10) target bundleno = 290 (0x122), region = 40 }
 0x10e   : > { %v607_v60 = vpop.f32.mrb[7].mxu0  ;;  %v641_v3 = vadd.f32 %v1011_v61, %v633_v59  ;;  %v1013_v4 = vadd.f32 %v1004_v57, %v994_v1  ;;  %v495_v5 = vpop.f32.mrb[7].mxu1 }
 0x10f   : > { %v639_v7 = vadd.f32 %v1012_v0, %v631_v63  ;;  %v1014_v8 = vadd.f32 %v607_v60, %v495_v5  ;;  %v657_v16 = vld [vmem:[#allocation2 + $0x10] sm:$0xff] (!%p910_p10) }
 0x110   : > { %649 = vst [vmem:[#allocation2 + $0x30] sm:$0xff] %v641_v3  ;;  %v642_v9 = vadd.f32 %v1013_v4, %v634_v2  ;;  %v655_v11 = vld [vmem:[#allocation2] sm:$0xff] (!%p910_p10)  ;;  %v672_v19 = vadd.f32 (!%p910_p10), %v911_v13, %v657_v16 }
 0x111   : > { %647 = vst [vmem:[#allocation2 + $0x20] sm:$0xff] %v639_v7  ;;  %v640_v10 = vadd.f32 %v1014_v8, %v632_v6  ;;  %v670_v14 = vadd.f32 (!%p910_p10), %v911_v13, %v655_v11  ;;  %v658_v17 = vld [vmem:[#allocation2 + $0x18] sm:$0xff] (!%p910_p10) }
 0x112   : > { %650 = vst [vmem:[#allocation2 + $0x38] sm:$0xff] %v642_v9  ;;  %v656_v12 = vld [vmem:[#allocation2 + $0x8] sm:$0xff] (!%p910_p10)  ;;  %v673_v20 = vadd.f32 (!%p910_p10), %v911_v13, %v658_v17  ;;  %v680_v29 = vmax.f32 (!%p910_p10), %v672_v19, 0.0 }
 0x113   : > { %648 = vst [vmem:[#allocation2 + $0x28] sm:$0xff] %v640_v10  ;;  %v671_v15 = vadd.f32 (!%p910_p10), %v911_v13, %v656_v12  ;;  %v678_v25 = vmax.f32 (!%p910_p10), %v670_v14, 0.0 }
 0x114   : > { %v681_v30 = vmax.f32 %v673_v20, 0.0 }
 0x115   : > { %v679_v26 = vmax.f32 %v671_v15, 0.0 }
 0x116   : > { %v945_v36 = vpack.c.bf16 %v681_v30, %v680_v29 }
 0x117   : > { %v661_v23 = vld [vmem:[#allocation2 + $0x30] sm:$0xff]  ;;  %v940_v33 = vpack.c.bf16 %v679_v26, %v678_v25 }
 0x118   : > { %v659_v18 = vld [vmem:[#allocation2 + $0x20] sm:$0xff]  ;;  %v676_v28 = vadd.f32 %v911_v13, %v661_v23  ;;  %957 = vst [vmem:[%s1236_s13 + $0x8] sm:$0xff] %v945_v36  }
 0x119   : > { %v674_v22 = vadd.f32 %v911_v13, %v659_v18  ;;  %v662_v24 = vld [vmem:[#allocation2 + $0x38] sm:$0xff]  ;;  %941 = vst [vmem:[%s1236_s13] sm:$0xff] %v940_v33  }
 0x11a   : > { %v660_v21 = vld [vmem:[#allocation2 + $0x28] sm:$0xff]  ;;  %v677_v32 = vadd.f32 %v911_v13, %v662_v24  ;;  %v684_v35 = vmax.f32 %v676_v28, 0.0 }
 0x11b   : > { %v675_v27 = vadd.f32 %v911_v13, %v660_v21  ;;  %v682_v31 = vmax.f32 %v674_v22, 0.0 }
 0x11c   : > { %v685_v37 = vmax.f32 %v677_v32, 0.0 }
 0x11d   : > { %v683_v34 = vmax.f32 %v675_v27, 0.0 }
 0x11e   : > { %v955_v39 = vpack.c.bf16 %v685_v37, %v684_v35 }
 0x11f   : > { %v950_v38 = vpack.c.bf16 %v683_v34, %v682_v31 }
 0x120   : > { %959 = vst [vmem:[%s1236_s13 + $0x18] sm:$0xff] %v955_v39  }
 0x121   : > { %958 = vst [vmem:[%s1236_s13 + $0x10] sm:$0xff] %v950_v38  }
 0x122 PF: > { %s13_s18 = sadd.s32 1, %s1156_s18   ;;  %s1315_s12 = smov %s1144_s15 }
 0x123   : > { %p10_p11 = scmp.ge.s32.totalorder %s13_s18, 26   ;;  %s1316_s13 = smov %s1148_s16 }
 0x124   : > { %s1317_s14 = smov %s1152_s17  ;;  %s1318_s15 = smov %s1322_s19 }
 0x125   : > { %s1319_s16 = smov %s1326_s20  ;;  %s1320_s17 = smov %s1330_s21 }
 0x126   :  { %12 = sbr.rel (!%p10_p11) target bundleno = 4 (0x4), region = 79 }

// kernel: aspp_forward.8
= control target key start
LH: loop header
LB: loop body
LE: loop exit
PB: predicated region body
PF: predicated region fallthrough
CT: control target
= control target key end

     0   :  { %s501_s6 = smov 0   ;;  %s503_s7 = smov 0   ;;  %s591_s0 = inlined_call_operand.vmem [shape: bf16[2,256,4], index: 0, kind: input, shape index: {}]   ;;  %s592_s1 = inlined_call_operand.vmem [shape: f32[2,1,4], index: 1, kind: output, shape index: {}]  }
   0x1   :  { %s505_s8 = smov 0  }
   0x2 LB: > { %s23_s9 = sadd.s32 1, %s484_s7  ;;  %p356_p0 = scmp.ge.s32.totalorder %s488_s8, 1  ;;  %s488_s8 = sphi %s505_s8, %s11_s8   ;;  %s484_s7 = sphi %s503_s7, %s594_s7   ;;  %s480_s6 = sphi %s501_s6, %s593_s6  }
   0x3   : > { %p25_p1 = scmp.ge.s32.totalorder %s23_s9, 2  ;;  %p106_p2 = scmp.lt.s32.totalorder %s488_s8, 3 }
   0x5   : > { %s596_s9 = smov (%p25_p1, %s23_s9), 0  ;;  %p107_p3 = pnand %p356_p0, %p106_p2 }
   0x6   : > { %vm145_vm0 = vcmask (!%p107_p3), 24576   ;;  %p129_p4 = scmp.lt.s32.totalorder (!%p107_p3), %s480_s6, 1  ;;  %v490_v0 = vmov (!%p107_p3), 0.0   ;;  %vm212_vm1 = vcmask (!%p107_p3), 31744  }
   0x7   : > { %110 = sbr.rel (%p107_p3) target bundleno = 108 (0x6c), region = 24  ;;  %146 = vst.msk [vmem:[#allocation2] sm:$0x1] (!%p107_p3), %vm145_vm0, %v490_v0 }
   0xe   : > { %s598_s6 = smov (!%p129_p4, %s480_s6), 1 }
   0xf   : > { %s361_s10 = sshll.u32 %s598_s6, 7  ;;  %s140_s16 = scalar_lea.vmem %s592_s1, %s598_s6 }
  0x10   : > { %s526_s13 = scalar_lea.vmem %s591_s0, %s361_s10 }
  0x11   : > { %v363_v1 = vld [vmem:[%s526_s13] sm:$0xff]   ;;  %v426_v2 = vld [vmem:[%s526_s13 + $0x8] sm:$0xff]   ;;  %v427_v6 = vld [vmem:[%s526_s13 + $0x10] sm:$0xff]  }
  0x12   : > { %v364_v3 = vunpack.c.l.bf16 %v363_v1  ;;  %v365_v4 = vunpack.c.h.bf16 %v363_v1  ;;  %v368_v5 = vunpack.c.l.bf16 %v426_v2  ;;  %v369_v7 = vunpack.c.h.bf16 %v426_v2  ;;  %v428_v12 = vld [vmem:[%s526_s13 + $0x18] sm:$0xff]   ;;  %v429_v19 = vld [vmem:[%s526_s13 + $0x20] sm:$0xff]   ;;  %v430_v26 = vld [vmem:[%s526_s13 + $0x28] sm:$0xff]  }
  0x13   : > { %v372_v8 = vunpack.c.l.bf16 %v427_v6  ;;  %v373_v14 = vunpack.c.h.bf16 %v427_v6  ;;  %v376_v17 = vunpack.c.l.bf16 %v428_v12  ;;  %v377_v21 = vunpack.c.h.bf16 %v428_v12  ;;  %v431_v33 = vld [vmem:[%s526_s13 + $0x30] sm:$0xff]   ;;  %v432_v40 = vld [vmem:[%s526_s13 + $0x38] sm:$0xff]   ;;  %v433_v47 = vld [vmem:[%s526_s13 + $0x40] sm:$0xff]  }
  0x14   : > { %v213_v9 = vsel %vm212_vm1, %v364_v3, 0.0  ;;  %v214_v10 = vsel %vm212_vm1, %v365_v4, 0.0  ;;  %v216_v11 = vsel %vm212_vm1, %v368_v5, 0.0  ;;  %v218_v15 = vsel %vm212_vm1, %v369_v7, 0.0  ;;  %v434_v54 = vld [vmem:[%s526_s13 + $0x48] sm:$0xff]   ;;  %v435_v61 = vld [vmem:[%s526_s13 + $0x50] sm:$0xff]  }
  0x15   : > { %v215_v13 = vadd.f32 %v214_v10, %v213_v9  ;;  %v220_v18 = vsel %vm212_vm1, %v372_v8, 0.0  ;;  %v222_v22 = vsel %vm212_vm1, %v373_v14, 0.0  ;;  %v380_v24 = vunpack.c.l.bf16 %v429_v19  ;;  %v436_v4 = vld [vmem:[%s526_s13 + $0x58] sm:$0xff]  }
  0x16   : > { %v224_v25 = vsel %vm212_vm1, %v376_v17, 0.0  ;;  %v381_v28 = vunpack.c.h.bf16 %v429_v19  ;;  %v226_v29 = vsel %vm212_vm1, %v377_v21, 0.0  ;;  %v384_v31 = vunpack.c.l.bf16 %v430_v26 }
  0x17   : > { %v217_v16 = vadd.f32 %v216_v11, %v215_v13  ;;  %v228_v32 = vsel %vm212_vm1, %v380_v24, 0.0  ;;  %v385_v35 = vunpack.c.h.bf16 %v430_v26  ;;  %v388_v38 = vunpack.c.l.bf16 %v431_v33  ;;  %v437_v11 = vld [vmem:[%s526_s13 + $0x60] sm:$0xff]  }
  0x18   : > { %v230_v36 = vsel %vm212_vm1, %v381_v28, 0.0  ;;  %v232_v39 = vsel %vm212_vm1, %v384_v31, 0.0  ;;  %v389_v42 = vunpack.c.h.bf16 %v431_v33  ;;  %v392_v45 = vunpack.c.l.bf16 %v432_v40 }
  0x19   : > { %v219_v20 = vadd.f32 %v218_v15, %v217_v16  ;;  %v234_v43 = vsel %vm212_vm1, %v385_v35, 0.0  ;;  %v236_v46 = vsel %vm212_vm1, %v388_v38, 0.0  ;;  %v393_v49 = vunpack.c.h.bf16 %v432_v40 }
  0x1a   : > { %v238_v50 = vsel %vm212_vm1, %v389_v42, 0.0  ;;  %v396_v52 = vunpack.c.l.bf16 %v433_v47  ;;  %v240_v53 = vsel %vm212_vm1, %v392_v45, 0.0  ;;  %v397_v56 = vunpack.c.h.bf16 %v433_v47 }
  0x1b   : > { %v221_v23 = vadd.f32 %v220_v18, %v219_v20  ;;  %v242_v57 = vsel %vm212_vm1, %v393_v49, 0.0  ;;  %v400_v59 = vunpack.c.l.bf16 %v434_v54  ;;  %v401_v63 = vunpack.c.h.bf16 %v434_v54  ;;  %v438_v18 = vld [vmem:[%s526_s13 + $0x68] sm:$0xff]  }
  0x1c   : > { %v244_v60 = vsel %vm212_vm1, %v396_v52, 0.0  ;;  %v246_v0 = vsel %vm212_vm1, %v397_v56, 0.0  ;;  %v404_v2 = vunpack.c.l.bf16 %v435_v61  ;;  %v405_v6 = vunpack.c.h.bf16 %v435_v61 }
  0x1d   : > { %v223_v27 = vadd.f32 %v222_v22, %v221_v23  ;;  %v248_v3 = vsel %vm212_vm1, %v400_v59, 0.0  ;;  %v250_v7 = vsel %vm212_vm1, %v401_v63, 0.0  ;;  %v408_v9 = vunpack.c.l.bf16 %v436_v4 }
  0x1e   : > { %v252_v10 = vsel %vm212_vm1, %v404_v2, 0.0  ;;  %v409_v13 = vunpack.c.h.bf16 %v436_v4  ;;  %v254_v14 = vsel %vm212_vm1, %v405_v6, 0.0  ;;  %v412_v16 = vunpack.c.l.bf16 %v437_v11 }
  0x1f   : > { %v225_v30 = vadd.f32 %v224_v25, %v223_v27  ;;  %v256_v17 = vsel %vm212_vm1, %v408_v9, 0.0  ;;  %v413_v20 = vunpack.c.h.bf16 %v437_v11  ;;  %v416_v23 = vunpack.c.l.bf16 %v438_v18  ;;  %v439_v25 = vld [vmem:[%s526_s13 + $0x70] sm:$0xff]  }
  0x20   : > { %v258_v21 = vsel %vm212_vm1, %v409_v13, 0.0  ;;  %v260_v24 = vsel %vm212_vm1, %v412_v16, 0.0  ;;  %v417_v27 = vunpack.c.h.bf16 %v438_v18 }
  0x21   : > { %v227_v34 = vadd.f32 %v226_v29, %v225_v30  ;;  %v262_v28 = vsel %vm212_vm1, %v413_v20, 0.0  ;;  %v420_v30 = vunpack.c.l.bf16 %v439_v25  ;;  %v264_v31 = vsel %vm212_vm1, %v416_v23, 0.0 }
  0x22   : > { %v266_v35 = vsel %vm212_vm1, %v417_v27, 0.0 }
  0x23   : > { %v229_v37 = vadd.f32 %v228_v32, %v227_v34  ;;  %v440_v32 = vld [vmem:[%s526_s13 + $0x78] sm:$0xff]   ;;  %v421_v34 = vunpack.c.h.bf16 %v439_v25  ;;  %v268_v38 = vsel %vm212_vm1, %v420_v30, 0.0 }
  0x24   : > { %v425_v40 = vunpack.c.h.bf16 %v440_v32 }
  0x25   : > { %v231_v41 = vadd.f32 %v230_v36, %v229_v37  ;;  %v424_v37 = vunpack.c.l.bf16 %v440_v32 }
  0x26   : > { %v274_v45 = vsel %vm212_vm1, %v425_v40, 0.0 }
  0x27   : > { %v233_v44 = vadd.f32 %v232_v39, %v231_v41  ;;  %v270_v41 = vsel %vm212_vm1, %v421_v34, 0.0 }
  0x29   : > { %v235_v48 = vadd.f32 %v234_v43, %v233_v44  ;;  %v272_v43 = vsel %vm212_vm1, %v424_v37, 0.0 }
  0x2b   : > { %v237_v51 = vadd.f32 %v236_v46, %v235_v48 }
  0x2d   : > { %v239_v55 = vadd.f32 %v238_v50, %v237_v51 }
  0x2f   : > { %v241_v58 = vadd.f32 %v240_v53, %v239_v55  ;;  %v211_v53 = vld [vmem:[#allocation2] sm:$0x1] }
  0x31   : > { %v243_v62 = vadd.f32 %v242_v57, %v241_v58 }
  0x33   : > { %v245_v1 = vadd.f32 %v244_v60, %v243_v62 }
  0x35   : > { %v247_v5 = vadd.f32 %v246_v0, %v245_v1 }
  0x37   : > { %v249_v8 = vadd.f32 %v248_v3, %v247_v5 }
  0x39   : > { %v251_v12 = vadd.f32 %v250_v7, %v249_v8 }
  0x3b   : > { %v253_v15 = vadd.f32 %v252_v10, %v251_v12 }
  0x3d   : > { %v255_v19 = vadd.f32 %v254_v14, %v253_v15 }
  0x3f   : > { %v257_v22 = vadd.f32 %v256_v17, %v255_v19 }
  0x41   : > { %v259_v26 = vadd.f32 %v258_v21, %v257_v22 }
  0x43   : > { %v261_v29 = vadd.f32 %v260_v24, %v259_v26 }
  0x45   : > { %v263_v33 = vadd.f32 %v262_v28, %v261_v29 }
  0x47   : > { %v265_v36 = vadd.f32 %v264_v31, %v263_v33 }
  0x49   : > { %v267_v39 = vadd.f32 %v266_v35, %v265_v36 }
  0x4b   : > { %v269_v42 = vadd.f32 %v268_v38, %v267_v39 }
  0x4d   : > { %v271_v44 = vadd.f32 %v270_v41, %v269_v42 }
  0x4f   : > { %v273_v46 = vadd.f32 %v272_v43, %v271_v44 }
  0x51   : > { %v275_v47 = vadd.f32 %v274_v45, %v273_v46 }
  0x53   : > { %v276_v48 = vrot.slane %v275_v47, 4 }
  0x55   : > { %v277_v49 = vadd.f32 %v276_v48, %v275_v47 }
  0x57   : > { %v278_v50 = vrot.slane %v277_v49, 2 }
  0x59   : > { %v279_v51 = vadd.f32 %v278_v50, %v277_v49 }
  0x5b   : > { %v280_v52 = vrot.slane %v279_v51, 1 }
  0x5d   : > { %v281_v54 = vadd.f32 %v280_v52, %v279_v51 }
  0x5f   : > { %v282_v55 = vadd.f32 %v281_v54, %v211_v53 }
  0x61   : > { %284 = vst.msk [vmem:[#allocation2] sm:$0x1] %vm145_vm0, %v282_v55 }
  0x68   : > { %v288_v56 = vld [vmem:[#allocation2] sm:$0x1] }
  0x69   : > { %v289_v57 = vmul.f32 0.00390625, %v288_v56 }
  0x6b   : > { %290 = vst.msk [vmem:[%s140_s16] sm:$0x1] %vm145_vm0, %v289_v57 }
  0x6c PF: > { %s11_s8 = sadd.s32 1, %s488_s8   ;;  %s593_s6 = smov %s484_s7 }
  0x6d   : > { %p8_p5 = scmp.ge.s32.totalorder %s11_s8, 4   ;;  %s594_s7 = smov %s596_s9 }
  0x6f   :  { %10 = sbr.rel (!%p8_p5) target bundleno = 2 (0x2), region = 62 }

// kernel: aspp_forward.5
= control target key start
LH: loop header
LB: loop body
LE: loop exit
PB: predicated region body
PF: predicated region fallthrough
CT: control target
= control target key end

     0   :  { %s925_s12 = smov 0   ;;  %s927_s13 = smov 0   ;;  %s1042_s0 = inlined_call_operand.vmem [shape: bf16[2,28,28,4], index: 0, kind: input, shape index: {}]   ;;  %s1043_s1 = inlined_call_operand.vmem [shape: bf16[9,4,128], index: 1, kind: input, shape index: {}]   ;;  %s1044_s2 = inlined_call_operand.vmem [shape: f32[1,128], index: 2, kind: input, shape index: {}]   ;;  %s1045_s3 = inlined_call_operand.vmem [shape: bf16[2,16,16,128], index: 3, kind: output, shape index: {}]  }
   0x1   :  { %s929_s14 = smov 0   ;;  %s931_s15 = smov 0  }
   0x2   :  { %s933_s16 = smov 0   ;;  %s935_s17 = smov 0  }
   0x3   :  { %s937_s18 = smov 0  }
   0x4 LB: > { %s25_s19 = sadd.s32 1, %s890_s15  ;;  %s28_s20 = sadd.s32 1, %s894_s16  ;;  %s902_s18 = sphi %s937_s18, %s13_s18   ;;  %s898_s17 = sphi %s935_s17, %s1051_s17   ;;  %s894_s16 = sphi %s933_s16, %s1050_s16   ;;  %s890_s15 = sphi %s931_s15, %s1049_s15   ;;  %s886_s14 = sphi %s929_s14, %s1048_s14   ;;  %s882_s13 = sphi %s927_s13, %s1047_s13   ;;  %s878_s12 = sphi %s925_s12, %s1046_s12  }
   0x5   : > { %p26_p0 = scmp.ge.s32.totalorder %s25_s19, 3  ;;  %p679_p1 = scmp.ge.s32.totalorder %s902_s18, 1 }
   0x6   : > { %p174_p2 = scmp.lt.s32.totalorder %s902_s18, 49  ;;  %s32_s21 = sadd.s32 1, %s898_s17 }
   0x7   : > { %s1053_s19 = smov (%p26_p0, %s25_s19), 0  ;;  %s1055_s20 = smov (!%p26_p0, %s28_s20), %s894_s16 }
   0x8   : > { %p175_p3 = pnand %p679_p1, %p174_p2  ;;  %p30_p4 = scmp.ge.s32.totalorder %s1055_s20, 8 }
   0x9   : > { %s210_s22 = smul.u32 (!%p175_p3), 3, %s878_s12  ;;  %p213_p6 = scmp.lt.s32.totalorder (!%p175_p3), %s886_s14, 1 }
   0xa   : > { %s1057_s20 = smov (%p30_p4, %s1055_s20), 0  ;;  %s1059_s21 = smov (!%p30_p4, %s32_s21), %s898_s17 }
   0xb   : > { %p34_p5 = scmp.ge.s32.totalorder %s1059_s21, 2  ;;  %178 = sbr.rel (%p175_p3) target bundleno = 285 (0x11d), region = 32 }
   0xc   : > { %s683_s23 = sshll.u32 (!%p175_p3), %s882_s13, 1  ;;  %s211_s24 = sadd.s32 (!%p175_p3), %s882_s13, %s210_s22 }
   0xd   : > { %s1061_s21 = smov (%p34_p5, %s1059_s21), 0  ;;  %s680_s25 = sshll.u32 (!%p175_p3), %s211_s24, 1 }
   0xe   : > { %p228_p7 = scmp.lt.s32.totalorder (!%p175_p3), %s683_s23, 15  ;;  %p215_p8 = scmp.lt.s32.totalorder (!%p175_p3), %s680_s25, 27 }
   0xf   : > { %p687_p9 = scmp.ne.s32.totalorder (!%p175_p3), %s878_s12, 0 }
  0x12   : > { %s1063_s14 = smov (!%p213_p6, %s886_s14), 1  ;;  %s1065_s25 = smov (!%p215_p8, %s680_s25), 27 }
  0x13   : > { %s780_s26 = smul.u32 112, %s1063_s14  ;;  %s685_s27 = sshll.u32 %s1063_s14, 5  ;;  %v904_v0 = vmov (!%p687_p9), 0.0  }
  0x14   : > { %s1067_s23 = smov (!%p228_p7, %s683_s23), 15  ;;  %s681_s28 = sshll.u32 %s1065_s25, 2  ;;  %241 = vst [vmem:[#allocation2] sm:$0xff] (!%p687_p9), %v904_v0  ;;  %242 = vst [vmem:[#allocation2 + $0x8] sm:$0xff] (!%p687_p9), %v904_v0 }
  0x15   : > { %s219_s29 = sadd.s32 %s780_s26, %s681_s28  ;;  %s684_s30 = sshll.u32 %s1067_s23, 1  ;;  %243 = vst [vmem:[#allocation2 + $0x10] sm:$0xff] (!%p687_p9), %v904_v0  ;;  %244 = vst [vmem:[#allocation2 + $0x18] sm:$0xff] (!%p687_p9), %v904_v0 }
  0x16   : > { %s682_s4 = sshll.u32 %s219_s29, 2  ;;  %s232_s5 = sadd.s32 %s685_s27, %s684_s30 }
  0x17   : > { %s977_s8 = scalar_lea.vmem %s1042_s0, %s682_s4  ;;  %s686_s9 = sshll.u32 %s232_s5, 2 }
  0x18   : > { %s982_s13 = scalar_lea.vmem %s1045_s3, %s686_s9  ;;  %240 = sbr.rel (%p687_p9) target bundleno = 31 (0x1f), region = 36 }
  0x1f PF: > { %s726_s14 = smul.u32 6, %s878_s12  ;;  %vm298_vm0 = vcmask 1041408   ;;  %v245_v1 = vld [vmem:[%s977_s8] sm:$0xf]  ;;  %v246_v2 = vld [vmem:[%s977_s8 + $0x4] sm:$0xf] }
  0x20   : > { %v690_v3 = vcombine.low %v245_v1, %v246_v2  ;;  %v264_v4 = vld [vmem:[%s977_s8] sm:$0x8]  ;;  %vm291_vm1 = vcmask 31744   ;;  %v688_v5 = vld [vmem:[%s977_s8 + $0x10] sm:$0xf]  ;;  %vm274_vm2 = vcmask 1044480  }
  0x21   : > { %s262_s24 = scalar_lea.vmem %s1043_s1, %s726_s14  ;;  %v695_v6 = vcombine.low %v264_v4, %v246_v2  ;;  %v689_v7 = vld [vmem:[%s977_s8 + $0x14] sm:$0xf]  ;;  %v693_v8 = vld [vmem:[%s977_s8 + $0x10] sm:$0x8]  ;;  %v844_v23 = vld [vmem:[%s977_s8 + $0x4] sm:$0xfc]  }
  0x22   : > { %v263_v9 = vld [vmem:[%s262_s24] sm:$0x3]  ;;  %759 = vmatprep.mubr.msk.bf16.mxu0 %vm291_vm1, %v690_v3  ;;  %v713_v10 = vld [vmem:[%s262_s24 + $0x4] sm:$0x3]  ;;  %v700_v11 = vld [vmem:[%s262_s24 + $0x2] sm:$0x3]  ;;  %v697_v12 = vcombine.low %v693_v8, %v689_v7  ;;  %v691_v15 = vcombine.low %v688_v5, %v689_v7 }
  0x23   : > { %778 = vmatprep.subr.msk.bf16.mxu0 %vm298_vm0, %v263_v9  ;;  %v358_v13 = vsel %vm298_vm0, %v263_v9, 0  ;;  %v275_v14 = vrot.slane %v695_v6, 3  ;;  %777 = vmatprep.subr.msk.bf16.mxu1 %vm298_vm0, %v700_v11  ;;  %v300_v16 = vsel %vm298_vm0, %v700_v11, 0  ;;  %v841_v17 = vld [vmem:[%s977_s8 + $0x8] ss:$0 sps:$4 sm:$0x77]  }
  0x24   : > { %758 = vmatpush3.bf16.msra.mxu0 %v358_v13  ;;  %752 = vmatpush3.bf16.msra.mxu1 %v300_v16  ;;  %v843_v18 = vld [vmem:[%s977_s8 + $0x18] ss:$0 sps:$4 sm:$0x77]   ;;  %v449_v19 = vsel %vm298_vm0, %v713_v10, 0  ;;  %v284_v20 = vrot.slane %v697_v12, 3  ;;  %v276_v21 = vrot.slane %v841_v17, 3 }
  0x25   : > { %779 = vmatprep.subr.msk.bf16.mxu0 %vm298_vm0, %v713_v10  ;;  %v285_v22 = vrot.slane %v843_v18, 3  ;;  %v845_v24 = vld [vmem:[%s977_s8 + $0xc] ss:$0 sps:$4 sm:$0x33]   ;;  %vm423_vm3 = vcmask 1045504   ;;  %v424_v27 = vrot.slane %v844_v23, 2 }
  0x26   : > { %v277_v25 = vsel %vm274_vm2, %v275_v14, %v276_v21  ;;  %v425_v28 = vrot.slane %v845_v24, 2  ;;  %v846_v29 = vld [vmem:[%s977_s8 + $0x14] sm:$0xfc]   ;;  %v847_v30 = vld [vmem:[%s977_s8 + $0x1c] ss:$0 sps:$4 sm:$0x33]  }
  0x27   : > { %760 = vmatmul.mubr.msk.bf16.vlgmr.msra.gmra.mrb[0].mxu0 %vm291_vm1, %v691_v15  ;;  %v286_v26 = vsel %vm274_vm2, %v284_v20, %v285_v22  ;;  %753 = vmatprep.mubr.msk.bf16.mxu1 %vm291_vm1, %v277_v25  ;;  %v435_v32 = vrot.slane %v846_v29, 2  ;;  %v436_v33 = vrot.slane %v847_v30, 2  ;;  %v506_v40 = vld [vmem:[#allocation2 + $0x10] sm:$0xff]  ;;  %v504_v43 = vld [vmem:[#allocation2] sm:$0xff]  ;;  %v507_v46 = vld [vmem:[#allocation2 + $0x18] sm:$0xff]  ;;  %p716_p10 = scmp.ne.s32.totalorder %s878_s12, 2 }
  0x28   : > { %764 = vmatpush3.bf16.msra.mxu0 %v449_v19  ;;  %754 = vmatmul.mubr.msk.bf16.vlgmr.msra.gmra.mrb[0].mxu1 %vm291_vm1, %v286_v26  ;;  %v426_v31 = vsel %vm423_vm3, %v424_v27, %v425_v28  ;;  %v505_v50 = vld [vmem:[#allocation2 + $0x8] sm:$0xff]  ;;  %v717_v57 = vld [vmem:[%s1044_s2] ss:$0 sm:$0xff] (!%p716_p10) }
  0x29   : > { %765 = vmatprep.mubr.msk.bf16.mxu0 %vm291_vm1, %v426_v31  ;;  %v437_v34 = vsel %vm423_vm3, %v435_v32, %v436_v33 }
  0x33   : > { %766 = vmatmul.mubr.msk.bf16.vlgmr.msra.gmra.mrb[0].mxu0 %vm291_vm1, %v437_v34 }
  0xfb   : > { %v755_v35 = vpop.f32.mrb[0].mxu1 }
  0xfc   : > { %v336_v36 = vpop.f32.mrb[1].mxu1 }
  0xfd   : > { %v756_v37 = vpop.f32.mrb[2].mxu1 }
  0xfe   : > { %v339_v38 = vpop.f32.mrb[3].mxu1 }
 0x106   : > { %v767_v39 = vpop.f32.mrb[0].mxu0 }
 0x107   : > { %v769_v41 = vadd.f32 %v767_v39, %v755_v35  ;;  %v485_v42 = vpop.f32.mrb[1].mxu0 }
 0x108   : > { %v770_v44 = vadd.f32 %v485_v42, %v336_v36  ;;  %v768_v45 = vpop.f32.mrb[2].mxu0  ;;  %519 = sbr.rel (%p716_p10) target bundleno = 285 (0x11d), region = 40 }
 0x109   : > { %v510_v47 = vadd.f32 %v769_v41, %v506_v40  ;;  %v771_v48 = vadd.f32 %v768_v45, %v756_v37  ;;  %v488_v49 = vpop.f32.mrb[3].mxu0 }
 0x10a   : > { %v508_v51 = vadd.f32 %v770_v44, %v504_v43  ;;  %v772_v52 = vadd.f32 %v488_v49, %v339_v38 }
 0x10b   : > { %514 = vst [vmem:[#allocation2 + $0x10] sm:$0xff] %v510_v47  ;;  %v511_v53 = vadd.f32 %v771_v48, %v507_v46 }
 0x10c   : > { %512 = vst [vmem:[#allocation2] sm:$0xff] %v508_v51  ;;  %v509_v54 = vadd.f32 %v772_v52, %v505_v50 }
 0x10d   : > { %515 = vst [vmem:[#allocation2 + $0x18] sm:$0xff] %v511_v53 }
 0x10e   : > { %513 = vst [vmem:[#allocation2 + $0x8] sm:$0xff] %v509_v54 }
 0x112   : > { %v522_v60 = vld [vmem:[#allocation2 + $0x10] sm:$0xff] }
 0x113   : > { %v520_v55 = vld [vmem:[#allocation2] sm:$0xff]  ;;  %v533_v62 = vadd.f32 %v717_v57, %v522_v60 }
 0x114   : > { %v531_v58 = vadd.f32 %v717_v57, %v520_v55  ;;  %v523_v61 = vld [vmem:[#allocation2 + $0x18] sm:$0xff] }
 0x115   : > { %v521_v56 = vld [vmem:[#allocation2 + $0x8] sm:$0xff]  ;;  %v534_v63 = vadd.f32 %v717_v57, %v523_v61  ;;  %v537_v2 = vmax.f32 %v533_v62, 0.0 }
 0x116   : > { %v532_v59 = vadd.f32 %v717_v57, %v521_v56  ;;  %v535_v0 = vmax.f32 %v531_v58, 0.0 }
 0x117   : > { %v538_v3 = vmax.f32 %v534_v63, 0.0 }
 0x118   : > { %v536_v1 = vmax.f32 %v532_v59, 0.0 }
 0x119   : > { %v739_v5 = vpack.c.bf16 %v538_v3, %v537_v2 }
 0x11a   : > { %v734_v4 = vpack.c.bf16 %v536_v1, %v535_v0 }
 0x11b   : > { %741 = vst [vmem:[%s982_s13 + $0x8] sm:$0xff] %v739_v5  }
 0x11c   : > { %735 = vst [vmem:[%s982_s13] sm:$0xff] %v734_v4  }
 0x11d PF: > { %s13_s18 = sadd.s32 1, %s902_s18   ;;  %s1046_s12 = smov %s890_s15 }
 0x11e   : > { %p10_p11 = scmp.ge.s32.totalorder %s13_s18, 50   ;;  %s1047_s13 = smov %s894_s16 }
 0x11f   : > { %s1048_s14 = smov %s898_s17  ;;  %s1049_s15 = smov %s1053_s19 }
 0x120   : > { %s1050_s16 = smov %s1057_s20  ;;  %s1051_s17 = smov %s1061_s21 }
 0x121   :  { %12 = sbr.rel (!%p10_p11) target bundleno = 4 (0x4), region = 75 }

// kernel: aspp_forward.9
= control target key start
LH: loop header
LB: loop body
LE: loop exit
PB: predicated region body
PF: predicated region fallthrough
CT: control target
= control target key end

     0   :  { %s3566_s27 = smov 0   ;;  %s3568_s28 = smov 0   ;;  %s4082_s0 = inlined_call_operand.vmem [shape: bf16[2,256,4], index: 0, kind: input, shape index: {}]   ;;  %s4083_s1 = inlined_call_operand.vmem [shape: bf16[2,256,128], index: 1, kind: input, shape index: {}]   ;;  %s4084_s2 = inlined_call_operand.vmem [shape: bf16[2,256,128], index: 2, kind: input, shape index: {}]   ;;  %s4085_s3 = inlined_call_operand.vmem [shape: bf16[2,256,128], index: 3, kind: input, shape index: {}]   ;;  %s4086_s4 = inlined_call_operand.vmem [shape: bf16[4,128], index: 4, kind: input, shape index: {}]   ;;  %s4087_s5 = inlined_call_operand.vmem [shape: f32[1,128], index: 5, kind: input, shape index: {}]   ;;  %s4088_s6 = inlined_call_operand.vmem [shape: bf16[4,128,128], index: 6, kind: input, shape index: {}]   ;;  %s4089_s7 = inlined_call_operand.vmem [shape: f32[2,1,128], index: 7, kind: input, shape index: {}]   ;;  %s4090_s8 = inlined_call_operand.vmem [shape: bf16[2,256,128], index: 8, kind: output, shape index: {}]  }
   0x1   :  { %s3570_s29 = smov 0  }
   0x2 LB: > { %s30_s30 = sadd.s32 1, %s3515_s28  ;;  %p2586_p0 = scmp.ge.s32.totalorder %s3519_s29, 1  ;;  %s3519_s29 = sphi %s3570_s29, %s18_s29   ;;  %s3515_s28 = sphi %s3568_s28, %s4100_s28   ;;  %s3511_s27 = sphi %s3566_s27, %s4099_s27  }
   0x3   : > { %p32_p1 = scmp.ge.s32.totalorder %s30_s30, 2  ;;  %p342_p2 = scmp.lt.s32.totalorder %s3519_s29, 3 }
   0x5   : > { %s4102_s30 = smov (%p32_p1, %s30_s30), 0  ;;  %p343_p3 = pnand %p2586_p0, %p342_p2 }
   0x7   : > { %346 = sbr.rel (%p343_p3) target bundleno = 611 (0x263), region = 52 }
   0xe   : > { %v500_v0 = vld [vmem:[%s4086_s4] sm:$0x3]  ;;  %vm637_vm0 = vcmask 1041408   ;;  %p415_p4 = scmp.lt.s32.totalorder %s3511_s27, 1  ;;  %v3419_v4 = vld [vmem:[%s4088_s6 + $0x8] sm:$0xff]   ;;  %vm588_vm1 = vcmask 31744  }
   0xf   : > { %v3417_v1 = vld [vmem:[%s4088_s6] sm:$0xff]   ;;  %3376 = vmatprep.subr.msk.bf16.mxu0 %vm637_vm0, %v500_v0  ;;  %v639_v2 = vsel %vm637_vm0, %v500_v0, 0  ;;  %v3420_v5 = vld [vmem:[%s4088_s6 + $0x48] sm:$0xff]   ;;  %v3421_v6 = vld [vmem:[%s4088_s6 + $0x10] sm:$0xff]  }
  0x10   : > { %v3418_v3 = vld [vmem:[%s4088_s6 + $0x40] sm:$0xff]   ;;  %3039 = vmatpush3.bf16.msra.mxu0 %v639_v2  ;;  %s4104_s27 = smov (!%p415_p4, %s3511_s27), 1  ;;  %3120 = vmatprep.subr.bf16.mxu1 %v3417_v1  ;;  %v3422_v14 = vld [vmem:[%s4088_s6 + $0x50] sm:$0xff]   ;;  %v3423_v15 = vld [vmem:[%s4088_s6 + $0x18] sm:$0xff]  }
  0x11   : > { %3121 = vmatpush3.bf16.msra.mxu1 %v3417_v1  ;;  %3072 = vmatprep.subr.bf16.mxu0 %v3418_v3  ;;  %s3599_s17 = sshll.u32 %s4104_s27, 7  ;;  %v3424_v16 = vld [vmem:[%s4088_s6 + $0x58] sm:$0xff]   ;;  %v3425_v17 = vld [vmem:[%s4088_s6 + $0x20] sm:$0xff]   ;;  %v3427_v20 = vld [vmem:[%s4088_s6 + $0x28] sm:$0xff]   ;;  %s456_s25 = scalar_lea.vmem %s4089_s7, %s4104_s27 }
  0x12   : > { %3122 = vmatprep.subr.bf16.mxu1 %v3419_v4  ;;  %s3605_s20 = scalar_lea.vmem %s4082_s0, %s3599_s17  ;;  %v3426_v18 = vld [vmem:[%s4088_s6 + $0x60] sm:$0xff]   ;;  %v3428_v29 = vld [vmem:[%s4088_s6 + $0x68] sm:$0xff]   ;;  %v3429_v30 = vld [vmem:[%s4088_s6 + $0x30] sm:$0xff]   ;;  %s3682_s14 = scalar_lea.vmem %s4083_s1, %s3599_s17 }
  0x13   : > { %v3401_v7 = vld [vmem:[%s3605_s20] sm:$0xff]   ;;  %v3402_v8 = vld [vmem:[%s3605_s20 + $0x8] sm:$0xff]   ;;  %v3403_v9 = vld [vmem:[%s3605_s20 + $0x10] sm:$0xff]   ;;  %s3762_s21 = scalar_lea.vmem %s4084_s2, %s3599_s17  ;;  %s3771_s23 = scalar_lea.vmem %s4085_s3, %s3599_s17 }
  0x14   : > { %3040 = vmatprep.mubr.msk.bf16.mxu0 %vm588_vm1, %v3401_v7  ;;  %v3404_v10 = vld [vmem:[%s3605_s20 + $0x18] sm:$0xff]   ;;  %v3405_v11 = vld [vmem:[%s3605_s20 + $0x20] sm:$0xff]   ;;  %v3406_v12 = vld [vmem:[%s3605_s20 + $0x28] sm:$0xff]  }
  0x15   : > { %3123 = vmatpush3.bf16.msra.mxu1 %v3419_v4  ;;  %3041 = vmatmul.mubr.msk.bf16.vlgmr.msra.gmra.mrb[0].mxu0 %vm588_vm1, %v3402_v8  ;;  %v3407_v13 = vld [vmem:[%s3605_s20 + $0x30] sm:$0xff]   ;;  %v3408_v19 = vld [vmem:[%s3605_s20 + $0x38] sm:$0xff]   ;;  %v3409_v21 = vld [vmem:[%s3605_s20 + $0x40] sm:$0xff]  }
  0x16   : > { %3124 = vmatprep.subr.bf16.mxu1 %v3421_v6  ;;  %3044 = vmatprep.mubr.msk.bf16.mxu0 %vm588_vm1, %v3403_v9  ;;  %v3410_v22 = vld [vmem:[%s3605_s20 + $0x48] sm:$0xff]   ;;  %v3411_v23 = vld [vmem:[%s3605_s20 + $0x50] sm:$0xff]   ;;  %v3412_v24 = vld [vmem:[%s3605_s20 + $0x58] sm:$0xff]  }
  0x17   : > { %3073 = vmatpush3.bf16.msra.mxu0 %v3418_v3  ;;  %v3413_v25 = vld [vmem:[%s3605_s20 + $0x60] sm:$0xff]   ;;  %v3414_v26 = vld [vmem:[%s3605_s20 + $0x68] sm:$0xff]   ;;  %v3415_v27 = vld [vmem:[%s3605_s20 + $0x70] sm:$0xff]  }
  0x18   : > { %3074 = vmatprep.subr.bf16.mxu0 %v3420_v5  ;;  %v3416_v28 = vld [vmem:[%s3605_s20 + $0x78] sm:$0xff]   ;;  %v3430_v31 = vld [vmem:[%s4088_s6 + $0x70] sm:$0xff]   ;;  %v3434_v34 = vld [vmem:[%s3682_s14] sm:$0xff]   ;;  %s3988_s20 = scalar_lea.vmem %s4090_s8, %s3599_s17 }
  0x19   : > { %3125 = vmatpush3.bf16.msra.mxu1 %v3421_v6  ;;  %v3431_v32 = vld [vmem:[%s4088_s6 + $0x38] sm:$0xff]   ;;  %v3435_v35 = vld [vmem:[%s3682_s14 + $0x8] sm:$0xff]   ;;  %v3689_v36 = vld [vmem:[%s4088_s6 + $0x80] sm:$0xff]  }
  0x1a   : > { %3126 = vmatprep.subr.bf16.mxu1 %v3423_v15  ;;  %v3432_v33 = vld [vmem:[%s4088_s6 + $0x78] sm:$0xff]   ;;  %v3437_v37 = vld [vmem:[%s3682_s14 + $0x10] sm:$0xff]   ;;  %v3440_v39 = vld [vmem:[%s3682_s14 + $0x20] sm:$0xff]  }
  0x1b   : > { %3075 = vmatpush3.bf16.msra.mxu0 %v3420_v5  ;;  %v3438_v38 = vld [vmem:[%s3682_s14 + $0x18] sm:$0xff]   ;;  %v3441_v40 = vld [vmem:[%s3682_s14 + $0x28] sm:$0xff]   ;;  %v3443_v41 = vld [vmem:[%s3682_s14 + $0x30] sm:$0xff]  }
  0x1c   : > { %3076 = vmatprep.subr.bf16.mxu0 %v3422_v14  ;;  %v3444_v42 = vld [vmem:[%s3682_s14 + $0x38] sm:$0xff]   ;;  %v3446_v43 = vld [vmem:[%s3682_s14 + $0x40] sm:$0xff]   ;;  %v3447_v44 = vld [vmem:[%s3682_s14 + $0x48] sm:$0xff]  }
  0x1d   : > { %3045 = vmatmul.mubr.msk.bf16.gmra.mrb[4].mxu0 %vm588_vm1, %v3404_v10  ;;  %3127 = vmatpush3.bf16.msra.mxu1 %v3423_v15  ;;  %v3703_v45 = vld [vmem:[%s4088_s6 + $0xc0] sm:$0xff]   ;;  %v3710_v46 = vld [vmem:[%s4088_s6 + $0xc8] sm:$0xff]   ;;  %v3451_v47 = vld [vmem:[%s3682_s14 + $0x50] sm:$0xff]  }
  0x1e   : > { %3048 = vmatprep.mubr.msk.bf16.mxu0 %vm588_vm1, %v3405_v11  ;;  %3128 = vmatprep.subr.bf16.mxu1 %v3425_v17  ;;  %v3452_v48 = vld [vmem:[%s3682_s14 + $0x58] sm:$0xff]   ;;  %v3719_v49 = vld [vmem:[%s4088_s6 + $0xd0] sm:$0xff]   ;;  %v3456_v51 = vld [vmem:[%s3682_s14 + $0x60] sm:$0xff]  }
  0x1f   : > { %3077 = vmatpush3.bf16.msra.mxu0 %v3422_v14  ;;  %v3726_v50 = vld [vmem:[%s4088_s6 + $0xd8] sm:$0xff]   ;;  %v3457_v52 = vld [vmem:[%s3682_s14 + $0x68] sm:$0xff]   ;;  %v3735_v53 = vld [vmem:[%s4088_s6 + $0xe0] sm:$0xff]  }
  0x20   : > { %3078 = vmatprep.subr.bf16.mxu0 %v3424_v16  ;;  %v3742_v54 = vld [vmem:[%s4088_s6 + $0xe8] sm:$0xff]   ;;  %v3461_v55 = vld [vmem:[%s3682_s14 + $0x70] sm:$0xff]   ;;  %v3462_v56 = vld [vmem:[%s3682_s14 + $0x78] sm:$0xff]  }
  0x21   : > { %3129 = vmatpush3.bf16.msra.mxu1 %v3425_v17  ;;  %v3751_v57 = vld [vmem:[%s4088_s6 + $0xf0] sm:$0xff]   ;;  %v3756_v58 = vld [vmem:[%s4088_s6 + $0xf8] sm:$0xff]   ;;  %v3467_v59 = vld [vmem:[%s3771_s23] sm:$0xff]  }
  0x22   : > { %3130 = vmatprep.subr.bf16.mxu1 %v3427_v20  ;;  %v3468_v60 = vld [vmem:[%s3771_s23 + $0x8] sm:$0xff]   ;;  %v3471_v61 = vld [vmem:[%s3771_s23 + $0x10] sm:$0xff]   ;;  %v3472_v62 = vld [vmem:[%s3771_s23 + $0x18] sm:$0xff]  }
  0x23   : > { %3079 = vmatpush3.bf16.msra.mxu0 %v3424_v16  ;;  %v3475_v63 = vld [vmem:[%s3771_s23 + $0x20] sm:$0xff]   ;;  %v3476_v0 = vld [vmem:[%s3771_s23 + $0x28] sm:$0xff]   ;;  %v3479_v1 = vld [vmem:[%s3771_s23 + $0x30] sm:$0xff]  }
  0x24   : > { %3080 = vmatprep.subr.bf16.mxu0 %v3426_v18  ;;  %v3480_v2 = vld [vmem:[%s3771_s23 + $0x38] sm:$0xff]   ;;  %v3483_v3 = vld [vmem:[%s3771_s23 + $0x40] sm:$0xff]   ;;  %v3484_v4 = vld [vmem:[%s3771_s23 + $0x48] sm:$0xff]  }
  0x25   : > { %3049 = vmatmul.mubr.msk.bf16.gmra.mrb[8].mxu0 %vm588_vm1, %v3406_v12  ;;  %3131 = vmatpush3.bf16.msra.mxu1 %v3427_v20  ;;  %v3787_v5 = vld [vmem:[%s4087_s5] ss:$0 sm:$0xff] }
  0x26   : > { %3052 = vmatprep.mubr.msk.bf16.mxu0 %vm588_vm1, %v3407_v13  ;;  %3132 = vmatprep.subr.bf16.mxu1 %v3429_v30 }
  0x27   : > { %3081 = vmatpush3.bf16.msra.mxu0 %v3426_v18 }
  0x28   : > { %3082 = vmatprep.subr.bf16.mxu0 %v3428_v29 }
  0x29   : > { %3133 = vmatpush3.bf16.msra.mxu1 %v3429_v30 }
  0x2a   : > { %3134 = vmatprep.subr.bf16.mxu1 %v3431_v32 }
  0x2b   : > { %3083 = vmatpush3.bf16.msra.mxu0 %v3428_v29 }
  0x2c   : > { %3084 = vmatprep.subr.bf16.mxu0 %v3430_v31 }
  0x2d   : > { %3053 = vmatmul.mubr.msk.bf16.gmra.mrb[12].mxu0 %vm588_vm1, %v3408_v19  ;;  %3135 = vmatpush3.bf16.msra.mxu1 %v3431_v32 }
  0x2e   : > { %3056 = vmatprep.mubr.msk.bf16.mxu0 %vm588_vm1, %v3409_v21  ;;  %3168 = vmatprep.subr.bf16.mxu1 %v3689_v36 }
  0x2f   : > { %3085 = vmatpush3.bf16.msra.mxu0 %v3430_v31  ;;  %v3439_v31 = vld [vmem:[%s4088_s6 + $0x90] sm:$0xff]  }
  0x30   : > { %3086 = vmatprep.subr.bf16.mxu0 %v3432_v33 }
  0x33   : > { %3087 = vmatpush3.bf16.msra.mxu0 %v3432_v33 }
  0x34   : > { %3216 = vmatprep.subr.bf16.mxu0 %v3703_v45 }
  0x35   : > { %3057 = vmatmul.mubr.msk.bf16.gmra.mrb[16].mxu0 %vm588_vm1, %v3410_v22 }
  0x36   : > { %3060 = vmatprep.mubr.msk.bf16.mxu0 %vm588_vm1, %v3411_v23  ;;  %v3436_v23 = vld [vmem:[%s4088_s6 + $0x88] sm:$0xff]  }
  0x3d   : > { %3061 = vmatmul.mubr.msk.bf16.gmra.mrb[20].mxu0 %vm588_vm1, %v3412_v24 }
  0x3e   : > { %3064 = vmatprep.mubr.msk.bf16.mxu0 %vm588_vm1, %v3413_v25 }
  0x45   : > { %3065 = vmatmul.mubr.msk.bf16.gmra.mrb[24].mxu0 %vm588_vm1, %v3414_v26 }
  0x46   : > { %3068 = vmatprep.mubr.msk.bf16.mxu0 %vm588_vm1, %v3415_v27 }
  0x4d   : > { %3069 = vmatmul.mubr.msk.bf16.gmra.mrb[28].mxu0 %vm588_vm1, %v3416_v28 }
  0x4e   : > { %3088 = vmatprep.mubr.bf16.mxu0 %v3434_v34 }
  0x55   : > { %3089 = vmatmul.mubr.bf16.vlgmr.msra.gmra.mrb[32].mxu0 %v3435_v35 }
  0x56   : > { %3092 = vmatprep.mubr.bf16.mxu0 %v3437_v37  ;;  %3217 = vmatpush3.bf16.msra.mxu0 %v3703_v45 }
  0x57   : > { %3218 = vmatprep.subr.bf16.mxu0 %v3710_v46 }
  0x5a   : > { %3219 = vmatpush3.bf16.msra.mxu0 %v3710_v46 }
  0x5b   : > { %3220 = vmatprep.subr.bf16.mxu0 %v3719_v49 }
  0x5d   : > { %3093 = vmatmul.mubr.bf16.gmra.mrb[36].mxu0 %v3438_v38 }
  0x5e   : > { %3096 = vmatprep.mubr.bf16.mxu0 %v3440_v39  ;;  %3221 = vmatpush3.bf16.msra.mxu0 %v3719_v49 }
  0x5f   : > { %3222 = vmatprep.subr.bf16.mxu0 %v3726_v50 }
  0x62   : > { %3223 = vmatpush3.bf16.msra.mxu0 %v3726_v50 }
  0x63   : > { %3224 = vmatprep.subr.bf16.mxu0 %v3735_v53 }
  0x65   : > { %3097 = vmatmul.mubr.bf16.gmra.mrb[40].mxu0 %v3441_v40 }
  0x66   : > { %3100 = vmatprep.mubr.bf16.mxu0 %v3443_v41  ;;  %3225 = vmatpush3.bf16.msra.mxu0 %v3735_v53 }
  0x67   : > { %3226 = vmatprep.subr.bf16.mxu0 %v3742_v54 }
  0x6a   : > { %3227 = vmatpush3.bf16.msra.mxu0 %v3742_v54 }
  0x6b   : > { %3228 = vmatprep.subr.bf16.mxu0 %v3751_v57 }
  0x6d   : > { %3101 = vmatmul.mubr.bf16.gmra.mrb[44].mxu0 %v3444_v42 }
  0x6e   : > { %3104 = vmatprep.mubr.bf16.mxu0 %v3446_v43  ;;  %3229 = vmatpush3.bf16.msra.mxu0 %v3751_v57 }
  0x6f   : > { %3230 = vmatprep.subr.bf16.mxu0 %v3756_v58 }
  0x72   : > { %3231 = vmatpush3.bf16.msra.mxu0 %v3756_v58 }
  0x75   : > { %3105 = vmatmul.mubr.bf16.gmra.mrb[48].mxu0 %v3447_v44 }
  0x76   : > { %3108 = vmatprep.mubr.bf16.mxu0 %v3451_v47 }
  0x7d   : > { %3109 = vmatmul.mubr.bf16.gmra.mrb[52].mxu0 %v3452_v48 }
  0x7e   : > { %3112 = vmatprep.mubr.bf16.mxu0 %v3456_v51  ;;  %v3445_v51 = vld [vmem:[%s4088_s6 + $0xa0] sm:$0xff]  }
  0x85   : > { %3113 = vmatmul.mubr.bf16.gmra.mrb[56].mxu0 %v3457_v52 }
  0x86   : > { %3116 = vmatprep.mubr.bf16.mxu0 %v3461_v55 }
  0x8d   : > { %3117 = vmatmul.mubr.bf16.gmra.mrb[60].mxu0 %v3462_v56 }
  0x8e   : > { %3232 = vmatprep.mubr.bf16.mxu0 %v3467_v59 }
  0x95   : > { %3233 = vmatmul.mubr.bf16.vlgmr.msra.gmra.mrb[64].mxu0 %v3468_v60 }
  0x96   : > { %3236 = vmatprep.mubr.bf16.mxu0 %v3471_v61 }
  0x9d   : > { %3237 = vmatmul.mubr.bf16.gmra.mrb[68].mxu0 %v3472_v62 }
  0x9e   : > { %3240 = vmatprep.mubr.bf16.mxu0 %v3475_v63  ;;  %v3450_v63 = vld [vmem:[%s4088_s6 + $0xa8] sm:$0xff]  }
  0xa5   : > { %3241 = vmatmul.mubr.bf16.gmra.mrb[72].mxu0 %v3476_v0 }
  0xa6   : > { %3244 = vmatprep.mubr.bf16.mxu0 %v3479_v1 }
  0xad   : > { %3245 = vmatmul.mubr.bf16.gmra.mrb[76].mxu0 %v3480_v2 }
  0xae   : > { %3248 = vmatprep.mubr.bf16.mxu0 %v3483_v3 }
  0xb5   : > { %3249 = vmatmul.mubr.bf16.gmra.mrb[80].mxu0 %v3484_v4 }
  0xe8   : > { %v3042_v6 = vpop.f32.mrb[0].mxu0 }
  0xe9   : > { %v684_v7 = vadd.f32 %v3042_v6, %v3787_v5  ;;  %v675_v8 = vpop.f32.mrb[1].mxu0 }
  0xea   : > { %v676_v9 = vadd.f32 %v3787_v5, %v675_v8  ;;  %v3043_v10 = vpop.f32.mrb[2].mxu0  ;;  %v3455_v8 = vld [vmem:[%s4088_s6 + $0xb0] sm:$0xff]  }
  0xeb   : > { %v687_v11 = vadd.f32 %v3043_v10, %v3787_v5  ;;  %v678_v12 = vpop.f32.mrb[3].mxu0  ;;  %v804_v14 = vmax.f32 %v684_v7, 0.0 }
  0xec   : > { %v679_v13 = vadd.f32 %v3787_v5, %v678_v12  ;;  %v802_v16 = vmax.f32 %v676_v9, 0.0 }
  0xed   : > { %v805_v15 = vmax.f32 %v687_v11, 0.0 }
  0xee   : > { %v803_v17 = vmax.f32 %v679_v13, 0.0 }
  0xef   : > { %v835_v18 = vpack.c.bf16 %v805_v15, %v804_v14 }
  0xf0   : > { %v3046_v19 = vpop.f32.mrb[4].mxu0  ;;  %v834_v20 = vpack.c.bf16 %v803_v17, %v802_v16  ;;  %v3460_v16 = vld [vmem:[%s4088_s6 + $0xb8] sm:$0xff]  }
  0xf1   : > { %v700_v21 = vadd.f32 %v3046_v19, %v3787_v5  ;;  %v691_v22 = vpop.f32.mrb[5].mxu0 }
  0xf2   : > { %v692_v24 = vadd.f32 %v3787_v5, %v691_v22  ;;  %v3047_v25 = vpop.f32.mrb[6].mxu0  ;;  %3136 = vmatprep.mubr.bf16.mxu1 %v834_v20 }
  0xf3   : > { %v703_v26 = vadd.f32 %v3047_v25, %v3787_v5  ;;  %v694_v27 = vpop.f32.mrb[7].mxu0  ;;  %3137 = vmatmul.mubr.bf16.vlgmr.msra.gmra.mrb[0].mxu1 %v835_v18  ;;  %v808_v29 = vmax.f32 %v700_v21, 0.0 }
  0xf4   : > { %v695_v28 = vadd.f32 %v3787_v5, %v694_v27  ;;  %3169 = vmatpush3.bf16.msra.mxu1 %v3689_v36  ;;  %v806_v32 = vmax.f32 %v692_v24, 0.0  ;;  %v3442_v36 = vld [vmem:[%s4088_s6 + $0x98] sm:$0xff]  }
  0xf5   : > { %v809_v30 = vmax.f32 %v703_v26, 0.0  ;;  %3170 = vmatprep.subr.bf16.mxu1 %v3436_v23 }
  0xf6   : > { %v807_v33 = vmax.f32 %v695_v28, 0.0 }
  0xf7   : > { %v837_v34 = vpack.c.bf16 %v809_v30, %v808_v29 }
  0xf8   : > { %v836_v35 = vpack.c.bf16 %v807_v33, %v806_v32  ;;  %v3050_v37 = vpop.f32.mrb[8].mxu0  ;;  %3171 = vmatpush3.bf16.msra.mxu1 %v3436_v23 }
  0xf9   : > { %v716_v38 = vadd.f32 %v3050_v37, %v3787_v5  ;;  %v707_v39 = vpop.f32.mrb[9].mxu0  ;;  %3172 = vmatprep.subr.bf16.mxu1 %v3439_v31 }
  0xfa   : > { %v708_v40 = vadd.f32 %v3787_v5, %v707_v39  ;;  %v3051_v41 = vpop.f32.mrb[10].mxu0  ;;  %3140 = vmatprep.mubr.bf16.mxu1 %v836_v35 }
  0xfb   : > { %v719_v42 = vadd.f32 %v3051_v41, %v3787_v5  ;;  %v710_v43 = vpop.f32.mrb[11].mxu0  ;;  %3141 = vmatmul.mubr.bf16.gmra.mrb[4].mxu1 %v837_v34  ;;  %v812_v47 = vmax.f32 %v716_v38, 0.0 }
  0xfc   : > { %v711_v44 = vadd.f32 %v3787_v5, %v710_v43  ;;  %3173 = vmatpush3.bf16.msra.mxu1 %v3439_v31  ;;  %v810_v52 = vmax.f32 %v708_v40, 0.0 }
  0xfd   : > { %v813_v48 = vmax.f32 %v719_v42, 0.0  ;;  %3174 = vmatprep.subr.bf16.mxu1 %v3442_v36 }
  0xfe   : > { %v811_v55 = vmax.f32 %v711_v44, 0.0 }
  0xff   : > { %v839_v56 = vpack.c.bf16 %v813_v48, %v812_v47 }
 0x100   : > { %v838_v59 = vpack.c.bf16 %v811_v55, %v810_v52  ;;  %v3054_v60 = vpop.f32.mrb[12].mxu0  ;;  %3175 = vmatpush3.bf16.msra.mxu1 %v3442_v36 }
 0x101   : > { %v732_v61 = vadd.f32 %v3054_v60, %v3787_v5  ;;  %v723_v62 = vpop.f32.mrb[13].mxu0  ;;  %3176 = vmatprep.subr.bf16.mxu1 %v3445_v51 }
 0x102   : > { %v724_v0 = vadd.f32 %v3787_v5, %v723_v62  ;;  %v3055_v1 = vpop.f32.mrb[14].mxu0  ;;  %3144 = vmatprep.mubr.bf16.mxu1 %v838_v59 }
 0x103   : > { %v735_v2 = vadd.f32 %v3055_v1, %v3787_v5  ;;  %v726_v3 = vpop.f32.mrb[15].mxu0  ;;  %3145 = vmatmul.mubr.bf16.gmra.mrb[8].mxu1 %v839_v56  ;;  %v816_v6 = vmax.f32 %v732_v61, 0.0 }
 0x104   : > { %v727_v4 = vadd.f32 %v3787_v5, %v726_v3  ;;  %3177 = vmatpush3.bf16.msra.mxu1 %v3445_v51  ;;  %v814_v9 = vmax.f32 %v724_v0, 0.0 }
 0x105   : > { %v817_v7 = vmax.f32 %v735_v2, 0.0  ;;  %3178 = vmatprep.subr.bf16.mxu1 %v3450_v63 }
 0x106   : > { %v815_v10 = vmax.f32 %v727_v4, 0.0 }
 0x107   : > { %v841_v11 = vpack.c.bf16 %v817_v7, %v816_v6 }
 0x108   : > { %v840_v12 = vpack.c.bf16 %v815_v10, %v814_v9  ;;  %v3058_v13 = vpop.f32.mrb[16].mxu0  ;;  %3179 = vmatpush3.bf16.msra.mxu1 %v3450_v63 }
 0x109   : > { %v748_v14 = vadd.f32 %v3058_v13, %v3787_v5  ;;  %v739_v15 = vpop.f32.mrb[17].mxu0  ;;  %3180 = vmatprep.subr.bf16.mxu1 %v3455_v8 }
 0x10a   : > { %v740_v17 = vadd.f32 %v3787_v5, %v739_v15  ;;  %v3059_v18 = vpop.f32.mrb[18].mxu0  ;;  %3148 = vmatprep.mubr.bf16.mxu1 %v840_v12  ;;  %v3465_v15 = vld [vmem:[%s3762_s21] sm:$0xff]  }
 0x10b   : > { %v751_v19 = vadd.f32 %v3059_v18, %v3787_v5  ;;  %v742_v20 = vpop.f32.mrb[19].mxu0  ;;  %3149 = vmatmul.mubr.bf16.gmra.mrb[12].mxu1 %v841_v11  ;;  %v820_v22 = vmax.f32 %v748_v14, 0.0  ;;  %v3473_v18 = vld [vmem:[%s3762_s21 + $0x20] sm:$0xff]  }
 0x10c   : > { %v743_v21 = vadd.f32 %v3787_v5, %v742_v20  ;;  %3181 = vmatpush3.bf16.msra.mxu1 %v3455_v8  ;;  %v818_v24 = vmax.f32 %v740_v17, 0.0  ;;  %v3469_v17 = vld [vmem:[%s3762_s21 + $0x10] sm:$0xff]  }
 0x10d   : > { %v821_v23 = vmax.f32 %v751_v19, 0.0  ;;  %3182 = vmatprep.subr.bf16.mxu1 %v3460_v16  ;;  %v3474_v19 = vld [vmem:[%s3762_s21 + $0x28] sm:$0xff]   ;;  %v3477_v20 = vld [vmem:[%s3762_s21 + $0x30] sm:$0xff]  }
 0x10e   : > { %v819_v25 = vmax.f32 %v743_v21, 0.0 }
 0x10f   : > { %v843_v26 = vpack.c.bf16 %v821_v23, %v820_v22 }
 0x110   : > { %v842_v27 = vpack.c.bf16 %v819_v25, %v818_v24  ;;  %v3062_v28 = vpop.f32.mrb[20].mxu0  ;;  %3183 = vmatpush3.bf16.msra.mxu1 %v3460_v16  ;;  %v3466_v16 = vld [vmem:[%s3762_s21 + $0x8] sm:$0xff]  }
 0x111   : > { %v764_v29 = vadd.f32 %v3062_v28, %v3787_v5  ;;  %v755_v30 = vpop.f32.mrb[21].mxu0  ;;  %3264 = vmatprep.subr.bf16.mxu1 %v3703_v45 }
 0x112   : > { %v756_v31 = vadd.f32 %v3787_v5, %v755_v30  ;;  %v3063_v32 = vpop.f32.mrb[22].mxu0  ;;  %3152 = vmatprep.mubr.bf16.mxu1 %v842_v27  ;;  %v3486_v27 = vld [vmem:[%s3762_s21 + $0x58] sm:$0xff]  }
 0x113   : > { %v767_v33 = vadd.f32 %v3063_v32, %v3787_v5  ;;  %v758_v34 = vpop.f32.mrb[23].mxu0  ;;  %3153 = vmatmul.mubr.bf16.gmra.mrb[16].mxu1 %v843_v26  ;;  %v824_v37 = vmax.f32 %v764_v29, 0.0  ;;  %v3489_v32 = vld [vmem:[%s3762_s21 + $0x70] sm:$0xff]  }
 0x114   : > { %v759_v35 = vadd.f32 %v3787_v5, %v758_v34  ;;  %v822_v39 = vmax.f32 %v756_v31, 0.0  ;;  %v3488_v31 = vld [vmem:[%s3762_s21 + $0x68] sm:$0xff]  }
 0x115   : > { %v825_v38 = vmax.f32 %v767_v33, 0.0 }
 0x116   : > { %v823_v36 = vmax.f32 %v759_v35, 0.0 }
 0x117   : > { %v845_v40 = vpack.c.bf16 %v825_v38, %v824_v37  ;;  %v3490_v38 = vld [vmem:[%s3762_s21 + $0x78] sm:$0xff]  }
 0x118   : > { %v844_v41 = vpack.c.bf16 %v823_v36, %v822_v39  ;;  %v3066_v42 = vpop.f32.mrb[24].mxu0  ;;  %v3491_v39 = vld [vmem:[%s3771_s23 + $0x50] sm:$0xff]  }
 0x119   : > { %v780_v43 = vadd.f32 %v3066_v42, %v3787_v5  ;;  %v771_v44 = vpop.f32.mrb[25].mxu0 }
 0x11a   : > { %v772_v47 = vadd.f32 %v3787_v5, %v771_v44  ;;  %v3067_v48 = vpop.f32.mrb[26].mxu0  ;;  %3156 = vmatprep.mubr.bf16.mxu1 %v844_v41  ;;  %v3493_v44 = vld [vmem:[%s3771_s23 + $0x60] sm:$0xff]  }
 0x11b   : > { %v783_v51 = vadd.f32 %v3067_v48, %v3787_v5  ;;  %v774_v52 = vpop.f32.mrb[27].mxu0  ;;  %3157 = vmatmul.mubr.bf16.gmra.mrb[20].mxu1 %v845_v40  ;;  %v828_v56 = vmax.f32 %v780_v43, 0.0  ;;  %v3492_v43 = vld [vmem:[%s3771_s23 + $0x58] sm:$0xff]  }
 0x11c   : > { %v775_v55 = vadd.f32 %v3787_v5, %v774_v52  ;;  %v826_v60 = vmax.f32 %v772_v47, 0.0 }
 0x11d   : > { %v829_v59 = vmax.f32 %v783_v51, 0.0 }
 0x11e   : > { %v827_v61 = vmax.f32 %v775_v55, 0.0  ;;  %v3494_v55 = vld [vmem:[%s3771_s23 + $0x68] sm:$0xff]  }
 0x11f   : > { %v847_v62 = vpack.c.bf16 %v829_v59, %v828_v56  ;;  %v3495_v56 = vld [vmem:[%s3771_s23 + $0x70] sm:$0xff]  }
 0x120   : > { %v846_v63 = vpack.c.bf16 %v827_v61, %v826_v60  ;;  %v3070_v0 = vpop.f32.mrb[28].mxu0 }
 0x121   : > { %v796_v1 = vadd.f32 %v3070_v0, %v3787_v5  ;;  %v787_v2 = vpop.f32.mrb[29].mxu0 }
 0x122   : > { %v788_v3 = vadd.f32 %v3787_v5, %v787_v2  ;;  %v3071_v4 = vpop.f32.mrb[30].mxu0  ;;  %3160 = vmatprep.mubr.bf16.mxu1 %v846_v63  ;;  %v3496_v63 = vld [vmem:[%s3771_s23 + $0x78] sm:$0xff]  }
 0x123   : > { %v799_v6 = vadd.f32 %v3071_v4, %v3787_v5  ;;  %v790_v7 = vpop.f32.mrb[31].mxu0  ;;  %3161 = vmatmul.mubr.bf16.gmra.mrb[24].mxu1 %v847_v62  ;;  %v832_v9 = vmax.f32 %v796_v1, 0.0 }
 0x124   : > { %v791_v8 = vadd.f32 %v3787_v5, %v790_v7  ;;  %v830_v11 = vmax.f32 %v788_v3, 0.0  ;;  %v3470_v5 = vld [vmem:[%s3762_s21 + $0x18] sm:$0xff]  }
 0x125   : > { %v833_v10 = vmax.f32 %v799_v6, 0.0 }
 0x126   : > { %v831_v12 = vmax.f32 %v791_v8, 0.0 }
 0x127   : > { %v849_v13 = vpack.c.bf16 %v833_v10, %v832_v9 }
 0x128   : > { %v848_v14 = vpack.c.bf16 %v831_v12, %v830_v11 }
 0x12a   : > { %3164 = vmatprep.mubr.bf16.mxu1 %v848_v14 }
 0x12b   : > { %3165 = vmatmul.mubr.bf16.gmra.mrb[28].mxu1 %v849_v13 }
 0x12c   : > { %3184 = vmatprep.mubr.bf16.mxu1 %v3465_v15 }
 0x133   : > { %3185 = vmatmul.mubr.bf16.vlgmr.msra.gmra.mrb[0].mxu1 %v3466_v16 }
 0x134   : > { %3272 = vmatpush3.bf16.msra.mxu1 %v3703_v45  ;;  %3188 = vmatprep.mubr.bf16.mxu1 %v3469_v17  ;;  %v3478_v45 = vld [vmem:[%s3762_s21 + $0x38] sm:$0xff]  }
 0x135   : > { %3265 = vmatprep.subr.bf16.mxu1 %v3710_v46 }
 0x138   : > { %3273 = vmatpush3.bf16.msra.mxu1 %v3710_v46  ;;  %v3481_v46 = vld [vmem:[%s3762_s21 + $0x40] sm:$0xff]  }
 0x139   : > { %3266 = vmatprep.subr.bf16.mxu1 %v3719_v49 }
 0x13b   : > { %3189 = vmatmul.mubr.bf16.gmra.mrb[4].mxu1 %v3470_v5 }
 0x13c   : > { %3192 = vmatprep.mubr.bf16.mxu1 %v3473_v18  ;;  %3274 = vmatpush3.bf16.msra.mxu1 %v3719_v49  ;;  %v3864_v49 = vpop.f32.mrb[32].mxu0 }
 0x13d   : > { %3267 = vmatprep.subr.bf16.mxu1 %v3726_v50  ;;  %v3867_v21 = vpop.f32.mrb[33].mxu0 }
 0x140   : > { %3275 = vmatpush3.bf16.msra.mxu1 %v3726_v50  ;;  %v3869_v50 = vpop.f32.mrb[34].mxu0 }
 0x141   : > { %3268 = vmatprep.subr.bf16.mxu1 %v3735_v53  ;;  %v3871_v22 = vpop.f32.mrb[35].mxu0 }
 0x142   : > { %v3878_v23 = vpop.f32.mrb[36].mxu0 }
 0x143   : > { %3193 = vmatmul.mubr.bf16.gmra.mrb[8].mxu1 %v3474_v19  ;;  %v3880_v24 = vpop.f32.mrb[37].mxu0 }
 0x144   : > { %3196 = vmatprep.mubr.bf16.mxu1 %v3477_v20  ;;  %3276 = vmatpush3.bf16.msra.mxu1 %v3735_v53  ;;  %v3482_v53 = vld [vmem:[%s3762_s21 + $0x48] sm:$0xff]   ;;  %v3882_v25 = vpop.f32.mrb[38].mxu0 }
 0x145   : > { %3269 = vmatprep.subr.bf16.mxu1 %v3742_v54  ;;  %v3884_v26 = vpop.f32.mrb[39].mxu0 }
 0x146   : > { %v3888_v28 = vpop.f32.mrb[40].mxu0 }
 0x147   : > { %v3890_v29 = vpop.f32.mrb[41].mxu0 }
 0x148   : > { %3277 = vmatpush3.bf16.msra.mxu1 %v3742_v54  ;;  %v3485_v54 = vld [vmem:[%s3762_s21 + $0x50] sm:$0xff]  }
 0x149   : > { %3270 = vmatprep.subr.bf16.mxu1 %v3751_v57 }
 0x14b   : > { %3197 = vmatmul.mubr.bf16.gmra.mrb[12].mxu1 %v3478_v45 }
 0x14c   : > { %3200 = vmatprep.mubr.bf16.mxu1 %v3481_v46  ;;  %3278 = vmatpush3.bf16.msra.mxu1 %v3751_v57  ;;  %v3487_v57 = vld [vmem:[%s3762_s21 + $0x60] sm:$0xff]  }
 0x14d   : > { %3271 = vmatprep.subr.bf16.mxu1 %v3756_v58 }
 0x150   : > { %3279 = vmatpush3.bf16.msra.mxu1 %v3756_v58  ;;  %v3892_v58 = vpop.f32.mrb[42].mxu0 }
 0x151   : > { %v3894_v30 = vpop.f32.mrb[43].mxu0 }
 0x152   : > { %v3898_v33 = vpop.f32.mrb[44].mxu0 }
 0x153   : > { %3201 = vmatmul.mubr.bf16.gmra.mrb[16].mxu1 %v3482_v53  ;;  %v3900_v34 = vpop.f32.mrb[45].mxu0 }
 0x154   : > { %3204 = vmatprep.mubr.bf16.mxu1 %v3485_v54  ;;  %v3902_v35 = vpop.f32.mrb[46].mxu0 }
 0x155   : > { %v3904_v37 = vpop.f32.mrb[47].mxu0 }
 0x156   : > { %v3908_v36 = vpop.f32.mrb[48].mxu0 }
 0x157   : > { %v3910_v40 = vpop.f32.mrb[49].mxu0 }
 0x158   : > { %v3912_v41 = vpop.f32.mrb[50].mxu0 }
 0x159   : > { %v3914_v42 = vpop.f32.mrb[51].mxu0 }
 0x15a   : > { %v3918_v47 = vpop.f32.mrb[52].mxu0 }
 0x15b   : > { %3205 = vmatmul.mubr.bf16.gmra.mrb[20].mxu1 %v3486_v27  ;;  %v3920_v48 = vpop.f32.mrb[53].mxu0 }
 0x15c   : > { %3208 = vmatprep.mubr.bf16.mxu1 %v3487_v57  ;;  %v3922_v51 = vpop.f32.mrb[54].mxu0 }
 0x15d   : > { %v3924_v52 = vpop.f32.mrb[55].mxu0 }
 0x15e   : > { %v3928_v59 = vpop.f32.mrb[56].mxu0 }
 0x15f   : > { %v3930_v60 = vpop.f32.mrb[57].mxu0 }
 0x160   : > { %v3932_v61 = vpop.f32.mrb[58].mxu0 }
 0x161   : > { %v3934_v62 = vpop.f32.mrb[59].mxu0 }
 0x162   : > { %v3937_v0 = vpop.f32.mrb[60].mxu0 }
 0x163   : > { %3209 = vmatmul.mubr.bf16.gmra.mrb[24].mxu1 %v3488_v31  ;;  %4091 = vst [vmem:[#allocation2_spill] sm:$0xff] %v3937_v0  ;;  %v3939_v1 = vpop.f32.mrb[61].mxu0 }
 0x164   : > { %3212 = vmatprep.mubr.bf16.mxu1 %v3489_v32  ;;  %4092 = vst [vmem:[#allocation3_spill] sm:$0xff] %v3939_v1  ;;  %v3941_v2 = vpop.f32.mrb[62].mxu0 }
 0x165   : > { %4093 = vst [vmem:[#allocation4_spill] sm:$0xff] %v3941_v2  ;;  %v3943_v3 = vpop.f32.mrb[63].mxu0 }
 0x166   : > { %4094 = vst [vmem:[#allocation5_spill] sm:$0xff] %v3943_v3 }
 0x168   : > { %v3234_v4 = vpop.f32.mrb[64].mxu0 }
 0x169   : > { %v2042_v6 = vpop.f32.mrb[65].mxu0 }
 0x16a   : > { %v3235_v7 = vpop.f32.mrb[66].mxu0 }
 0x16b   : > { %3213 = vmatmul.mubr.bf16.gmra.mrb[28].mxu1 %v3490_v38  ;;  %v2045_v8 = vpop.f32.mrb[67].mxu0  ;;  %v3975_v38 = vld [vmem:[%s456_s25] ss:$0 sm:$0xff] }
 0x16c   : > { %3252 = vmatprep.mubr.bf16.mxu1 %v3491_v39 }
 0x170   : > { %v3238_v9 = vpop.f32.mrb[68].mxu0 }
 0x171   : > { %v2058_v10 = vpop.f32.mrb[69].mxu0 }
 0x172   : > { %v3239_v11 = vpop.f32.mrb[70].mxu0 }
 0x173   : > { %3253 = vmatmul.mubr.bf16.vlgmr.msra.gmra.mrb[20].mxu1 %v3492_v43  ;;  %v2061_v12 = vpop.f32.mrb[71].mxu0 }
 0x174   : > { %3256 = vmatprep.mubr.bf16.mxu1 %v3493_v44 }
 0x178   : > { %v3945_v13 = vpop.f32.mrb[72].mxu0 }
 0x179   : > { %v3947_v14 = vpop.f32.mrb[73].mxu0 }
 0x17a   : > { %v3949_v15 = vpop.f32.mrb[74].mxu0 }
 0x17b   : > { %3257 = vmatmul.mubr.bf16.gmra.mrb[24].mxu1 %v3494_v55  ;;  %v3951_v16 = vpop.f32.mrb[75].mxu0 }
 0x17c   : > { %3260 = vmatprep.mubr.bf16.mxu1 %v3495_v56 }
 0x180   : > { %v3953_v17 = vpop.f32.mrb[76].mxu0 }
 0x181   : > { %v3955_v5 = vpop.f32.mrb[77].mxu0 }
 0x182   : > { %v3957_v18 = vpop.f32.mrb[78].mxu0 }
 0x183   : > { %3261 = vmatmul.mubr.bf16.gmra.mrb[28].mxu1 %v3496_v63  ;;  %v3959_v19 = vpop.f32.mrb[79].mxu0 }
 0x188   : > { %v3961_v20 = vpop.f32.mrb[80].mxu0 }
 0x189   : > { %v3963_v45 = vpop.f32.mrb[81].mxu0 }
 0x18a   : > { %v3965_v46 = vpop.f32.mrb[82].mxu0 }
 0x18b   : > { %v3967_v53 = vpop.f32.mrb[83].mxu0 }
 0x206   : > { %v3186_v54 = vpop.f32.mrb[0].mxu1 }
 0x207   : > { %v3280_v27 = vadd.f32 %v3186_v54, %v3864_v49  ;;  %v1656_v57 = vpop.f32.mrb[1].mxu1 }
 0x208   : > { %v3282_v31 = vadd.f32 %v1656_v57, %v3867_v21  ;;  %v3187_v32 = vpop.f32.mrb[2].mxu1 }
 0x209   : > { %v3284_v39 = vadd.f32 %v3187_v32, %v3869_v50  ;;  %v3281_v43 = vadd.f32 %v3280_v27, %v3234_v4  ;;  %v1659_v44 = vpop.f32.mrb[3].mxu1 }
 0x20a   : > { %v3286_v55 = vadd.f32 %v1659_v44, %v3871_v22  ;;  %v3283_v56 = vadd.f32 %v3282_v31, %v2042_v6 }
 0x20b   : > { %v2210_v63 = vadd.f32 %v3281_v43, %v3975_v38  ;;  %v3285_v3 = vadd.f32 %v3284_v39, %v3235_v7 }
 0x20c   : > { %v2208_v2 = vadd.f32 %v3283_v56, %v3975_v38  ;;  %v3287_v49 = vadd.f32 %v3286_v55, %v2045_v8 }
 0x20d   : > { %v2211_v54 = vadd.f32 %v3285_v3, %v3975_v38  ;;  %v2242_v1 = vmax.f32 %v2210_v63, 0.0 }
 0x20e   : > { %v2209_v21 = vadd.f32 %v3287_v49, %v3975_v38  ;;  %v3190_v57 = vpop.f32.mrb[4].mxu1  ;;  %v2240_v27 = vmax.f32 %v2208_v2, 0.0 }
 0x20f   : > { %v2243_v0 = vmax.f32 %v2211_v54, 0.0  ;;  %v3288_v50 = vadd.f32 %v3190_v57, %v3878_v23  ;;  %v1672_v4 = vpop.f32.mrb[5].mxu1 }
 0x210   : > { %v2241_v22 = vmax.f32 %v2209_v21, 0.0  ;;  %v3290_v6 = vadd.f32 %v1672_v4, %v3880_v24  ;;  %v3191_v3 = vpop.f32.mrb[6].mxu1 }
 0x211   : > { %v2838_v7 = vpack.c.bf16 %v2243_v0, %v2242_v1  ;;  %v3292_v8 = vadd.f32 %v3191_v3, %v3882_v25  ;;  %v3289_v31 = vadd.f32 %v3288_v50, %v3238_v9  ;;  %v1675_v32 = vpop.f32.mrb[7].mxu1 }
 0x212   : > { %v2833_v39 = vpack.c.bf16 %v2241_v22, %v2240_v27  ;;  %v3294_v23 = vadd.f32 %v1675_v32, %v3884_v26  ;;  %v3291_v2 = vadd.f32 %v3290_v6, %v2058_v10 }
 0x213   : > { %2910 = vst [vmem:[%s3988_s20 + $0x8] sm:$0xff] %v2838_v7   ;;  %v2214_v43 = vadd.f32 %v3289_v31, %v3975_v38  ;;  %v3293_v44 = vadd.f32 %v3292_v8, %v3239_v11 }
 0x214   : > { %2834 = vst [vmem:[%s3988_s20] sm:$0xff] %v2833_v39   ;;  %v2212_v55 = vadd.f32 %v3291_v2, %v3975_v38  ;;  %v3295_v56 = vadd.f32 %v3294_v23, %v2061_v12 }
 0x215   : > { %v2215_v24 = vadd.f32 %v3293_v44, %v3975_v38  ;;  %v2246_v25 = vmax.f32 %v2214_v43, 0.0 }
 0x216   : > { %v2213_v0 = vadd.f32 %v3295_v56, %v3975_v38  ;;  %v3194_v1 = vpop.f32.mrb[8].mxu1  ;;  %v2244_v10 = vmax.f32 %v2212_v55, 0.0 }
 0x217   : > { %v2247_v9 = vmax.f32 %v2215_v24, 0.0  ;;  %v3296_v63 = vadd.f32 %v3194_v1, %v3888_v28  ;;  %v1688_v26 = vpop.f32.mrb[9].mxu1 }
 0x218   : > { %v2245_v49 = vmax.f32 %v2213_v0, 0.0  ;;  %v3298_v11 = vadd.f32 %v1688_v26, %v3890_v29  ;;  %v3195_v54 = vpop.f32.mrb[10].mxu1 }
 0x219   : > { %v2848_v21 = vpack.c.bf16 %v2247_v9, %v2246_v25  ;;  %v3300_v12 = vadd.f32 %v3195_v54, %v3892_v58  ;;  %v3297_v57 = vadd.f32 %v3296_v63, %v3945_v13  ;;  %v1691_v50 = vpop.f32.mrb[11].mxu1 }
 0x21a   : > { %v2843_v4 = vpack.c.bf16 %v2245_v49, %v2244_v10  ;;  %v3302_v27 = vadd.f32 %v1691_v50, %v3894_v30  ;;  %v3299_v22 = vadd.f32 %v3298_v11, %v3947_v14 }
 0x21b   : > { %2912 = vst [vmem:[%s3988_s20 + $0x18] sm:$0xff] %v2848_v21   ;;  %v2218_v28 = vadd.f32 %v3297_v57, %v3975_v38  ;;  %v3301_v6 = vadd.f32 %v3300_v12, %v3949_v15 }
 0x21c   : > { %2911 = vst [vmem:[%s3988_s20 + $0x10] sm:$0xff] %v2843_v4   ;;  %v2216_v29 = vadd.f32 %v3299_v22, %v3975_v38  ;;  %v3303_v3 = vadd.f32 %v3302_v27, %v3951_v16 }
 0x21d   : > { %v2219_v58 = vadd.f32 %v3301_v6, %v3975_v38  ;;  %v2250_v8 = vmax.f32 %v2218_v28, 0.0 }
 0x21e   : > { %v2217_v13 = vadd.f32 %v3303_v3, %v3975_v38  ;;  %v3198_v7 = vpop.f32.mrb[12].mxu1  ;;  %v2248_v32 = vmax.f32 %v2216_v29, 0.0 }
 0x21f   : > { %v2251_v30 = vmax.f32 %v2219_v58, 0.0  ;;  %v3304_v14 = vadd.f32 %v3198_v7, %v3898_v33  ;;  %v1704_v31 = vpop.f32.mrb[13].mxu1 }
 0x220   : > { %v2249_v39 = vmax.f32 %v2217_v13, 0.0  ;;  %v3306_v15 = vadd.f32 %v1704_v31, %v3900_v34  ;;  %v3199_v23 = vpop.f32.mrb[14].mxu1 }
 0x221   : > { %v2858_v2 = vpack.c.bf16 %v2251_v30, %v2250_v8  ;;  %v3308_v16 = vadd.f32 %v3199_v23, %v3902_v35  ;;  %v3305_v43 = vadd.f32 %v3304_v14, %v3953_v17  ;;  %v1707_v44 = vpop.f32.mrb[15].mxu1 }
 0x222   : > { %v2853_v55 = vpack.c.bf16 %v2249_v39, %v2248_v32  ;;  %v3310_v56 = vadd.f32 %v1707_v44, %v3904_v37  ;;  %v3307_v24 = vadd.f32 %v3306_v15, %v3955_v5 }
 0x223   : > { %2914 = vst [vmem:[%s3988_s20 + $0x28] sm:$0xff] %v2858_v2   ;;  %v2222_v33 = vadd.f32 %v3305_v43, %v3975_v38  ;;  %v3309_v0 = vadd.f32 %v3308_v16, %v3957_v18 }
 0x224   : > { %2913 = vst [vmem:[%s3988_s20 + $0x20] sm:$0xff] %v2853_v55   ;;  %v2220_v34 = vadd.f32 %v3307_v24, %v3975_v38  ;;  %v3311_v1 = vadd.f32 %v3310_v56, %v3959_v19 }
 0x225   : > { %v2223_v35 = vadd.f32 %v3309_v0, %v3975_v38  ;;  %v2254_v9 = vmax.f32 %v2222_v33, 0.0 }
 0x226   : > { %v2221_v17 = vadd.f32 %v3311_v1, %v3975_v38  ;;  %v3202_v25 = vpop.f32.mrb[16].mxu1  ;;  %v2252_v26 = vmax.f32 %v2220_v34, 0.0 }
 0x227   : > { %v2255_v37 = vmax.f32 %v2223_v35, 0.0  ;;  %v3312_v5 = vadd.f32 %v3202_v25, %v3908_v36  ;;  %v1720_v63 = vpop.f32.mrb[17].mxu1 }
 0x228   : > { %v2253_v10 = vmax.f32 %v2221_v17, 0.0  ;;  %v3314_v18 = vadd.f32 %v1720_v63, %v3910_v40  ;;  %v3203_v49 = vpop.f32.mrb[18].mxu1 }
 0x229   : > { %v2868_v11 = vpack.c.bf16 %v2255_v37, %v2254_v9  ;;  %v3316_v19 = vadd.f32 %v3203_v49, %v3912_v41  ;;  %v3313_v54 = vadd.f32 %v3312_v5, %v3961_v20  ;;  %v1723_v21 = vpop.f32.mrb[19].mxu1  ;;  %v4095_v5 = vld [vmem:[#allocation2_spill] sm:$0xff] }
 0x22a   : > { %v2863_v12 = vpack.c.bf16 %v2253_v10, %v2252_v26  ;;  %v3318_v57 = vadd.f32 %v1723_v21, %v3914_v42  ;;  %v3315_v50 = vadd.f32 %v3314_v18, %v3963_v45  ;;  %v4096_v10 = vld [vmem:[#allocation3_spill] sm:$0xff] }
 0x22b   : > { %2916 = vst [vmem:[%s3988_s20 + $0x38] sm:$0xff] %v2868_v11   ;;  %v2226_v36 = vadd.f32 %v3313_v54, %v3975_v38  ;;  %v3317_v4 = vadd.f32 %v3316_v19, %v3965_v46  ;;  %v4097_v11 = vld [vmem:[#allocation4_spill] sm:$0xff] }
 0x22c   : > { %2915 = vst [vmem:[%s3988_s20 + $0x30] sm:$0xff] %v2863_v12   ;;  %v2224_v40 = vadd.f32 %v3315_v50, %v3975_v38  ;;  %v3319_v41 = vadd.f32 %v3318_v57, %v3967_v53  ;;  %v4098_v12 = vld [vmem:[#allocation5_spill] sm:$0xff] }
 0x22d   : > { %v2227_v20 = vadd.f32 %v3317_v4, %v3975_v38  ;;  %v2258_v22 = vmax.f32 %v2226_v36, 0.0 }
 0x22e   : > { %v2225_v27 = vadd.f32 %v3319_v41, %v3975_v38  ;;  %v2256_v28 = vmax.f32 %v2224_v40, 0.0 }
 0x22f   : > { %v2259_v42 = vmax.f32 %v2227_v20, 0.0 }
 0x230   : > { %v2257_v6 = vmax.f32 %v2225_v27, 0.0 }
 0x231   : > { %v2878_v45 = vpack.c.bf16 %v2259_v42, %v2258_v22 }
 0x232   : > { %v2873_v29 = vpack.c.bf16 %v2257_v6, %v2256_v28 }
 0x233   : > { %2918 = vst [vmem:[%s3988_s20 + $0x48] sm:$0xff] %v2878_v45  }
 0x234   : > { %2917 = vst [vmem:[%s3988_s20 + $0x40] sm:$0xff] %v2873_v29  }
 0x246   : > { %v3254_v3 = vpop.f32.mrb[20].mxu1 }
 0x247   : > { %v3320_v46 = vadd.f32 %v3254_v3, %v3918_v47  ;;  %v2122_v58 = vpop.f32.mrb[21].mxu1 }
 0x248   : > { %v3321_v13 = vadd.f32 %v2122_v58, %v3920_v48  ;;  %v3255_v7 = vpop.f32.mrb[22].mxu1 }
 0x249   : > { %v2230_v53 = vadd.f32 %v3320_v46, %v3975_v38  ;;  %v3322_v8 = vadd.f32 %v3255_v7, %v3922_v51  ;;  %v2125_v30 = vpop.f32.mrb[23].mxu1 }
 0x24a   : > { %v2228_v14 = vadd.f32 %v3321_v13, %v3975_v38  ;;  %v3323_v31 = vadd.f32 %v2125_v30, %v3924_v52 }
 0x24b   : > { %v2231_v32 = vadd.f32 %v3322_v8, %v3975_v38  ;;  %v2262_v47 = vmax.f32 %v2230_v53, 0.0 }
 0x24c   : > { %v2229_v39 = vadd.f32 %v3323_v31, %v3975_v38  ;;  %v2260_v23 = vmax.f32 %v2228_v14, 0.0 }
 0x24d   : > { %v2263_v15 = vmax.f32 %v2231_v32, 0.0 }
 0x24e   : > { %v2261_v48 = vmax.f32 %v2229_v39, 0.0  ;;  %v3258_v2 = vpop.f32.mrb[24].mxu1 }
 0x24f   : > { %v2888_v16 = vpack.c.bf16 %v2263_v15, %v2262_v47  ;;  %v3324_v43 = vadd.f32 %v3258_v2, %v3928_v59  ;;  %v2138_v51 = vpop.f32.mrb[25].mxu1 }
 0x250   : > { %v2883_v44 = vpack.c.bf16 %v2261_v48, %v2260_v23  ;;  %v3325_v55 = vadd.f32 %v2138_v51, %v3930_v60  ;;  %v3259_v56 = vpop.f32.mrb[26].mxu1 }
 0x251   : > { %2920 = vst [vmem:[%s3988_s20 + $0x58] sm:$0xff] %v2888_v16   ;;  %v2234_v52 = vadd.f32 %v3324_v43, %v3975_v38  ;;  %v3326_v24 = vadd.f32 %v3259_v56, %v3932_v61  ;;  %v2141_v33 = vpop.f32.mrb[27].mxu1 }
 0x252   : > { %2919 = vst [vmem:[%s3988_s20 + $0x50] sm:$0xff] %v2883_v44   ;;  %v2232_v0 = vadd.f32 %v3325_v55, %v3975_v38  ;;  %v3327_v34 = vadd.f32 %v2141_v33, %v3934_v62 }
 0x253   : > { %v2235_v1 = vadd.f32 %v3326_v24, %v3975_v38  ;;  %v2266_v35 = vmax.f32 %v2234_v52, 0.0 }
 0x254   : > { %v2233_v59 = vadd.f32 %v3327_v34, %v3975_v38  ;;  %v2264_v17 = vmax.f32 %v2232_v0, 0.0 }
 0x255   : > { %v2267_v60 = vmax.f32 %v2235_v1, 0.0 }
 0x256   : > { %v2265_v25 = vmax.f32 %v2233_v59, 0.0  ;;  %v3262_v9 = vpop.f32.mrb[28].mxu1 }
 0x257   : > { %v2898_v37 = vpack.c.bf16 %v2267_v60, %v2266_v35  ;;  %v3328_v61 = vadd.f32 %v3262_v9, %v4095_v5  ;;  %v2154_v63 = vpop.f32.mrb[29].mxu1 }
 0x258   : > { %v2893_v26 = vpack.c.bf16 %v2265_v25, %v2264_v17  ;;  %v3329_v18 = vadd.f32 %v2154_v63, %v4096_v10  ;;  %v3263_v49 = vpop.f32.mrb[30].mxu1 }
 0x259   : > { %2922 = vst [vmem:[%s3988_s20 + $0x68] sm:$0xff] %v2898_v37   ;;  %v2238_v62 = vadd.f32 %v3328_v61, %v3975_v38  ;;  %v3330_v19 = vadd.f32 %v3263_v49, %v4097_v11  ;;  %v2157_v54 = vpop.f32.mrb[31].mxu1 }
 0x25a   : > { %2921 = vst [vmem:[%s3988_s20 + $0x60] sm:$0xff] %v2893_v26   ;;  %v2236_v21 = vadd.f32 %v3329_v18, %v3975_v38  ;;  %v3331_v57 = vadd.f32 %v2157_v54, %v4098_v12 }
 0x25b   : > { %v2239_v50 = vadd.f32 %v3330_v19, %v3975_v38  ;;  %v2270_v4 = vmax.f32 %v2238_v62, 0.0 }
 0x25c   : > { %v2237_v36 = vadd.f32 %v3331_v57, %v3975_v38  ;;  %v2268_v41 = vmax.f32 %v2236_v21, 0.0 }
 0x25d   : > { %v2271_v40 = vmax.f32 %v2239_v50, 0.0 }
 0x25e   : > { %v2269_v20 = vmax.f32 %v2237_v36, 0.0 }
 0x25f   : > { %v2908_v27 = vpack.c.bf16 %v2271_v40, %v2270_v4 }
 0x260   : > { %v2903_v22 = vpack.c.bf16 %v2269_v20, %v2268_v41 }
 0x261   : > { %2924 = vst [vmem:[%s3988_s20 + $0x78] sm:$0xff] %v2908_v27  }
 0x262   : > { %2923 = vst [vmem:[%s3988_s20 + $0x70] sm:$0xff] %v2903_v22  }
 0x263 PF: > { %s18_s29 = sadd.s32 1, %s3519_s29   ;;  %s4099_s27 = smov %s3515_s28 }
 0x264   : > { %p15_p5 = scmp.ge.s32.totalorder %s18_s29, 4   ;;  %s4100_s28 = smov %s4102_s30 }
 0x266   :  { %17 = sbr.rel (!%p15_p5) target bundleno = 2 (0x2), region = 97 }

</bundles_post_ra>
